<compile_context>
chip_gen: v6e
topology: v6e:2x2x1
jax: 0.10.0
libtpu: 0.0.40
codegen_flags: <defaults>
</compile_context>

<pallas_src>
import numpy as np
import jax
import jax.numpy as jnp
from jax.experimental import pallas as pl
from jax.experimental.pallas import tpu as pltpu


def convblock_kernel(x_ref, w_ref, shift_ref, o_ref):
    """One batch block per grid step.

    x_ref:     (Nb, Hp, Wp, Cin)       padded input tile (compute dtype)
    w_ref:     (KH*KW*Cin, Cp)         BN-scale-folded, Cout-padded weights
    shift_ref: (1, Cp)                 folded BN shift (f32)
    o_ref:     (Nb, H, W, Cp)          output tile, Cp multiple of 128 (lane dense)
    """
    Nb, Hp, Wp, Cin = x_ref.shape
    _, H, W, Cp = o_ref.shape
    KH = Hp - H + 1
    KW = Wp - W + 1

    # Build the im2col patch once -> a single (Nb*H*W, KH*KW*Cin) @ (K, Cp) MXU push
    # instead of 9 tiny K=Cin matmuls.
    x = x_ref[...]
    taps = []
    for kh in range(KH):
        for kw in range(KW):
            taps.append(x[:, kh:kh + H, kw:kw + W, :])
    patch = jnp.concatenate(taps, axis=-1).reshape(Nb * H * W, KH * KW * Cin)

    acc = jnp.dot(patch, w_ref[...], preferred_element_type=jnp.float32)

    # Fused BN (eval mode): scale already folded into the weights; only add shift.
    y = acc + shift_ref[0, :]

    # Mish with a single transcendental: y * tanh(softplus(y)) == y * t/(t+2),
    # t = u*(u+2), u = exp(y); clamp before exp to avoid f32 overflow.
    u = jnp.exp(jnp.minimum(y, 20.0))
    t = u * (u + 2.0)
    out = y * (t / (t + 2.0))

    o_ref[...] = out.reshape(Nb, H, W, Cp).astype(o_ref.dtype)


def conv_block_forward(x_nchw, weight_oihw, gamma, beta,
                       running_mean, running_var, eps=1e-5, padding=1,
                       compute_dtype=jnp.bfloat16, batch_block=None):
    """ConvBlock forward. x_nchw: (N, Cin, H, W) f32 -> (N, Cout, H, W) f32."""
    # PyTorch layouts -> kernel layouts.
    x = jnp.transpose(x_nchw, (0, 2, 3, 1))           # NCHW -> NHWC
    w = jnp.transpose(weight_oihw, (2, 3, 1, 0))       # OIHW -> HWIO

    N, H, W, Cin = x.shape
    KH, KW, _, Cout = w.shape
    Hp, Wp = H + 2 * padding, W + 2 * padding
    Ho, Wo = Hp - KH + 1, Wp - KW + 1                  # stride = 1

    # Fold eval-mode BN scale into the weights; keep only the shift.
    inv_std = jax.lax.rsqrt(running_var.astype(jnp.float32) + eps)
    scale = gamma.astype(jnp.float32) * inv_std                       # (Cout,)
    shift = beta.astype(jnp.float32) - running_mean.astype(jnp.float32) * scale

    # Pad Cout up to a multiple of 128: unmasked (lane-dense) stores + full MXU lanes.
    Cp = ((Cout + 127) // 128) * 128
    w_folded = w.astype(jnp.float32) * scale[None, None, None, :]
    w_folded = jnp.pad(w_folded, ((0, 0), (0, 0), (0, 0), (0, Cp - Cout)))
    w2d = w_folded.reshape(KH * KW * Cin, Cp).astype(compute_dtype)   # (K, Cp)
    shift_p = jnp.pad(shift, (0, Cp - Cout)).reshape(1, Cp)           # f32

    x_pad = jnp.pad(
        x, ((0, 0), (padding, padding), (padding, padding), (0, 0))
    ).astype(compute_dtype)

    # Batch block: as many images per grid step as fit a modest VMEM budget
    # (Pallas double-buffers the blocks).
    if batch_block is None:
        bytes_per_img = (Hp * Wp * Cin * np.dtype(compute_dtype).itemsize
                         + Ho * Wo * Cp * np.dtype(x_nchw.dtype).itemsize)
        budget = 8 << 20
        nb = int(max(1, min(N, budget // max(bytes_per_img, 1))))
        while N % nb:
            nb -= 1
        batch_block = nb
    Nb = batch_block
    grid = (N // Nb,)

    out_nhwc = pl.pallas_call(
        convblock_kernel,
        out_shape=jax.ShapeDtypeStruct((N, Ho, Wo, Cp), x_nchw.dtype),
        grid=grid,
        in_specs=[
            pl.BlockSpec((Nb, Hp, Wp, Cin), lambda n: (n, 0, 0, 0)),
            pl.BlockSpec((KH * KW * Cin, Cp), lambda n: (0, 0)),
            pl.BlockSpec((1, Cp), lambda n: (0, 0)),
        ],
        out_specs=pl.BlockSpec((Nb, Ho, Wo, Cp), lambda n: (n, 0, 0, 0)),
        compiler_params=pltpu.CompilerParams(
            dimension_semantics=("parallel",)),   # lets v7x shard batch over 2 TCs
    )(x_pad, w2d, shift_p)

    out = out_nhwc[..., :Cout]                         # strip Cout padding
    return jnp.transpose(out, (0, 3, 1, 2))            # NHWC -> NCHW


def _reference(x_nchw, weight_oihw, gamma, beta, running_mean, running_var, eps=1e-5):
    """Plain-JAX reference (lax conv + eval-mode BN + Mish) for validation."""
    y = jax.lax.conv_general_dilated(
        x_nchw, weight_oihw, window_strides=(1, 1), padding=((1, 1), (1, 1)),
        dimension_numbers=("NCHW", "OIHW", "NCHW"))
    c = y.shape[1]
    scale = (gamma / jnp.sqrt(running_var + eps)).reshape(1, c, 1, 1)
    shift = (beta - running_mean * gamma / jnp.sqrt(running_var + eps)).reshape(1, c, 1, 1)
    z = y * scale + shift
    sp = jnp.maximum(z, 0.0) + jnp.log1p(jnp.exp(-jnp.abs(z)))
    return z * jnp.tanh(sp)


if __name__ == "__main__":
    key = jax.random.PRNGKey(0)
    k_x, k_w, k_g, k_b, k_m, k_v = jax.random.split(key, 6)

    N, Cin, Cout, H, W = 2, 4, 8, 16, 16

    x = jax.random.normal(k_x, (N, Cin, H, W), dtype=jnp.float32)
    weight = jax.random.normal(k_w, (Cout, Cin, 3, 3), dtype=jnp.float32) * 0.1
    gamma = 1.0 + 0.1 * jax.random.normal(k_g, (Cout,), dtype=jnp.float32)
    beta = 0.1 * jax.random.normal(k_b, (Cout,), dtype=jnp.float32)
    running_mean = 0.1 * jax.random.normal(k_m, (Cout,), dtype=jnp.float32)
    running_var = 1.0 + 0.1 * jax.random.uniform(k_v, (Cout,), dtype=jnp.float32)

    ref = _reference(x, weight, gamma, beta, running_mean, running_var)

    # Exact path: f32 MXU operands (tight check).
    out_f32 = conv_block_forward(x, weight, gamma, beta, running_mean, running_var,
                                 compute_dtype=jnp.float32)
    out_f32 = jax.block_until_ready(out_f32)
    assert out_f32.shape == (N, Cout, H, W)
    assert jnp.allclose(out_f32, ref, atol=1e-3, rtol=1e-3), "f32 mismatch vs reference"

    # Default fast path: bf16 MXU operands, f32 accumulate + f32 epilogue (looser check).
    out_bf16 = conv_block_forward(x, weight, gamma, beta, running_mean, running_var)
    out_bf16 = jax.block_until_ready(out_bf16)
    assert out_bf16.shape == (N, Cout, H, W)
    assert jnp.allclose(out_bf16, ref, atol=2e-2, rtol=2e-2), "bf16 mismatch vs reference"

    print("KERNEL_OK")
</pallas_src>

<mosaic_0001>
module attributes {stable_mosaic.version = 11 : i64} {
  func.func @convblock_kernel(%arg0: i32, %arg1: memref<2x18x18x4xf32, #tpu.memory_space<vmem>>, %arg2: memref<36x128xf32, #tpu.memory_space<vmem>>, %arg3: memref<1x128xf32, #tpu.memory_space<vmem>>, %arg4: memref<2x16x16x128xf32, #tpu.memory_space<vmem>>) attributes {dimension_semantics = [#tpu.dimension_semantics<parallel>], iteration_bounds = array<i64: 1>, scalar_prefetch = 0 : i64, scratch_operands = 0 : i64, tpu.core_type = #tpu.core_type<tc>, window_params = [{transform_indices = @transform_0, window_bounds = array<i64: 2, 18, 18, 4>}, {pipeline_mode = #tpu.pipeline_mode<synchronous>, transform_indices = @transform_1, window_bounds = array<i64: 36, 128>}, {pipeline_mode = #tpu.pipeline_mode<synchronous>, transform_indices = @transform_2, window_bounds = array<i64: 1, 128>}, {transform_indices = @transform_3, window_bounds = array<i64: 2, 16, 16, 128>}]} {
    %c0 = arith.constant 0 : index
    %c0_0 = arith.constant 0 : index
    %c0_1 = arith.constant 0 : index
    %c0_2 = arith.constant 0 : index
    %0 = vector.load %arg1[%c0, %c0_0, %c0_1, %c0_2] : memref<2x18x18x4xf32, #tpu.memory_space<vmem>>, vector<2x18x18x4xf32>
    %1 = vector.extract_strided_slice %0 {offsets = [0, 0, 0, 0], sizes = [2, 16, 16, 4], strides = [1, 1, 1, 1]} : vector<2x18x18x4xf32> to vector<2x16x16x4xf32>
    %2 = vector.extract_strided_slice %0 {offsets = [0, 0, 1, 0], sizes = [2, 16, 16, 4], strides = [1, 1, 1, 1]} : vector<2x18x18x4xf32> to vector<2x16x16x4xf32>
    %3 = vector.extract_strided_slice %0 {offsets = [0, 0, 2, 0], sizes = [2, 16, 16, 4], strides = [1, 1, 1, 1]} : vector<2x18x18x4xf32> to vector<2x16x16x4xf32>
    %4 = vector.extract_strided_slice %0 {offsets = [0, 1, 0, 0], sizes = [2, 16, 16, 4], strides = [1, 1, 1, 1]} : vector<2x18x18x4xf32> to vector<2x16x16x4xf32>
    %5 = vector.extract_strided_slice %0 {offsets = [0, 1, 1, 0], sizes = [2, 16, 16, 4], strides = [1, 1, 1, 1]} : vector<2x18x18x4xf32> to vector<2x16x16x4xf32>
    %6 = vector.extract_strided_slice %0 {offsets = [0, 1, 2, 0], sizes = [2, 16, 16, 4], strides = [1, 1, 1, 1]} : vector<2x18x18x4xf32> to vector<2x16x16x4xf32>
    %7 = vector.extract_strided_slice %0 {offsets = [0, 2, 0, 0], sizes = [2, 16, 16, 4], strides = [1, 1, 1, 1]} : vector<2x18x18x4xf32> to vector<2x16x16x4xf32>
    %8 = vector.extract_strided_slice %0 {offsets = [0, 2, 1, 0], sizes = [2, 16, 16, 4], strides = [1, 1, 1, 1]} : vector<2x18x18x4xf32> to vector<2x16x16x4xf32>
    %9 = vector.extract_strided_slice %0 {offsets = [0, 2, 2, 0], sizes = [2, 16, 16, 4], strides = [1, 1, 1, 1]} : vector<2x18x18x4xf32> to vector<2x16x16x4xf32>
    %10 = tpu.concatenate %1, %2, %3, %4, %5, %6, %7, %8, %9 in 3 : vector<2x16x16x4xf32>, vector<2x16x16x4xf32>, vector<2x16x16x4xf32>, vector<2x16x16x4xf32>, vector<2x16x16x4xf32>, vector<2x16x16x4xf32>, vector<2x16x16x4xf32>, vector<2x16x16x4xf32>, vector<2x16x16x4xf32> -> vector<2x16x16x36xf32>
    %11 = vector.shape_cast %10 : vector<2x16x16x36xf32> to vector<512x36xf32>
    %c0_3 = arith.constant 0 : index
    %c0_4 = arith.constant 0 : index
    %12 = vector.load %arg2[%c0_3, %c0_4] : memref<36x128xf32, #tpu.memory_space<vmem>>, vector<36x128xf32>
    %cst = arith.constant dense<0.000000e+00> : vector<512x128xf32>
    %13 = tpu.matmul %11, %12, %cst {dimension_numbers = #tpu.dot_dimension_numbers<[1], [0], [0], [1], [0, 0, 1, 1], [], []>} : vector<512x36xf32>, vector<36x128xf32>, vector<512x128xf32> -> vector<512x128xf32>
    %c0_5 = arith.constant 0 : index
    %c0_6 = arith.constant 0 : index
    %14 = vector.load %arg3[%c0_5, %c0_6] : memref<1x128xf32, #tpu.memory_space<vmem>>, vector<1x128xf32>
    %15 = vector.shape_cast %14 : vector<1x128xf32> to vector<128xf32>
    %16 = vector.shape_cast %15 : vector<128xf32> to vector<1x128xf32>
    %17 = vector.broadcast %16 : vector<1x128xf32> to vector<512x128xf32>
    %18 = arith.addf %13, %17 : vector<512x128xf32>
    %cst_7 = arith.constant 2.000000e+01 : f32
    %19 = vector.broadcast %cst_7 : f32 to vector<512x128xf32>
    %20 = arith.minimumf %18, %19 : vector<512x128xf32>
    %21 = math.exp %20 : vector<512x128xf32>
    %cst_8 = arith.constant 2.000000e+00 : f32
    %22 = vector.broadcast %cst_8 : f32 to vector<512x128xf32>
    %23 = arith.addf %21, %22 : vector<512x128xf32>
    %24 = arith.mulf %21, %23 : vector<512x128xf32>
    %cst_9 = arith.constant 2.000000e+00 : f32
    %25 = vector.broadcast %cst_9 : f32 to vector<512x128xf32>
    %26 = arith.addf %24, %25 : vector<512x128xf32>
    %27 = arith.divf %24, %26 : vector<512x128xf32>
    %28 = arith.mulf %18, %27 : vector<512x128xf32>
    %29 = vector.shape_cast %28 : vector<512x128xf32> to vector<2x16x16x128xf32>
    %c0_10 = arith.constant 0 : index
    %c0_11 = arith.constant 0 : index
    %c0_12 = arith.constant 0 : index
    %c0_13 = arith.constant 0 : index
    %30 = vector.load %arg4[%c0_10, %c0_11, %c0_12, %c0_13] : memref<2x16x16x128xf32, #tpu.memory_space<vmem>>, vector<2x16x16x128xf32>
    tpu.vector_store %arg4[%c0_10, %c0_11, %c0_12, %c0_13], %29 {strides = array<i32>} : memref<2x16x16x128xf32, #tpu.memory_space<vmem>>, vector<2x16x16x128xf32>,
    return
  }
  func.func @transform_0(%arg0: i32) -> (i32, i32, i32, i32) {
    %c0_i32 = arith.constant 0 : i32
    %c0_i32_0 = arith.constant 0 : i32
    %c0_i32_1 = arith.constant 0 : i32
    %c0_i32_2 = arith.constant 0 : i32
    return %arg0, %c0_i32, %c0_i32_0, %c0_i32_1 : i32, i32, i32, i32
  }
  func.func @transform_1(%arg0: i32) -> (i32, i32) {
    %c0_i32 = arith.constant 0 : i32
    %c0_i32_0 = arith.constant 0 : i32
    %c0_i32_1 = arith.constant 0 : i32
    return %c0_i32, %c0_i32_0 : i32, i32
  }
  func.func @transform_2(%arg0: i32) -> (i32, i32) {
    %c0_i32 = arith.constant 0 : i32
    %c0_i32_0 = arith.constant 0 : i32
    %c0_i32_1 = arith.constant 0 : i32
    return %c0_i32, %c0_i32_0 : i32, i32
  }
  func.func @transform_3(%arg0: i32) -> (i32, i32, i32, i32) {
    %c0_i32 = arith.constant 0 : i32
    %c0_i32_0 = arith.constant 0 : i32
    %c0_i32_1 = arith.constant 0 : i32
    %c0_i32_2 = arith.constant 0 : i32
    return %arg0, %c0_i32, %c0_i32_0, %c0_i32_1 : i32, i32, i32, i32
  }
}

</mosaic_0001>

<bundles_post_ra>
// kernel: tpu_custom_call.1
= control target key start
LH: loop header
LB: loop body
LE: loop exit
PB: predicated region body
PF: predicated region fallthrough
CT: control target
= control target key end

     0   :  { %vm219_vm0 = vcmask 1046528   ;;  %s4558_s30 = smov 4   ;;  %s9240_s0 = inlined_call_operand.vmem [shape: f32[2,18,18,4], index: 0, kind: input, shape index: {}]   ;;  %s9241_s1 = inlined_call_operand.vmem [shape: f32[36,128], index: 1, kind: input, shape index: {}]   ;;  %s9242_s2 = inlined_call_operand.vmem [shape: f32[1,128], index: 2, kind: input, shape index: {}]   ;;  %s9243_s3 = inlined_call_operand.hbm [shape: f32[2,16,16,128], index: 3, kind: output, shape index: {}]  }
   0x1   :  { %v4591_v0 = vld [vmem:[%s9240_s0 + $0x18] sm:$0xff]  ;;  %v4596_v1 = vld [vmem:[%s9240_s0 + $0x20] sm:$0xff]  ;;  %v4608_v5 = vld [vmem:[%s9240_s0 + $0x8] sm:$0xff] }
   0x2   :  { %v4601_v2 = vld [vmem:[%s9240_s0] sm:$0xff]  ;;  %v225_v3 = vrot.slane %v4591_v0, 1  ;;  %v226_v4 = vrot.slane %v4596_v1, 1  ;;  %v4614_v7 = vld [vmem:[%s9240_s0 + $0x28] sm:$0x3]  ;;  %v221_v8 = vrot.slane %v4608_v5, 1 }
   0x3   :  { %v220_v6 = vrot.slane %v4601_v2, 1  ;;  %v228_v9 = vrot.slane %v4614_v7, 1  ;;  %v4621_v10 = vld [vmem:[%s9240_s0 + $0x10] sm:$0x3]  ;;  %v4626_v11 = vld [vmem:[%s9240_s0 + $0x38] sm:$0xff]  ;;  %v4666_v24 = vld [vmem:[%s9240_s0 + $0x48] sm:$0xff] }
   0x4   :  { %v4629_v12 = vsel %vm219_vm0, %v225_v3, %v226_v4  ;;  %v223_v13 = vrot.slane %v4621_v10, 1  ;;  %v4635_v14 = vld [vmem:[%s9240_s0 + $0x40] sm:$0x3]  ;;  %v4640_v15 = vld [vmem:[%s9240_s0 + $0x30] sm:$0xff]  ;;  %v231_v18 = vrot.slane %v4626_v11, 1  ;;  %v235_v29 = vrot.slane %v4666_v24, 1 }
   0x5   :  { %9527 = vst [vmem:[#allocation5_spill] sm:$0xff] %v4629_v12  ;;  %384 = vrot.lane.b32.xlu1 %v4629_v12, %s4558_s30  ;;  %v222_v16 = vsel %vm219_vm0, %v220_v6, %v221_v8  ;;  %v4647_v17 = vsel %vm219_vm0, %v226_v4, %v228_v9  ;;  %v233_v19 = vrot.slane %v4635_v14, 1  ;;  %v230_v21 = vrot.slane %v4640_v15, 1  ;;  %v4656_v22 = vld [vmem:[%s9240_s0 + $0x50] sm:$0xff]  ;;  %v4661_v23 = vld [vmem:[%s9240_s0 + $0x58] sm:$0x3] }
   0x6   :  { %380 = vrot.lane.b32.xlu0 %v222_v16, %s4558_s30  ;;  %9528 = vst [vmem:[#allocation6_spill] sm:$0xff] %v4647_v17  ;;  %v224_v20 = vsel %vm219_vm0, %v221_v8, %v223_v13  ;;  %v236_v26 = vrot.slane %v4656_v22, 1  ;;  %v238_v27 = vrot.slane %v4661_v23, 1  ;;  %v4683_v30 = vld [vmem:[%s9240_s0 + $0x68] sm:$0xff]  ;;  %v4688_v31 = vld [vmem:[%s9240_s0 + $0x70] sm:$0x3] }
   0x7   :  { %v4672_v25 = vsel %vm219_vm0, %v231_v18, %v233_v19  ;;  %v4677_v28 = vsel %vm219_vm0, %v230_v21, %v231_v18  ;;  %v4693_v32 = vld [vmem:[%s9240_s0 + $0x60] sm:$0xff]  ;;  %v241_v34 = vrot.slane %v4683_v30, 1  ;;  %v243_v35 = vrot.slane %v4688_v31, 1  ;;  %v4716_v39 = vld [vmem:[%s9240_s0 + $0x88] sm:$0x3]  ;;  %v4721_v40 = vld [vmem:[%s9240_s0 + $0x78] sm:$0xff] }
   0x8   :  { %9529 = vst [vmem:[#allocation7_spill] sm:$0xff] %v4672_v25  ;;  %9530 = vst [vmem:[#allocation8_spill] sm:$0xff] %v4677_v28  ;;  %v4700_v33 = vsel %vm219_vm0, %v236_v26, %v238_v27  ;;  %v4705_v36 = vsel %vm219_vm0, %v235_v29, %v236_v26  ;;  %v240_v37 = vrot.slane %v4693_v32, 1  ;;  %v4711_v38 = vld [vmem:[%s9240_s0 + $0x80] sm:$0xff]  ;;  %v248_v43 = vrot.slane %v4716_v39, 1  ;;  %v4739_v46 = vld [vmem:[%s9240_s0 + $0x98] sm:$0xff] }
   0x9   :  { %386 = vrot.lane.b32.xlu1 %v4647_v17, %s4558_s30  ;;  %9531 = vst [vmem:[#allocation9_spill] sm:$0xff] %v4700_v33  ;;  %9532 = vst [vmem:[#allocation10_spill] sm:$0xff] %v4705_v36  ;;  %v4728_v41 = vsel %vm219_vm0, %v241_v34, %v243_v35  ;;  %v246_v42 = vrot.slane %v4711_v38, 1  ;;  %v245_v45 = vrot.slane %v4721_v40, 1  ;;  %v4744_v47 = vld [vmem:[%s9240_s0 + $0xa0] sm:$0x3] }
   0xa   :  { %382 = vrot.lane.b32.xlu0 %v224_v20, %s4558_s30  ;;  %9533 = vst [vmem:[#allocation11_spill] sm:$0xff] %v4728_v41  ;;  %v4733_v44 = vsel %vm219_vm0, %v240_v37, %v241_v34  ;;  %v4749_v48 = vld [vmem:[%s9240_s0 + $0x90] sm:$0xff]  ;;  %v251_v50 = vrot.slane %v4739_v46, 1  ;;  %v253_v51 = vrot.slane %v4744_v47, 1  ;;  %v4772_v55 = vld [vmem:[%s9240_s0 + $0xb8] sm:$0x3] }
   0xb   :  { %9534 = vst [vmem:[#allocation12_spill] sm:$0xff] %v4733_v44  ;;  %v4756_v49 = vsel %vm219_vm0, %v246_v42, %v248_v43  ;;  %v4761_v52 = vsel %vm219_vm0, %v245_v45, %v246_v42  ;;  %v250_v53 = vrot.slane %v4749_v48, 1  ;;  %v4767_v54 = vld [vmem:[%s9240_s0 + $0xb0] sm:$0xff]  ;;  %v4777_v56 = vld [vmem:[%s9240_s0 + $0xa8] sm:$0xff]  ;;  %v258_v59 = vrot.slane %v4772_v55, 1  ;;  %v4805_v3 = vld [vmem:[%s9240_s0 + $0xc0] sm:$0xff] }
   0xc   :  { %9535 = vst [vmem:[#allocation13_spill] sm:$0xff] %v4756_v49  ;;  %9536 = vst [vmem:[#allocation14_spill] sm:$0xff] %v4761_v52  ;;  %v4784_v57 = vsel %vm219_vm0, %v251_v50, %v253_v51  ;;  %v256_v58 = vrot.slane %v4767_v54, 1  ;;  %v255_v61 = vrot.slane %v4777_v56, 1  ;;  %v4795_v62 = vld [vmem:[%s9240_s0 + $0xc8] sm:$0xff]  ;;  %v260_v13 = vrot.slane %v4805_v3, 1 }
   0xd   :  { %390 = vrot.lane.b32.xlu1 %v4672_v25, %s4558_s30  ;;  %9537 = vst [vmem:[#allocation15_spill] sm:$0xff] %v4784_v57  ;;  %v4789_v60 = vsel %vm219_vm0, %v250_v53, %v251_v50  ;;  %v4800_v63 = vld [vmem:[%s9240_s0 + $0xd0] sm:$0x3]  ;;  %v261_v6 = vrot.slane %v4795_v62, 1  ;;  %v4823_v16 = vld [vmem:[%s9240_s0 + $0xe0] sm:$0xff]  ;;  %v4833_v19 = vld [vmem:[%s9240_s0 + $0xd8] sm:$0xff] }
   0xe   :  { %388 = vrot.lane.b32.xlu0 %v4677_v28, %s4558_s30  ;;  %9538 = vst [vmem:[#allocation16_spill] sm:$0xff] %v4789_v60  ;;  %v4812_v4 = vsel %vm219_vm0, %v256_v58, %v258_v59  ;;  %v263_v8 = vrot.slane %v4800_v63, 1  ;;  %v4817_v9 = vsel %vm219_vm0, %v255_v61, %v256_v58  ;;  %v4828_v18 = vld [vmem:[%s9240_s0 + $0xe8] sm:$0x3]  ;;  %v266_v21 = vrot.slane %v4823_v16, 1  ;;  %v4851_v34 = vld [vmem:[%s9240_s0 + $0xf8] sm:$0xff] }
   0xf   :  { %9539 = vst [vmem:[#allocation17_spill] sm:$0xff] %v4812_v4  ;;  %9540 = vst [vmem:[#allocation18_spill] sm:$0xff] %v4817_v9  ;;  %v268_v26 = vrot.slane %v4828_v18, 1  ;;  %v4845_v27 = vsel %vm219_vm0, %v260_v13, %v261_v6  ;;  %v265_v29 = vrot.slane %v4833_v19, 1  ;;  %v4856_v35 = vld [vmem:[%s9240_s0 + $0x100] sm:$0x3] }
  0x10   :  { %v4840_v20 = vsel %vm219_vm0, %v261_v6, %v263_v8  ;;  %9542 = vst [vmem:[#allocation20_spill] sm:$0xff] %v4845_v27  ;;  %v4861_v37 = vld [vmem:[%s9240_s0 + $0xf0] sm:$0xff] }
  0x11   :  { %394 = vrot.lane.b32.xlu1 %v4700_v33, %s4558_s30  ;;  %9541 = vst [vmem:[#allocation19_spill] sm:$0xff] %v4840_v20 }
  0x12   :  { %392 = vrot.lane.b32.xlu0 %v4705_v36, %s4558_s30 }
  0x15   :  { %398 = vrot.lane.b32.xlu1 %v4728_v41, %s4558_s30 }
  0x16   :  { %396 = vrot.lane.b32.xlu0 %v4733_v44, %s4558_s30 }
  0x19   :  { %402 = vrot.lane.b32.xlu1 %v4756_v49, %s4558_s30 }
  0x1a   :  { %400 = vrot.lane.b32.xlu0 %v4761_v52, %s4558_s30 }
  0x1d   :  { %406 = vrot.lane.b32.xlu1 %v4784_v57, %s4558_s30 }
  0x1e   :  { %404 = vrot.lane.b32.xlu0 %v4789_v60, %s4558_s30 }
  0x21   :  { %410 = vrot.lane.b32.xlu1 %v4812_v4, %s4558_s30 }
  0x22   :  { %408 = vrot.lane.b32.xlu0 %v4817_v9, %s4558_s30 }
  0x25   :  { %414 = vrot.lane.b32.xlu1 %v4840_v20, %s4558_s30 }
  0x26   :  { %8 = vsyncpa [#allocation3], 0  ;;  %412 = vrot.lane.b32.xlu0 %v4845_v27, %s4558_s30  ;;  %v4868_v42 = vsel %vm219_vm0, %v266_v21, %v268_v26  ;;  %v271_v43 = vrot.slane %v4851_v34, 1  ;;  %v273_v45 = vrot.slane %v4856_v35, 1  ;;  %v4873_v50 = vsel %vm219_vm0, %v265_v29, %v266_v21  ;;  %v4879_v53 = vld [vmem:[%s9240_s0 + $0x110] sm:$0xff]  ;;  %v4889_v59 = vld [vmem:[%s9240_s0 + $0x108] sm:$0xff] }
  0x27   :  { %9543 = vst [vmem:[#allocation21_spill] sm:$0xff] %v4868_v42  ;;  %9544 = vst [vmem:[#allocation22_spill] sm:$0xff] %v4873_v50  ;;  %v270_v51 = vrot.slane %v4861_v37, 1  ;;  %v4884_v58 = vld [vmem:[%s9240_s0 + $0x118] sm:$0x3]  ;;  %v276_v6 = vrot.slane %v4879_v53, 1 }
  0x28   :  { %v4896_v61 = vsel %vm219_vm0, %v271_v43, %v273_v45  ;;  %v278_v8 = vrot.slane %v4884_v58, 1  ;;  %v275_v21 = vrot.slane %v4889_v59, 1  ;;  %v4907_v26 = vld [vmem:[%s9240_s0 + $0x128] sm:$0xff]  ;;  %v4912_v29 = vld [vmem:[%s9240_s0 + $0x130] sm:$0x3]  ;;  %v4917_v45 = vld [vmem:[%s9240_s0 + $0x120] sm:$0xff] }
  0x29   :  { %418 = vrot.lane.b32.xlu1 %v4868_v42, %s4558_s30  ;;  %9545 = vst [vmem:[#allocation23_spill] sm:$0xff] %v4896_v61  ;;  %v4901_v13 = vsel %vm219_vm0, %v270_v51, %v271_v43  ;;  %v281_v51 = vrot.slane %v4907_v26, 1  ;;  %v280_v27 = vrot.slane %v4917_v45, 1  ;;  %v4935_v20 = vld [vmem:[%s9240_s0 + $0x140] sm:$0xff]  ;;  %v4963_v60 = vld [vmem:[%s9240_s0 + $0x158] sm:$0xff]  ;;  %v4991_v49 = vld [vmem:[%s9240_s0 + $0x170] sm:$0xff] }
  0x2a   :  { %416 = vrot.lane.b32.xlu0 %v4873_v50, %s4558_s30  ;;  %9546 = vst [vmem:[#allocation24_spill] sm:$0xff] %v4901_v13  ;;  %v4924_v43 = vsel %vm219_vm0, %v276_v6, %v278_v8  ;;  %v283_v50 = vrot.slane %v4912_v29, 1  ;;  %v4929_v42 = vsel %vm219_vm0, %v275_v21, %v276_v6  ;;  %v4945_v8 = vld [vmem:[%s9240_s0 + $0x138] sm:$0xff]  ;;  %v286_v21 = vrot.slane %v4935_v20, 1  ;;  %v5047_v25 = vld [vmem:[%s9240_s0 + $0x1d0] sm:$0xff]  ;;  %s4559_s22 = smov 8  }
  0x2b   :  { %9547 = vst [vmem:[#allocation25_spill] sm:$0xff] %v4924_v43  ;;  %9548 = vst [vmem:[#allocation26_spill] sm:$0xff] %v4929_v42  ;;  %v4957_v9 = vsel %vm219_vm0, %v280_v27, %v281_v51  ;;  %v285_v4 = vrot.slane %v4945_v8, 1  ;;  %v5019_v36 = vld [vmem:[%s9240_s0 + $0x1b8] sm:$0xff]  ;;  %vm572_vm1 = vcmask 1045504   ;;  %s4560_s24 = smov 12  }
  0x2c   :  { %v4952_v6 = vsel %vm219_vm0, %v281_v51, %v283_v50  ;;  %9550 = vst [vmem:[#allocation28_spill] sm:$0xff] %v4957_v9  ;;  %v4973_v50 = vld [vmem:[%s9240_s0 + $0x150] sm:$0xff]  ;;  %v291_v51 = vrot.slane %v4963_v60, 1  ;;  %9559 = vst [vmem:[#allocation37_spill] sm:$0xff] %v5047_v25  ;;  %s4561_s23 = smov 16   ;;  %s4562_s28 = smov 20  }
  0x2d   :  { %422 = vrot.lane.b32.xlu1 %v4896_v61, %s4558_s30  ;;  %9549 = vst [vmem:[#allocation27_spill] sm:$0xff] %v4952_v6  ;;  %v4985_v57 = vsel %vm219_vm0, %v285_v4, %v286_v21  ;;  %v290_v52 = vrot.slane %v4973_v50, 1  ;;  %s4563_s29 = smov 24   ;;  %vm2854_vm2 = vcmask 1043456   ;;  %s4564_s14 = smov 28   ;;  %vm2129_vm3 = vcmask 31744  }
  0x2e   :  { %420 = vrot.lane.b32.xlu0 %v4901_v13, %s4558_s30  ;;  %v4940_v13 = vld [vmem:[%s9240_s0 + $0x148] sm:$0x3]  ;;  %9552 = vst [vmem:[#allocation30_spill] sm:$0xff] %v4985_v57  ;;  %vm2194_vm4 = vcmask 64512   ;;  %vm2259_vm5 = vcmask 97280   ;;  %vm2324_vm6 = vcmask 130048  }
  0x2f   :  { %v288_v61 = vrot.slane %v4940_v13, 1  ;;  %v5013_v44 = vsel %vm219_vm0, %v290_v52, %v291_v51  ;;  %vm2389_vm7 = vcmask 162816   ;;  %vm2454_vm8 = vcmask 195584  }
  0x30   :  { %9554 = vst [vmem:[#allocation32_spill] sm:$0xff] %v5013_v44  ;;  %vm2519_vm9 = vcmask 228352   ;;  %vm2584_vm10 = vcmask 261120   ;;  %vm2661_vm11 = vcmask 293888  }
  0x31   :  { %426 = vrot.lane.b32.xlu1 %v4924_v43, %s4558_s30  ;;  %v4980_v27 = vsel %vm219_vm0, %v286_v21, %v288_v61  ;;  %v5001_v61 = vld [vmem:[%s9240_s0 + $0x168] sm:$0xff]  ;;  %v296_v21 = vrot.slane %v4991_v49, 1 }
  0x32   :  { %424 = vrot.lane.b32.xlu0 %v4929_v42, %s4558_s30  ;;  %v4968_v42 = vld [vmem:[%s9240_s0 + $0x160] sm:$0x3]  ;;  %9551 = vst [vmem:[#allocation29_spill] sm:$0xff] %v4980_v27  ;;  %v295_v41 = vrot.slane %v5001_v61, 1 }
  0x33   :  { %v293_v43 = vrot.slane %v4968_v42, 1 }
  0x34   :  { %v5041_v33 = vsel %vm219_vm0, %v295_v41, %v296_v21 }
  0x35   :  { %430 = vrot.lane.b32.xlu1 %v4952_v6, %s4558_s30  ;;  %v5008_v4 = vsel %vm219_vm0, %v291_v51, %v293_v43  ;;  %v5029_v43 = vld [vmem:[%s9240_s0 + $0x1b0] sm:$0xff]  ;;  %v301_v51 = vrot.slane %v5019_v36, 1  ;;  %9558 = vst [vmem:[#allocation36_spill] sm:$0xff] %v5041_v33 }
  0x36   :  { %428 = vrot.lane.b32.xlu0 %v4957_v9, %s4558_s30  ;;  %v4996_v9 = vld [vmem:[%s9240_s0 + $0x178] sm:$0x3]  ;;  %9553 = vst [vmem:[#allocation31_spill] sm:$0xff] %v5008_v4  ;;  %9556 = vst [vmem:[#allocation34_spill] sm:$0xff] %v5029_v43  ;;  %v300_v28 = vrot.slane %v5029_v43, 1  ;;  %v5071_v43 = vld [vmem:[%s9240_s0 + $0x1e8] sm:$0xff] }
  0x37   :  { %v298_v6 = vrot.slane %v4996_v9, 1  ;;  %9562 = vst [vmem:[#allocation40_spill] sm:$0xff] %v5071_v43 }
  0x38   :  { %v302_v12 = vsel %vm219_vm0, %v300_v28, %v301_v51 }
  0x39   :  { %434 = vrot.lane.b32.xlu1 %v4980_v27, %s4558_s30  ;;  %v5036_v52 = vsel %vm219_vm0, %v296_v21, %v298_v6  ;;  %v5057_v6 = vld [vmem:[%s9240_s0 + $0x1c8] sm:$0xff]  ;;  %v306_v21 = vrot.slane %v5047_v25, 1  ;;  %v5097_v25 = vld [vmem:[%s9240_s0 + $0x200] sm:$0xff] }
  0x3a   :  { %432 = vrot.lane.b32.xlu0 %v4985_v57, %s4558_s30  ;;  %v5024_v57 = vld [vmem:[%s9240_s0 + $0x1c0] sm:$0x3]  ;;  %9557 = vst [vmem:[#allocation35_spill] sm:$0xff] %v5036_v52  ;;  %9561 = vst [vmem:[#allocation39_spill] sm:$0xff] %v5057_v6  ;;  %v305_v17 = vrot.slane %v5057_v6, 1 }
  0x3b   :  { %9555 = vst [vmem:[#allocation33_spill] sm:$0xff] %v5024_v57  ;;  %v303_v27 = vrot.slane %v5024_v57, 1  ;;  %9567 = vst [vmem:[#allocation45_spill] sm:$0xff] %v5097_v25 }
  0x3c   :  { %v5091_v6 = vsel %vm219_vm0, %v305_v17, %v306_v21 }
  0x3d   :  { %438 = vrot.lane.b32.xlu1 %v5008_v4, %s4558_s30  ;;  %v304_v41 = vsel %vm219_vm0, %v301_v51, %v303_v27  ;;  %v5081_v27 = vld [vmem:[%s9240_s0 + $0x1e0] sm:$0xff]  ;;  %v311_v51 = vrot.slane %v5071_v43, 1  ;;  %9566 = vst [vmem:[#allocation44_spill] sm:$0xff] %v5091_v6  ;;  %v5125_v43 = vld [vmem:[%s9240_s0 + $0x218] sm:$0xff] }
  0x3e   :  { %436 = vrot.lane.b32.xlu0 %v5013_v44, %s4558_s30  ;;  %v5052_v44 = vld [vmem:[%s9240_s0 + $0x1d8] sm:$0x3]  ;;  %9564 = vst [vmem:[#allocation42_spill] sm:$0xff] %v5081_v27  ;;  %9572 = vst [vmem:[#allocation50_spill] sm:$0xff] %v5125_v43 }
  0x3f   :  { %9560 = vst [vmem:[#allocation38_spill] sm:$0xff] %v5052_v44  ;;  %v308_v4 = vrot.slane %v5052_v44, 1  ;;  %v310_v44 = vrot.slane %v5081_v27, 1 }
  0x41   :  { %442 = vrot.lane.b32.xlu1 %v5036_v52, %s4558_s30  ;;  %v5076_v52 = vld [vmem:[%s9240_s0 + $0x1f0] sm:$0x3]  ;;  %v5086_v28 = vsel %vm219_vm0, %v306_v21, %v308_v4  ;;  %v5107_v4 = vld [vmem:[%s9240_s0 + $0x1f8] sm:$0xff]  ;;  %v5119_v27 = vsel %vm219_vm0, %v310_v44, %v311_v51 }
  0x42   :  { %440 = vrot.lane.b32.xlu0 %v5041_v33, %s4558_s30  ;;  %9563 = vst [vmem:[#allocation41_spill] sm:$0xff] %v5076_v52  ;;  %9565 = vst [vmem:[#allocation43_spill] sm:$0xff] %v5086_v28  ;;  %v313_v33 = vrot.slane %v5076_v52, 1  ;;  %v315_v52 = vrot.slane %v5107_v4, 1 }
  0x43   :  { %9569 = vst [vmem:[#allocation47_spill] sm:$0xff] %v5107_v4  ;;  %9571 = vst [vmem:[#allocation49_spill] sm:$0xff] %v5119_v27 }
  0x44   :  { %v5114_v17 = vsel %vm219_vm0, %v311_v51, %v313_v33  ;;  %v5135_v33 = vld [vmem:[%s9240_s0 + $0x210] sm:$0xff]  ;;  %v321_v51 = vrot.slane %v5125_v43, 1  ;;  %v5181_v43 = vld [vmem:[%s9240_s0 + $0x248] sm:$0xff] }
  0x45   :  { %446 = vrot.lane.b32.xlu1 %v304_v41, %s4558_s30  ;;  %9570 = vst [vmem:[#allocation48_spill] sm:$0xff] %v5114_v17  ;;  %v316_v41 = vrot.slane %v5097_v25, 1  ;;  %9574 = vst [vmem:[#allocation52_spill] sm:$0xff] %v5135_v33  ;;  %v5153_v25 = vld [vmem:[%s9240_s0 + $0x230] sm:$0xff] }
  0x46   :  { %444 = vrot.lane.b32.xlu0 %v302_v12, %s4558_s30  ;;  %v5102_v12 = vld [vmem:[%s9240_s0 + $0x208] sm:$0x3]  ;;  %9577 = vst [vmem:[#allocation55_spill] sm:$0xff] %v5153_v25  ;;  %9582 = vst [vmem:[#allocation60_spill] sm:$0xff] %v5181_v43 }
  0x47   :  { %9568 = vst [vmem:[#allocation46_spill] sm:$0xff] %v5102_v12  ;;  %v318_v21 = vrot.slane %v5102_v12, 1  ;;  %v5147_v4 = vsel %vm219_vm0, %v315_v52, %v316_v41  ;;  %v320_v12 = vrot.slane %v5135_v33, 1 }
  0x48   :  { %9576 = vst [vmem:[#allocation54_spill] sm:$0xff] %v5147_v4 }
  0x49   :  { %450 = vrot.lane.b32.xlu1 %v5086_v28, %s4558_s30  ;;  %v5142_v44 = vsel %vm219_vm0, %v316_v41, %v318_v21  ;;  %v5163_v21 = vld [vmem:[%s9240_s0 + $0x228] sm:$0xff]  ;;  %v326_v41 = vrot.slane %v5153_v25, 1  ;;  %v5175_v33 = vsel %vm219_vm0, %v320_v12, %v321_v51  ;;  %v5209_v25 = vld [vmem:[%s9240_s0 + $0x260] sm:$0xff] }
  0x4a   :  { %448 = vrot.lane.b32.xlu0 %v5091_v6, %s4558_s30  ;;  %v5130_v6 = vld [vmem:[%s9240_s0 + $0x220] sm:$0x3]  ;;  %9575 = vst [vmem:[#allocation53_spill] sm:$0xff] %v5142_v44  ;;  %9579 = vst [vmem:[#allocation57_spill] sm:$0xff] %v5163_v21 }
  0x4b   :  { %9573 = vst [vmem:[#allocation51_spill] sm:$0xff] %v5130_v6  ;;  %v323_v28 = vrot.slane %v5130_v6, 1  ;;  %9581 = vst [vmem:[#allocation59_spill] sm:$0xff] %v5175_v33  ;;  %v325_v6 = vrot.slane %v5163_v21, 1 }
  0x4c   :  { %9587 = vst [vmem:[#allocation65_spill] sm:$0xff] %v5209_v25 }
  0x4d   :  { %454 = vrot.lane.b32.xlu1 %v5114_v17, %s4558_s30  ;;  %v5170_v52 = vsel %vm219_vm0, %v321_v51, %v323_v28  ;;  %v5191_v28 = vld [vmem:[%s9240_s0 + $0x240] sm:$0xff]  ;;  %v331_v51 = vrot.slane %v5181_v43, 1  ;;  %v5203_v21 = vsel %vm219_vm0, %v325_v6, %v326_v41  ;;  %v5237_v43 = vld [vmem:[%s9240_s0 + $0x278] sm:$0xff] }
  0x4e   :  { %452 = vrot.lane.b32.xlu0 %v5119_v27, %s4558_s30  ;;  %v5158_v27 = vld [vmem:[%s9240_s0 + $0x238] sm:$0x3]  ;;  %9580 = vst [vmem:[#allocation58_spill] sm:$0xff] %v5170_v52  ;;  %9584 = vst [vmem:[#allocation62_spill] sm:$0xff] %v5191_v28 }
  0x4f   :  { %9578 = vst [vmem:[#allocation56_spill] sm:$0xff] %v5158_v27  ;;  %v328_v17 = vrot.slane %v5158_v27, 1  ;;  %9586 = vst [vmem:[#allocation64_spill] sm:$0xff] %v5203_v21  ;;  %v330_v27 = vrot.slane %v5191_v28, 1 }
  0x50   :  { %9592 = vst [vmem:[#allocation70_spill] sm:$0xff] %v5237_v43 }
  0x51   :  { %458 = vrot.lane.b32.xlu1 %v5142_v44, %s4558_s30  ;;  %v5198_v12 = vsel %vm219_vm0, %v326_v41, %v328_v17  ;;  %v5219_v17 = vld [vmem:[%s9240_s0 + $0x258] sm:$0xff]  ;;  %v336_v41 = vrot.slane %v5209_v25, 1  ;;  %v5231_v28 = vsel %vm219_vm0, %v330_v27, %v331_v51  ;;  %v5265_v25 = vld [vmem:[%s9240_s0 + $0x290] sm:$0xff] }
  0x52   :  { %456 = vrot.lane.b32.xlu0 %v5147_v4, %s4558_s30  ;;  %v5186_v4 = vld [vmem:[%s9240_s0 + $0x250] sm:$0x3]  ;;  %9585 = vst [vmem:[#allocation63_spill] sm:$0xff] %v5198_v12  ;;  %9589 = vst [vmem:[#allocation67_spill] sm:$0xff] %v5219_v17 }
  0x53   :  { %9583 = vst [vmem:[#allocation61_spill] sm:$0xff] %v5186_v4  ;;  %v333_v44 = vrot.slane %v5186_v4, 1  ;;  %9591 = vst [vmem:[#allocation69_spill] sm:$0xff] %v5231_v28  ;;  %v335_v4 = vrot.slane %v5219_v17, 1 }
  0x54   :  { %9597 = vst [vmem:[#allocation75_spill] sm:$0xff] %v5265_v25 }
  0x55   :  { %462 = vrot.lane.b32.xlu1 %v5170_v52, %s4558_s30  ;;  %v5226_v6 = vsel %vm219_vm0, %v331_v51, %v333_v44  ;;  %v5247_v44 = vld [vmem:[%s9240_s0 + $0x270] sm:$0xff]  ;;  %v341_v51 = vrot.slane %v5237_v43, 1  ;;  %v5259_v17 = vsel %vm219_vm0, %v335_v4, %v336_v41  ;;  %v5293_v43 = vld [vmem:[%s9240_s0 + $0x2a8] sm:$0xff] }
  0x56   :  { %460 = vrot.lane.b32.xlu0 %v5175_v33, %s4558_s30  ;;  %v5214_v33 = vld [vmem:[%s9240_s0 + $0x268] sm:$0x3]  ;;  %9590 = vst [vmem:[#allocation68_spill] sm:$0xff] %v5226_v6  ;;  %9594 = vst [vmem:[#allocation72_spill] sm:$0xff] %v5247_v44 }
  0x57   :  { %9588 = vst [vmem:[#allocation66_spill] sm:$0xff] %v5214_v33  ;;  %v338_v52 = vrot.slane %v5214_v33, 1  ;;  %9596 = vst [vmem:[#allocation74_spill] sm:$0xff] %v5259_v17  ;;  %v340_v33 = vrot.slane %v5247_v44, 1 }
  0x58   :  { %9602 = vst [vmem:[#allocation80_spill] sm:$0xff] %v5293_v43 }
  0x59   :  { %466 = vrot.lane.b32.xlu1 %v5198_v12, %s4558_s30  ;;  %v5254_v27 = vsel %vm219_vm0, %v336_v41, %v338_v52  ;;  %v5275_v52 = vld [vmem:[%s9240_s0 + $0x288] sm:$0xff]  ;;  %v346_v41 = vrot.slane %v5265_v25, 1  ;;  %v5287_v44 = vsel %vm219_vm0, %v340_v33, %v341_v51  ;;  %v5321_v25 = vld [vmem:[%s9240_s0 + $0x2c0] sm:$0xff] }
  0x5a   :  { %464 = vrot.lane.b32.xlu0 %v5203_v21, %s4558_s30  ;;  %v5242_v21 = vld [vmem:[%s9240_s0 + $0x280] sm:$0x3]  ;;  %9595 = vst [vmem:[#allocation73_spill] sm:$0xff] %v5254_v27  ;;  %9599 = vst [vmem:[#allocation77_spill] sm:$0xff] %v5275_v52 }
  0x5b   :  { %9593 = vst [vmem:[#allocation71_spill] sm:$0xff] %v5242_v21  ;;  %v343_v12 = vrot.slane %v5242_v21, 1  ;;  %9601 = vst [vmem:[#allocation79_spill] sm:$0xff] %v5287_v44  ;;  %v345_v21 = vrot.slane %v5275_v52, 1 }
  0x5c   :  { %9607 = vst [vmem:[#allocation85_spill] sm:$0xff] %v5321_v25 }
  0x5d   :  { %470 = vrot.lane.b32.xlu1 %v5226_v6, %s4558_s30  ;;  %v5282_v4 = vsel %vm219_vm0, %v341_v51, %v343_v12  ;;  %v5303_v12 = vld [vmem:[%s9240_s0 + $0x2a0] sm:$0xff]  ;;  %v351_v51 = vrot.slane %v5293_v43, 1  ;;  %v5315_v52 = vsel %vm219_vm0, %v345_v21, %v346_v41  ;;  %v5349_v43 = vld [vmem:[%s9240_s0 + $0x2d8] sm:$0xff] }
  0x5e   :  { %468 = vrot.lane.b32.xlu0 %v5231_v28, %s4558_s30  ;;  %v5270_v28 = vld [vmem:[%s9240_s0 + $0x298] sm:$0x3]  ;;  %9600 = vst [vmem:[#allocation78_spill] sm:$0xff] %v5282_v4  ;;  %9604 = vst [vmem:[#allocation82_spill] sm:$0xff] %v5303_v12 }
  0x5f   :  { %9598 = vst [vmem:[#allocation76_spill] sm:$0xff] %v5270_v28  ;;  %v348_v6 = vrot.slane %v5270_v28, 1  ;;  %9606 = vst [vmem:[#allocation84_spill] sm:$0xff] %v5315_v52  ;;  %v350_v28 = vrot.slane %v5303_v12, 1 }
  0x60   :  { %9612 = vst [vmem:[#allocation90_spill] sm:$0xff] %v5349_v43 }
  0x61   :  { %474 = vrot.lane.b32.xlu1 %v5254_v27, %s4558_s30  ;;  %v5310_v33 = vsel %vm219_vm0, %v346_v41, %v348_v6  ;;  %v5331_v6 = vld [vmem:[%s9240_s0 + $0x2b8] sm:$0xff]  ;;  %v356_v41 = vrot.slane %v5321_v25, 1  ;;  %v5343_v12 = vsel %vm219_vm0, %v350_v28, %v351_v51  ;;  %v5377_v25 = vld [vmem:[%s9240_s0 + $0x2f0] sm:$0xff] }
  0x62   :  { %472 = vrot.lane.b32.xlu0 %v5259_v17, %s4558_s30  ;;  %v5298_v17 = vld [vmem:[%s9240_s0 + $0x2b0] sm:$0x3]  ;;  %9605 = vst [vmem:[#allocation83_spill] sm:$0xff] %v5310_v33  ;;  %9609 = vst [vmem:[#allocation87_spill] sm:$0xff] %v5331_v6 }
  0x63   :  { %9603 = vst [vmem:[#allocation81_spill] sm:$0xff] %v5298_v17  ;;  %v353_v27 = vrot.slane %v5298_v17, 1  ;;  %9611 = vst [vmem:[#allocation89_spill] sm:$0xff] %v5343_v12  ;;  %v355_v17 = vrot.slane %v5331_v6, 1 }
  0x64   :  { %9617 = vst [vmem:[#allocation95_spill] sm:$0xff] %v5377_v25 }
  0x65   :  { %478 = vrot.lane.b32.xlu1 %v5282_v4, %s4558_s30  ;;  %v5338_v21 = vsel %vm219_vm0, %v351_v51, %v353_v27  ;;  %v5359_v27 = vld [vmem:[%s9240_s0 + $0x2d0] sm:$0xff]  ;;  %v361_v51 = vrot.slane %v5349_v43, 1  ;;  %v5371_v6 = vsel %vm219_vm0, %v355_v17, %v356_v41  ;;  %v5405_v43 = vld [vmem:[%s9240_s0 + $0x308] sm:$0xff] }
  0x66   :  { %476 = vrot.lane.b32.xlu0 %v5287_v44, %s4558_s30  ;;  %v5326_v44 = vld [vmem:[%s9240_s0 + $0x2c8] sm:$0x3]  ;;  %9610 = vst [vmem:[#allocation88_spill] sm:$0xff] %v5338_v21  ;;  %9614 = vst [vmem:[#allocation92_spill] sm:$0xff] %v5359_v27 }
  0x67   :  { %9608 = vst [vmem:[#allocation86_spill] sm:$0xff] %v5326_v44  ;;  %v358_v4 = vrot.slane %v5326_v44, 1  ;;  %9616 = vst [vmem:[#allocation94_spill] sm:$0xff] %v5371_v6  ;;  %v360_v44 = vrot.slane %v5359_v27, 1 }
  0x68   :  { %9622 = vst [vmem:[#allocation100_spill] sm:$0xff] %v5405_v43 }
  0x69   :  { %482 = vrot.lane.b32.xlu1 %v5310_v33, %s4558_s30  ;;  %v5366_v28 = vsel %vm219_vm0, %v356_v41, %v358_v4  ;;  %v5387_v4 = vld [vmem:[%s9240_s0 + $0x2e8] sm:$0xff]  ;;  %v366_v41 = vrot.slane %v5377_v25, 1  ;;  %v5399_v27 = vsel %vm219_vm0, %v360_v44, %v361_v51 }
  0x6a   :  { %480 = vrot.lane.b32.xlu0 %v5315_v52, %s4558_s30  ;;  %v5354_v52 = vld [vmem:[%s9240_s0 + $0x2e0] sm:$0x3]  ;;  %9615 = vst [vmem:[#allocation93_spill] sm:$0xff] %v5366_v28  ;;  %9619 = vst [vmem:[#allocation97_spill] sm:$0xff] %v5387_v4 }
  0x6b   :  { %9613 = vst [vmem:[#allocation91_spill] sm:$0xff] %v5354_v52  ;;  %v363_v33 = vrot.slane %v5354_v52, 1  ;;  %9621 = vst [vmem:[#allocation99_spill] sm:$0xff] %v5399_v27  ;;  %v365_v52 = vrot.slane %v5387_v4, 1 }
  0x6d   :  { %486 = vrot.lane.b32.xlu1 %v5338_v21, %s4558_s30  ;;  %v5394_v17 = vsel %vm219_vm0, %v361_v51, %v363_v33  ;;  %v5415_v33 = vld [vmem:[%s9240_s0 + $0x300] sm:$0xff]  ;;  %v371_v51 = vrot.slane %v5405_v43, 1 }
  0x6e   :  { %484 = vrot.lane.b32.xlu0 %v5343_v12, %s4558_s30  ;;  %v5382_v12 = vld [vmem:[%s9240_s0 + $0x2f8] sm:$0x3]  ;;  %9620 = vst [vmem:[#allocation98_spill] sm:$0xff] %v5394_v17  ;;  %9624 = vst [vmem:[#allocation102_spill] sm:$0xff] %v5415_v33  ;;  %v370_v25 = vrot.slane %v5415_v33, 1 }
  0x6f   :  { %9618 = vst [vmem:[#allocation96_spill] sm:$0xff] %v5382_v12  ;;  %v368_v21 = vrot.slane %v5382_v12, 1  ;;  %v5429_v12 = vsel %vm219_vm0, %v365_v52, %v366_v41 }
  0x70   :  { %9627 = vst [vmem:[#allocation105_spill] sm:$0xff] %v5429_v12 }
  0x71   :  { %490 = vrot.lane.b32.xlu1 %v5366_v28, %s4558_s30  ;;  %v5422_v44 = vsel %vm219_vm0, %v366_v41, %v368_v21  ;;  %v5440_v21 = vld [vmem:[%s9240_s0 + $0x328] sm:$0x3] }
  0x72   :  { %488 = vrot.lane.b32.xlu0 %v5371_v6, %s4558_s30  ;;  %v5410_v6 = vld [vmem:[%s9240_s0 + $0x310] sm:$0x3]  ;;  %9625 = vst [vmem:[#allocation103_spill] sm:$0xff] %v5422_v44  ;;  %v378_v33 = vrot.slane %v5440_v21, 1 }
  0x73   :  { %9623 = vst [vmem:[#allocation101_spill] sm:$0xff] %v5410_v6  ;;  %v373_v28 = vrot.slane %v5410_v6, 1 }
  0x75   :  { %494 = vrot.lane.b32.xlu1 %v5394_v17, %s4558_s30  ;;  %v5435_v17 = vld [vmem:[%s9240_s0 + $0x320] sm:$0xff]  ;;  %v5454_v52 = vsel %vm219_vm0, %v371_v51, %v373_v28 }
  0x76   :  { %492 = vrot.lane.b32.xlu0 %v5399_v27, %s4558_s30  ;;  %9629 = vst [vmem:[#allocation107_spill] sm:$0xff] %v5454_v52  ;;  %v376_v41 = vrot.slane %v5435_v17, 1 }
  0x77   :  { %v5426_v4 = vpop.permute.xlu1 %384 }
  0x78   :  { %9626 = vst [vmem:[#allocation104_spill] sm:$0xff] %v5426_v4  ;;  %v5442_v27 = vpop.permute.xlu0 %380  ;;  %v5447_v4 = vld [vmem:[%s9240_s0 + $0x318] sm:$0xff]  ;;  %v5471_v28 = vsel %vm219_vm0, %v376_v41, %v378_v33  ;;  %v581_v33 = vrot.slane %v4614_v7, 2  ;;  %v586_v7 = vrot.slane %v4635_v14, 2  ;;  %v591_v14 = vrot.slane %v4661_v23, 2 }
  0x79   :  { %9628 = vst [vmem:[#allocation106_spill] sm:$0xff] %v5442_v27  ;;  %498 = vrot.lane.b32.xlu1 %v5422_v44, %s4558_s30  ;;  %v5461_v27 = vsel %vm219_vm0, %v370_v25, %v371_v51  ;;  %v375_v43 = vrot.slane %v5447_v4, 1  ;;  %9633 = vst [vmem:[#allocation111_spill] sm:$0xff] %v5471_v28  ;;  %v573_v51 = vrot.slane %v4601_v2, 2  ;;  %v578_v2 = vrot.slane %v4591_v0, 2 }
  0x7a   :  { %496 = vrot.lane.b32.xlu0 %v5429_v12, %s4558_s30  ;;  %9631 = vst [vmem:[#allocation109_spill] sm:$0xff] %v5461_v27  ;;  %v574_v12 = vrot.slane %v4608_v5, 2  ;;  %v583_v0 = vrot.slane %v4640_v15, 2  ;;  %v588_v15 = vrot.slane %v4666_v24, 2  ;;  %v596_v23 = vrot.slane %v4688_v31, 2 }
  0x7b   :  { %v5458_v6 = vpop.permute.xlu1 %386  ;;  %v5478_v25 = vsel %vm219_vm0, %v375_v43, %v376_v41  ;;  %v593_v24 = vrot.slane %v4693_v32, 2  ;;  %v601_v31 = vrot.slane %v4716_v39, 2  ;;  %v598_v32 = vrot.slane %v4721_v40, 2 }
  0x7c   :  { %9630 = vst [vmem:[#allocation108_spill] sm:$0xff] %v5458_v6  ;;  %v5464_v57 = vpop.permute.xlu0 %382  ;;  %v576_v6 = vrot.slane %v4621_v10, 2  ;;  %9635 = vst [vmem:[#allocation113_spill] sm:$0xff] %v5478_v25  ;;  %v579_v10 = vrot.slane %v4596_v1, 2  ;;  %v575_v43 = vsel %vm572_vm1, %v573_v51, %v574_v12  ;;  %v584_v1 = vrot.slane %v4626_v11, 2 }
  0x7d   :  { %9632 = vst [vmem:[#allocation110_spill] sm:$0xff] %v5464_v57  ;;  %502 = vrot.lane.b32.xlu1 %v5454_v52, %s4558_s30  ;;  %v589_v11 = vrot.slane %v4656_v22, 2  ;;  %v594_v22 = vrot.slane %v4683_v30, 2  ;;  %v599_v30 = vrot.slane %v4711_v38, 2  ;;  %v604_v38 = vrot.slane %v4739_v46, 2 }
  0x7e   :  { %500 = vrot.lane.b32.xlu0 %v5461_v27, %s4558_s30  ;;  %v577_v5 = vsel %vm572_vm1, %v574_v12, %v576_v6  ;;  %v5506_v12 = vsel %vm572_vm1, %v578_v2, %v579_v10  ;;  %v606_v39 = vrot.slane %v4744_v47, 2  ;;  %v603_v40 = vrot.slane %v4749_v48, 2 }
  0x7f   :  { %v5475_v44 = vpop.permute.xlu1 %390  ;;  %v5533_v2 = vsel %vm572_vm1, %v589_v11, %v591_v14  ;;  %v5550_v14 = vsel %vm572_vm1, %v594_v22, %v596_v23  ;;  %v5567_v23 = vsel %vm572_vm1, %v599_v30, %v601_v31  ;;  %v609_v46 = vrot.slane %v4767_v54, 2 }
  0x80   :  { %9634 = vst [vmem:[#allocation112_spill] sm:$0xff] %v5475_v44  ;;  %v5481_v57 = vpop.permute.xlu0 %388  ;;  %v5584_v31 = vsel %vm572_vm1, %v604_v38, %v606_v39  ;;  %v611_v47 = vrot.slane %v4772_v55, 2  ;;  %v608_v48 = vrot.slane %v4777_v56, 2  ;;  %v614_v54 = vrot.slane %v4795_v62, 2 }
  0x81   :  { %9636 = vst [vmem:[#allocation114_spill] sm:$0xff] %v5481_v57  ;;  %506 = vrot.lane.b32.xlu1 %v5471_v28, %s4558_s30  ;;  %v5499_v57 = vsel %vm572_vm1, %v579_v10, %v581_v33  ;;  %v5523_v10 = vsel %vm572_vm1, %v583_v0, %v584_v1  ;;  %v616_v55 = vrot.slane %v4800_v63, 2  ;;  %v613_v56 = vrot.slane %v4805_v3, 2 }
  0x82   :  { %504 = vrot.lane.b32.xlu0 %v5478_v25, %s4558_s30  ;;  %v5601_v39 = vsel %vm572_vm1, %v609_v46, %v611_v47  ;;  %v619_v62 = vrot.slane %v4823_v16, 2  ;;  %v621_v63 = vrot.slane %v4828_v18, 2  ;;  %v618_v3 = vrot.slane %v4833_v19, 2 }
  0x83   :  { %v5490_v44 = vpop.permute.xlu1 %394  ;;  %v5618_v47 = vsel %vm572_vm1, %v614_v54, %v616_v55  ;;  %v624_v16 = vrot.slane %v4851_v34, 2  ;;  %v626_v18 = vrot.slane %v4856_v35, 2  ;;  %v623_v19 = vrot.slane %v4861_v37, 2 }
  0x84   :  { %9637 = vst [vmem:[#allocation115_spill] sm:$0xff] %v5490_v44  ;;  %v5494_v41 = vpop.permute.xlu0 %392  ;;  %9653 = vst [vmem:[#allocation131_spill] sm:$0xff] %v5618_v47  ;;  %v5635_v55 = vsel %vm572_vm1, %v619_v62, %v621_v63  ;;  %v629_v34 = vrot.slane %v4879_v53, 2  ;;  %v631_v35 = vrot.slane %v4884_v58, 2  ;;  %v628_v37 = vrot.slane %v4889_v59, 2  ;;  %v9714_v44 = vld [vmem:[#allocation55_spill] sm:$0xff] }
  0x85   :  { %9638 = vst [vmem:[#allocation116_spill] sm:$0xff] %v5494_v41  ;;  %735 = vrot.lane.b32.xlu1 %v577_v5, %s4559_s22  ;;  %v5516_v5 = vsel %vm572_vm1, %v584_v1, %v586_v7  ;;  %v5540_v1 = vsel %vm572_vm1, %v588_v15, %v589_v11  ;;  %v5557_v11 = vsel %vm572_vm1, %v593_v24, %v594_v22  ;;  %9657 = vst [vmem:[#allocation135_spill] sm:$0xff] %v5635_v55  ;;  %v9715_v41 = vld [vmem:[#allocation56_spill] sm:$0xff] }
  0x86   :  { %733 = vrot.lane.b32.xlu0 %v575_v43, %s4559_s22  ;;  %v5574_v22 = vsel %vm572_vm1, %v598_v32, %v599_v30  ;;  %v5591_v30 = vsel %vm572_vm1, %v603_v40, %v604_v38  ;;  %v5608_v38 = vsel %vm572_vm1, %v608_v48, %v609_v46  ;;  %v5625_v46 = vsel %vm572_vm1, %v613_v56, %v614_v54 }
  0x87   :  { %v5503_v6 = vpop.permute.xlu1 %398  ;;  %9655 = vst [vmem:[#allocation133_spill] sm:$0xff] %v5625_v46  ;;  %v5642_v54 = vsel %vm572_vm1, %v618_v3, %v619_v62  ;;  %v5652_v63 = vsel %vm572_vm1, %v624_v16, %v626_v18  ;;  %v5659_v62 = vsel %vm572_vm1, %v623_v19, %v624_v16  ;;  %v5669_v18 = vsel %vm572_vm1, %v629_v34, %v631_v35 }
  0x88   :  { %9639 = vst [vmem:[#allocation117_spill] sm:$0xff] %v5503_v6  ;;  %v5509_v51 = vpop.permute.xlu0 %396  ;;  %9659 = vst [vmem:[#allocation137_spill] sm:$0xff] %v5642_v54  ;;  %v634_v53 = vrot.slane %v4907_v26, 2  ;;  %v636_v58 = vrot.slane %v4912_v29, 2  ;;  %v5676_v16 = vsel %vm572_vm1, %v628_v37, %v629_v34  ;;  %v633_v59 = vrot.slane %v4917_v45, 2  ;;  %v9707_v6 = vld [vmem:[#allocation50_spill] sm:$0xff] }
  0x89   :  { %9640 = vst [vmem:[#allocation118_spill] sm:$0xff] %v5509_v51  ;;  %739 = vrot.lane.b32.xlu1 %v5499_v57, %s4559_s22  ;;  %9661 = vst [vmem:[#allocation139_spill] sm:$0xff] %v5652_v63  ;;  %v639_v26 = vrot.slane %v4935_v20, 2  ;;  %v641_v29 = vrot.slane %v4940_v13, 2  ;;  %v638_v45 = vrot.slane %v4945_v8, 2  ;;  %v644_v20 = vrot.slane %v4963_v60, 2 }
  0x8a   :  { %737 = vrot.lane.b32.xlu0 %v5506_v12, %s4559_s22  ;;  %9663 = vst [vmem:[#allocation141_spill] sm:$0xff] %v5659_v62  ;;  %9665 = vst [vmem:[#allocation143_spill] sm:$0xff] %v5669_v18  ;;  %v5686_v35 = vsel %vm572_vm1, %v634_v53, %v636_v58  ;;  %v5693_v34 = vsel %vm572_vm1, %v633_v59, %v634_v53  ;;  %v646_v13 = vrot.slane %v4968_v42, 2  ;;  %v643_v8 = vrot.slane %v4973_v50, 2  ;;  %v9708_v51 = vld [vmem:[#allocation51_spill] sm:$0xff] }
  0x8b   :  { %v5520_v33 = vpop.permute.xlu1 %402  ;;  %9667 = vst [vmem:[#allocation145_spill] sm:$0xff] %v5676_v16  ;;  %9669 = vst [vmem:[#allocation147_spill] sm:$0xff] %v5686_v35  ;;  %v5703_v58 = vsel %vm572_vm1, %v639_v26, %v641_v29  ;;  %v5710_v53 = vsel %vm572_vm1, %v638_v45, %v639_v26  ;;  %v649_v60 = vrot.slane %v4991_v49, 2  ;;  %v651_v42 = vrot.slane %v4996_v9, 2  ;;  %v9682_v9 = vld [vmem:[#allocation33_spill] sm:$0xff] }
  0x8c   :  { %9641 = vst [vmem:[#allocation119_spill] sm:$0xff] %v5520_v33  ;;  %v5526_v43 = vpop.permute.xlu0 %400  ;;  %9671 = vst [vmem:[#allocation149_spill] sm:$0xff] %v5693_v34  ;;  %v5720_v29 = vsel %vm572_vm1, %v644_v20, %v646_v13  ;;  %v5727_v26 = vsel %vm572_vm1, %v643_v8, %v644_v20  ;;  %v648_v50 = vrot.slane %v5001_v61, 2  ;;  %v654_v49 = vrot.slane %v5019_v36, 2  ;;  %v9685_v61 = vld [vmem:[#allocation34_spill] sm:$0xff]  ;;  %v9687_v36 = vld [vmem:[#allocation37_spill] sm:$0xff] }
  0x8d   :  { %9642 = vst [vmem:[#allocation120_spill] sm:$0xff] %v5526_v43  ;;  %743 = vrot.lane.b32.xlu1 %v5516_v5, %s4559_s22  ;;  %9673 = vst [vmem:[#allocation151_spill] sm:$0xff] %v5703_v58  ;;  %v5737_v13 = vsel %vm572_vm1, %v649_v60, %v651_v42  ;;  %v653_v8 = vrot.slane %v9685_v61, 2 }
  0x8e   :  { %741 = vrot.lane.b32.xlu0 %v5523_v10, %s4559_s22  ;;  %9675 = vst [vmem:[#allocation153_spill] sm:$0xff] %v5710_v53  ;;  %9677 = vst [vmem:[#allocation155_spill] sm:$0xff] %v5720_v29  ;;  %v5744_v20 = vsel %vm572_vm1, %v648_v50, %v649_v60  ;;  %v9690_v50 = vld [vmem:[#allocation39_spill] sm:$0xff] }
  0x8f   :  { %v5537_v7 = vpop.permute.xlu1 %406  ;;  %9679 = vst [vmem:[#allocation157_spill] sm:$0xff] %v5727_v26  ;;  %9681 = vst [vmem:[#allocation159_spill] sm:$0xff] %v5737_v13  ;;  %v655_v60 = vsel %vm572_vm1, %v653_v8, %v654_v49  ;;  %v658_v61 = vrot.slane %v9690_v50, 2 }
  0x90   :  { %9643 = vst [vmem:[#allocation121_spill] sm:$0xff] %v5537_v7  ;;  %v5543_v0 = vpop.permute.xlu0 %404  ;;  %9684 = vst [vmem:[#allocation160_spill] sm:$0xff] %v5744_v20 }
  0x91   :  { %9644 = vst [vmem:[#allocation122_spill] sm:$0xff] %v5543_v0  ;;  %747 = vrot.lane.b32.xlu1 %v5533_v2, %s4559_s22 }
  0x92   :  { %745 = vrot.lane.b32.xlu0 %v5540_v1, %s4559_s22 }
  0x93   :  { %v5554_v7 = vpop.permute.xlu1 %410 }
  0x94   :  { %9645 = vst [vmem:[#allocation123_spill] sm:$0xff] %v5554_v7  ;;  %v5560_v15 = vpop.permute.xlu0 %408 }
  0x95   :  { %9646 = vst [vmem:[#allocation124_spill] sm:$0xff] %v5560_v15  ;;  %751 = vrot.lane.b32.xlu1 %v5550_v14, %s4559_s22 }
  0x96   :  { %749 = vrot.lane.b32.xlu0 %v5557_v11, %s4559_s22 }
  0x97   :  { %v5571_v7 = vpop.permute.xlu1 %414 }
  0x98   :  { %9647 = vst [vmem:[#allocation125_spill] sm:$0xff] %v5571_v7  ;;  %v5577_v24 = vpop.permute.xlu0 %412 }
  0x99   :  { %9648 = vst [vmem:[#allocation126_spill] sm:$0xff] %v5577_v24  ;;  %755 = vrot.lane.b32.xlu1 %v5567_v23, %s4559_s22 }
  0x9a   :  { %753 = vrot.lane.b32.xlu0 %v5574_v22, %s4559_s22 }
  0x9b   :  { %v5588_v7 = vpop.permute.xlu1 %418 }
  0x9c   :  { %9649 = vst [vmem:[#allocation127_spill] sm:$0xff] %v5588_v7  ;;  %v5594_v32 = vpop.permute.xlu0 %416 }
  0x9d   :  { %9650 = vst [vmem:[#allocation128_spill] sm:$0xff] %v5594_v32  ;;  %759 = vrot.lane.b32.xlu1 %v5584_v31, %s4559_s22 }
  0x9e   :  { %757 = vrot.lane.b32.xlu0 %v5591_v30, %s4559_s22 }
  0x9f   :  { %v5605_v7 = vpop.permute.xlu1 %422 }
  0xa0   :  { %9651 = vst [vmem:[#allocation129_spill] sm:$0xff] %v5605_v7  ;;  %v5611_v40 = vpop.permute.xlu0 %420 }
  0xa1   :  { %9652 = vst [vmem:[#allocation130_spill] sm:$0xff] %v5611_v40  ;;  %763 = vrot.lane.b32.xlu1 %v5601_v39, %s4559_s22 }
  0xa2   :  { %761 = vrot.lane.b32.xlu0 %v5608_v38, %s4559_s22 }
  0xa3   :  { %v5622_v7 = vpop.permute.xlu1 %426 }
  0xa4   :  { %9654 = vst [vmem:[#allocation132_spill] sm:$0xff] %v5622_v7  ;;  %v5628_v48 = vpop.permute.xlu0 %424 }
  0xa5   :  { %9656 = vst [vmem:[#allocation134_spill] sm:$0xff] %v5628_v48  ;;  %767 = vrot.lane.b32.xlu1 %v5618_v47, %s4559_s22  ;;  %v659_v48 = vrot.slane %v9687_v36, 2  ;;  %v9694_v36 = vld [vmem:[#allocation41_spill] sm:$0xff] }
  0xa6   :  { %765 = vrot.lane.b32.xlu0 %v5625_v46, %s4559_s22  ;;  %v666_v33 = vrot.slane %v9694_v36, 2 }
  0xa7   :  { %v5639_v7 = vpop.permute.xlu1 %430  ;;  %v5772_v43 = vsel %vm572_vm1, %v658_v61, %v659_v48  ;;  %v9704_v61 = vld [vmem:[#allocation47_spill] sm:$0xff] }
  0xa8   :  { %9658 = vst [vmem:[#allocation136_spill] sm:$0xff] %v5639_v7  ;;  %v5645_v56 = vpop.permute.xlu0 %428  ;;  %9696 = vst [vmem:[#allocation41_spill] sm:$0xff] %v5772_v43 }
  0xa9   :  { %9660 = vst [vmem:[#allocation138_spill] sm:$0xff] %v5645_v56  ;;  %771 = vrot.lane.b32.xlu1 %v5635_v55, %s4559_s22 }
  0xaa   :  { %769 = vrot.lane.b32.xlu0 %v5642_v54, %s4559_s22 }
  0xab   :  { %v5656_v7 = vpop.permute.xlu1 %434 }
  0xac   :  { %9662 = vst [vmem:[#allocation140_spill] sm:$0xff] %v5656_v7  ;;  %v5662_v3 = vpop.permute.xlu0 %432 }
  0xad   :  { %9664 = vst [vmem:[#allocation142_spill] sm:$0xff] %v5662_v3  ;;  %775 = vrot.lane.b32.xlu1 %v5652_v63, %s4559_s22 }
  0xae   :  { %773 = vrot.lane.b32.xlu0 %v5659_v62, %s4559_s22 }
  0xaf   :  { %v5673_v7 = vpop.permute.xlu1 %438 }
  0xb0   :  { %9666 = vst [vmem:[#allocation144_spill] sm:$0xff] %v5673_v7  ;;  %v5679_v19 = vpop.permute.xlu0 %436 }
  0xb1   :  { %9668 = vst [vmem:[#allocation146_spill] sm:$0xff] %v5679_v19  ;;  %779 = vrot.lane.b32.xlu1 %v5669_v18, %s4559_s22  ;;  %v656_v19 = vrot.slane %v9682_v9, 2  ;;  %v9688_v9 = vld [vmem:[#allocation38_spill] sm:$0xff] }
  0xb2   :  { %777 = vrot.lane.b32.xlu0 %v5676_v16, %s4559_s22  ;;  %v661_v40 = vrot.slane %v9688_v9, 2 }
  0xb3   :  { %v5690_v7 = vpop.permute.xlu1 %442  ;;  %v657_v42 = vsel %vm572_vm1, %v654_v49, %v656_v19  ;;  %v9693_v19 = vld [vmem:[#allocation40_spill] sm:$0xff]  ;;  %v9697_v49 = vld [vmem:[#allocation42_spill] sm:$0xff] }
  0xb4   :  { %9670 = vst [vmem:[#allocation148_spill] sm:$0xff] %v5690_v7  ;;  %v5696_v37 = vpop.permute.xlu0 %440  ;;  %v5765_v15 = vsel %vm572_vm1, %v659_v48, %v661_v40  ;;  %v664_v0 = vrot.slane %v9693_v19, 2  ;;  %v663_v8 = vrot.slane %v9697_v49, 2  ;;  %v9701_v19 = vld [vmem:[#allocation46_spill] sm:$0xff]  ;;  %v668_v49 = vrot.slane %v9704_v61, 2 }
  0xb5   :  { %9672 = vst [vmem:[#allocation150_spill] sm:$0xff] %v5696_v37  ;;  %783 = vrot.lane.b32.xlu1 %v5686_v35, %s4559_s22  ;;  %9692 = vst [vmem:[#allocation39_spill] sm:$0xff] %v5765_v15  ;;  %v671_v36 = vrot.slane %v9701_v19, 2  ;;  %v674_v19 = vrot.slane %v9707_v6, 2 }
  0xb6   :  { %781 = vrot.lane.b32.xlu0 %v5693_v34, %s4559_s22  ;;  %v5782_v40 = vsel %vm572_vm1, %v664_v0, %v666_v33  ;;  %v5789_v48 = vsel %vm572_vm1, %v663_v8, %v664_v0  ;;  %v9711_v8 = vld [vmem:[#allocation52_spill] sm:$0xff] }
  0xb7   :  { %v5707_v7 = vpop.permute.xlu1 %446  ;;  %9699 = vst [vmem:[#allocation161_spill] sm:$0xff] %v5782_v40  ;;  %9703 = vst [vmem:[#allocation46_spill] sm:$0xff] %v5789_v48 }
  0xb8   :  { %9674 = vst [vmem:[#allocation152_spill] sm:$0xff] %v5707_v7  ;;  %v5713_v59 = vpop.permute.xlu0 %444 }
  0xb9   :  { %9676 = vst [vmem:[#allocation154_spill] sm:$0xff] %v5713_v59  ;;  %787 = vrot.lane.b32.xlu1 %v5703_v58, %s4559_s22 }
  0xba   :  { %785 = vrot.lane.b32.xlu0 %v5710_v53, %s4559_s22 }
  0xbb   :  { %v5724_v37 = vpop.permute.xlu1 %450 }
  0xbc   :  { %9678 = vst [vmem:[#allocation156_spill] sm:$0xff] %v5724_v37  ;;  %v5730_v45 = vpop.permute.xlu0 %448  ;;  %v9721_v37 = vld [vmem:[#allocation60_spill] sm:$0xff] }
  0xbd   :  { %9680 = vst [vmem:[#allocation158_spill] sm:$0xff] %v5730_v45  ;;  %791 = vrot.lane.b32.xlu1 %v5720_v29, %s4559_s22  ;;  %v9722_v45 = vld [vmem:[#allocation61_spill] sm:$0xff] }
  0xbe   :  { %789 = vrot.lane.b32.xlu0 %v5727_v26, %s4559_s22 }
  0xbf   :  { %v5741_v3 = vpop.permute.xlu1 %454 }
  0xc0   :  { %9683 = vst [vmem:[#allocation33_spill] sm:$0xff] %v5741_v3  ;;  %v5747_v56 = vpop.permute.xlu0 %452 }
  0xc1   :  { %9686 = vst [vmem:[#allocation34_spill] sm:$0xff] %v5747_v56  ;;  %795 = vrot.lane.b32.xlu1 %v5737_v13, %s4559_s22 }
  0xc2   :  { %793 = vrot.lane.b32.xlu0 %v5744_v20, %s4559_s22 }
  0xc3   :  { %v5756_v32 = vpop.permute.xlu1 %458 }
  0xc4   :  { %9689 = vst [vmem:[#allocation37_spill] sm:$0xff] %v5756_v32  ;;  %v5760_v24 = vpop.permute.xlu0 %456 }
  0xc5   :  { %9691 = vst [vmem:[#allocation38_spill] sm:$0xff] %v5760_v24  ;;  %799 = vrot.lane.b32.xlu1 %v657_v42, %s4559_s22  ;;  %v9700_v42 = vld [vmem:[#allocation45_spill] sm:$0xff] }
  0xc6   :  { %797 = vrot.lane.b32.xlu0 %v655_v60, %s4559_s22  ;;  %v669_v60 = vrot.slane %v9700_v42, 2 }
  0xc7   :  { %v5769_v9 = vpop.permute.xlu1 %462 }
  0xc8   :  { %9695 = vst [vmem:[#allocation40_spill] sm:$0xff] %v5769_v9  ;;  %v5775_v50 = vpop.permute.xlu0 %460  ;;  %v5799_v33 = vsel %vm572_vm1, %v669_v60, %v671_v36  ;;  %v5806_v0 = vsel %vm572_vm1, %v668_v49, %v669_v60  ;;  %v9718_v49 = vld [vmem:[#allocation57_spill] sm:$0xff] }
  0xc9   :  { %9698 = vst [vmem:[#allocation42_spill] sm:$0xff] %v5775_v50  ;;  %803 = vrot.lane.b32.xlu1 %v5765_v15, %s4559_s22  ;;  %9706 = vst [vmem:[#allocation162_spill] sm:$0xff] %v5799_v33 }
  0xca   :  { %801 = vrot.lane.b32.xlu0 %v5772_v43, %s4559_s22  ;;  %9710 = vst [vmem:[#allocation51_spill] sm:$0xff] %v5806_v0 }
  0xcb   :  { %v5786_v9 = vpop.permute.xlu1 %466 }
  0xcc   :  { %9702 = vst [vmem:[#allocation45_spill] sm:$0xff] %v5786_v9  ;;  %v5792_v50 = vpop.permute.xlu0 %464  ;;  %v676_v9 = vrot.slane %v9708_v51, 2  ;;  %v679_v51 = vrot.slane %v9714_v44, 2 }
  0xcd   :  { %9705 = vst [vmem:[#allocation47_spill] sm:$0xff] %v5792_v50  ;;  %807 = vrot.lane.b32.xlu1 %v5782_v40, %s4559_s22  ;;  %v673_v50 = vrot.slane %v9711_v8, 2 }
  0xce   :  { %805 = vrot.lane.b32.xlu0 %v5789_v48, %s4559_s22  ;;  %v5816_v36 = vsel %vm572_vm1, %v674_v19, %v676_v9 }
  0xcf   :  { %v5803_v32 = vpop.permute.xlu1 %470  ;;  %9713 = vst [vmem:[#allocation163_spill] sm:$0xff] %v5816_v36  ;;  %v5823_v60 = vsel %vm572_vm1, %v673_v50, %v674_v19  ;;  %v9725_v19 = vld [vmem:[#allocation62_spill] sm:$0xff] }
  0xd0   :  { %9709 = vst [vmem:[#allocation50_spill] sm:$0xff] %v5803_v32  ;;  %v5809_v24 = vpop.permute.xlu0 %468  ;;  %v681_v32 = vrot.slane %v9715_v41, 2  ;;  %9717 = vst [vmem:[#allocation56_spill] sm:$0xff] %v5823_v60  ;;  %v684_v41 = vrot.slane %v9721_v37, 2 }
  0xd1   :  { %9712 = vst [vmem:[#allocation52_spill] sm:$0xff] %v5809_v24  ;;  %811 = vrot.lane.b32.xlu1 %v5799_v33, %s4559_s22  ;;  %v678_v24 = vrot.slane %v9718_v49, 2 }
  0xd2   :  { %809 = vrot.lane.b32.xlu0 %v5806_v0, %s4559_s22  ;;  %v5833_v9 = vsel %vm572_vm1, %v679_v51, %v681_v32 }
  0xd3   :  { %v5820_v3 = vpop.permute.xlu1 %474  ;;  %9720 = vst [vmem:[#allocation164_spill] sm:$0xff] %v5833_v9  ;;  %v5840_v50 = vsel %vm572_vm1, %v678_v24, %v679_v51  ;;  %v9732_v51 = vld [vmem:[#allocation67_spill] sm:$0xff] }
  0xd4   :  { %9716 = vst [vmem:[#allocation55_spill] sm:$0xff] %v5820_v3  ;;  %v5826_v56 = vpop.permute.xlu0 %472  ;;  %v686_v3 = vrot.slane %v9722_v45, 2  ;;  %9724 = vst [vmem:[#allocation61_spill] sm:$0xff] %v5840_v50 }
  0xd5   :  { %9719 = vst [vmem:[#allocation57_spill] sm:$0xff] %v5826_v56  ;;  %815 = vrot.lane.b32.xlu1 %v5816_v36, %s4559_s22  ;;  %v683_v56 = vrot.slane %v9725_v19, 2  ;;  %v9729_v36 = vld [vmem:[#allocation66_spill] sm:$0xff] }
  0xd6   :  { %813 = vrot.lane.b32.xlu0 %v5823_v60, %s4559_s22  ;;  %v5850_v32 = vsel %vm572_vm1, %v684_v41, %v686_v3  ;;  %v9728_v60 = vld [vmem:[#allocation65_spill] sm:$0xff] }
  0xd7   :  { %v5837_v7 = vpop.permute.xlu1 %478  ;;  %9727 = vst [vmem:[#allocation165_spill] sm:$0xff] %v5850_v32  ;;  %v689_v45 = vrot.slane %v9728_v60, 2  ;;  %v5857_v24 = vsel %vm572_vm1, %v683_v56, %v684_v41  ;;  %v9739_v41 = vld [vmem:[#allocation72_spill] sm:$0xff] }
  0xd8   :  { %9723 = vst [vmem:[#allocation60_spill] sm:$0xff] %v5837_v7  ;;  %v5843_v59 = vpop.permute.xlu0 %476  ;;  %v691_v7 = vrot.slane %v9729_v36, 2  ;;  %9731 = vst [vmem:[#allocation66_spill] sm:$0xff] %v5857_v24 }
  0xd9   :  { %9726 = vst [vmem:[#allocation62_spill] sm:$0xff] %v5843_v59  ;;  %819 = vrot.lane.b32.xlu1 %v5833_v9, %s4559_s22  ;;  %v688_v59 = vrot.slane %v9732_v51, 2  ;;  %v9736_v9 = vld [vmem:[#allocation71_spill] sm:$0xff] }
  0xda   :  { %817 = vrot.lane.b32.xlu0 %v5840_v50, %s4559_s22  ;;  %v5867_v3 = vsel %vm572_vm1, %v689_v45, %v691_v7  ;;  %v9735_v50 = vld [vmem:[#allocation70_spill] sm:$0xff] }
  0xdb   :  { %v5854_v0 = vpop.permute.xlu1 %482  ;;  %9734 = vst [vmem:[#allocation166_spill] sm:$0xff] %v5867_v3  ;;  %v694_v36 = vrot.slane %v9735_v50, 2  ;;  %v5874_v56 = vsel %vm572_vm1, %v688_v59, %v689_v45  ;;  %v9746_v45 = vld [vmem:[#allocation77_spill] sm:$0xff] }
  0xdc   :  { %9730 = vst [vmem:[#allocation65_spill] sm:$0xff] %v5854_v0  ;;  %v5860_v33 = vpop.permute.xlu0 %480  ;;  %v696_v0 = vrot.slane %v9736_v9, 2  ;;  %9738 = vst [vmem:[#allocation71_spill] sm:$0xff] %v5874_v56 }
  0xdd   :  { %9733 = vst [vmem:[#allocation67_spill] sm:$0xff] %v5860_v33  ;;  %823 = vrot.lane.b32.xlu1 %v5850_v32, %s4559_s22  ;;  %v693_v33 = vrot.slane %v9739_v41, 2  ;;  %v9743_v32 = vld [vmem:[#allocation76_spill] sm:$0xff] }
  0xde   :  { %821 = vrot.lane.b32.xlu0 %v5857_v24, %s4559_s22  ;;  %v5884_v7 = vsel %vm572_vm1, %v694_v36, %v696_v0  ;;  %v9742_v24 = vld [vmem:[#allocation75_spill] sm:$0xff] }
  0xdf   :  { %v5871_v48 = vpop.permute.xlu1 %486  ;;  %9741 = vst [vmem:[#allocation167_spill] sm:$0xff] %v5884_v7  ;;  %v699_v9 = vrot.slane %v9742_v24, 2  ;;  %v5891_v59 = vsel %vm572_vm1, %v693_v33, %v694_v36  ;;  %v9753_v36 = vld [vmem:[#allocation82_spill] sm:$0xff] }
  0xe0   :  { %9737 = vst [vmem:[#allocation70_spill] sm:$0xff] %v5871_v48  ;;  %v5877_v40 = vpop.permute.xlu0 %484  ;;  %v701_v48 = vrot.slane %v9743_v32, 2  ;;  %9745 = vst [vmem:[#allocation76_spill] sm:$0xff] %v5891_v59 }
  0xe1   :  { %9740 = vst [vmem:[#allocation72_spill] sm:$0xff] %v5877_v40  ;;  %827 = vrot.lane.b32.xlu1 %v5867_v3, %s4559_s22  ;;  %v698_v40 = vrot.slane %v9746_v45, 2  ;;  %v9750_v3 = vld [vmem:[#allocation81_spill] sm:$0xff] }
  0xe2   :  { %825 = vrot.lane.b32.xlu0 %v5874_v56, %s4559_s22  ;;  %v5901_v0 = vsel %vm572_vm1, %v699_v9, %v701_v48  ;;  %v9749_v56 = vld [vmem:[#allocation80_spill] sm:$0xff] }
  0xe3   :  { %v5888_v43 = vpop.permute.xlu1 %490  ;;  %9748 = vst [vmem:[#allocation168_spill] sm:$0xff] %v5901_v0  ;;  %v704_v32 = vrot.slane %v9749_v56, 2  ;;  %v5908_v33 = vsel %vm572_vm1, %v698_v40, %v699_v9  ;;  %v9760_v9 = vld [vmem:[#allocation87_spill] sm:$0xff] }
  0xe4   :  { %9744 = vst [vmem:[#allocation75_spill] sm:$0xff] %v5888_v43  ;;  %v5894_v15 = vpop.permute.xlu0 %488  ;;  %v706_v43 = vrot.slane %v9750_v3, 2  ;;  %9752 = vst [vmem:[#allocation81_spill] sm:$0xff] %v5908_v33 }
  0xe5   :  { %9747 = vst [vmem:[#allocation77_spill] sm:$0xff] %v5894_v15  ;;  %831 = vrot.lane.b32.xlu1 %v5884_v7, %s4559_s22  ;;  %v703_v15 = vrot.slane %v9753_v36, 2  ;;  %v9757_v7 = vld [vmem:[#allocation86_spill] sm:$0xff] }
  0xe6   :  { %829 = vrot.lane.b32.xlu0 %v5891_v59, %s4559_s22  ;;  %v5918_v48 = vsel %vm572_vm1, %v704_v32, %v706_v43  ;;  %v9756_v59 = vld [vmem:[#allocation85_spill] sm:$0xff] }
  0xe7   :  { %v5905_v20 = vpop.permute.xlu1 %494  ;;  %9755 = vst [vmem:[#allocation169_spill] sm:$0xff] %v5918_v48  ;;  %v709_v3 = vrot.slane %v9756_v59, 2  ;;  %v5925_v40 = vsel %vm572_vm1, %v703_v15, %v704_v32  ;;  %v9767_v32 = vld [vmem:[#allocation92_spill] sm:$0xff] }
  0xe8   :  { %9751 = vst [vmem:[#allocation80_spill] sm:$0xff] %v5905_v20  ;;  %v5911_v13 = vpop.permute.xlu0 %492  ;;  %v711_v20 = vrot.slane %v9757_v7, 2  ;;  %9759 = vst [vmem:[#allocation86_spill] sm:$0xff] %v5925_v40 }
  0xe9   :  { %9754 = vst [vmem:[#allocation82_spill] sm:$0xff] %v5911_v13  ;;  %835 = vrot.lane.b32.xlu1 %v5901_v0, %s4559_s22  ;;  %v708_v13 = vrot.slane %v9760_v9, 2  ;;  %v9764_v0 = vld [vmem:[#allocation91_spill] sm:$0xff] }
  0xea   :  { %833 = vrot.lane.b32.xlu0 %v5908_v33, %s4559_s22  ;;  %v5935_v43 = vsel %vm572_vm1, %v709_v3, %v711_v20  ;;  %v9763_v33 = vld [vmem:[#allocation90_spill] sm:$0xff] }
  0xeb   :  { %v5922_v26 = vpop.permute.xlu1 %498  ;;  %9762 = vst [vmem:[#allocation170_spill] sm:$0xff] %v5935_v43  ;;  %v714_v7 = vrot.slane %v9763_v33, 2  ;;  %v5942_v15 = vsel %vm572_vm1, %v708_v13, %v709_v3  ;;  %v9774_v3 = vld [vmem:[#allocation97_spill] sm:$0xff] }
  0xec   :  { %9758 = vst [vmem:[#allocation85_spill] sm:$0xff] %v5922_v26  ;;  %v5928_v29 = vpop.permute.xlu0 %496  ;;  %v716_v26 = vrot.slane %v9764_v0, 2  ;;  %9766 = vst [vmem:[#allocation91_spill] sm:$0xff] %v5942_v15 }
  0xed   :  { %9761 = vst [vmem:[#allocation87_spill] sm:$0xff] %v5928_v29  ;;  %839 = vrot.lane.b32.xlu1 %v5918_v48, %s4559_s22  ;;  %v713_v29 = vrot.slane %v9767_v32, 2  ;;  %v9771_v48 = vld [vmem:[#allocation96_spill] sm:$0xff] }
  0xee   :  { %837 = vrot.lane.b32.xlu0 %v5925_v40, %s4559_s22  ;;  %v5952_v20 = vsel %vm572_vm1, %v714_v7, %v716_v26  ;;  %v9770_v40 = vld [vmem:[#allocation95_spill] sm:$0xff] }
  0xef   :  { %v5939_v53 = vpop.permute.xlu1 %502  ;;  %9769 = vst [vmem:[#allocation171_spill] sm:$0xff] %v5952_v20  ;;  %v719_v0 = vrot.slane %v9770_v40, 2  ;;  %v5959_v13 = vsel %vm572_vm1, %v713_v29, %v714_v7  ;;  %v9781_v7 = vld [vmem:[#allocation102_spill] sm:$0xff] }
  0xf0   :  { %9765 = vst [vmem:[#allocation90_spill] sm:$0xff] %v5939_v53  ;;  %v5945_v58 = vpop.permute.xlu0 %500  ;;  %v721_v53 = vrot.slane %v9771_v48, 2  ;;  %9773 = vst [vmem:[#allocation96_spill] sm:$0xff] %v5959_v13 }
  0xf1   :  { %9768 = vst [vmem:[#allocation92_spill] sm:$0xff] %v5945_v58  ;;  %843 = vrot.lane.b32.xlu1 %v5935_v43, %s4559_s22  ;;  %v718_v58 = vrot.slane %v9774_v3, 2  ;;  %v9778_v43 = vld [vmem:[#allocation101_spill] sm:$0xff] }
  0xf2   :  { %841 = vrot.lane.b32.xlu0 %v5942_v15, %s4559_s22  ;;  %v5969_v26 = vsel %vm572_vm1, %v719_v0, %v721_v53  ;;  %v9777_v15 = vld [vmem:[#allocation100_spill] sm:$0xff] }
  0xf3   :  { %v5956_v34 = vpop.permute.xlu1 %506  ;;  %9776 = vst [vmem:[#allocation172_spill] sm:$0xff] %v5969_v26  ;;  %v724_v48 = vrot.slane %v9777_v15, 2  ;;  %v5976_v29 = vsel %vm572_vm1, %v718_v58, %v719_v0  ;;  %v728_v0 = vrot.slane %v5447_v4, 2 }
  0xf4   :  { %9772 = vst [vmem:[#allocation95_spill] sm:$0xff] %v5956_v34  ;;  %v5962_v35 = vpop.permute.xlu0 %504  ;;  %v726_v34 = vrot.slane %v9778_v43, 2  ;;  %9780 = vst [vmem:[#allocation101_spill] sm:$0xff] %v5976_v29  ;;  %v729_v43 = vrot.slane %v5435_v17, 2 }
  0xf5   :  { %9775 = vst [vmem:[#allocation97_spill] sm:$0xff] %v5962_v35  ;;  %847 = vrot.lane.b32.xlu1 %v5952_v20, %s4559_s22  ;;  %v723_v35 = vrot.slane %v9781_v7, 2 }
  0xf6   :  { %845 = vrot.lane.b32.xlu0 %v5959_v13, %s4559_s22  ;;  %v5986_v53 = vsel %vm572_vm1, %v724_v48, %v726_v34 }
  0xf7   :  { %v5973_v16 = vpop.permute.xlu1 %735  ;;  %9783 = vst [vmem:[#allocation173_spill] sm:$0xff] %v5986_v53  ;;  %v5993_v58 = vsel %vm572_vm1, %v723_v35, %v724_v48 }
  0xf8   :  { %9779 = vst [vmem:[#allocation100_spill] sm:$0xff] %v5973_v16  ;;  %v5979_v18 = vpop.permute.xlu0 %733  ;;  %v731_v16 = vrot.slane %v5440_v21, 2  ;;  %9785 = vst [vmem:[#allocation175_spill] sm:$0xff] %v5993_v58  ;;  %v6008_v21 = vsel %vm572_vm1, %v728_v0, %v729_v43 }
  0xf9   :  { %9782 = vst [vmem:[#allocation102_spill] sm:$0xff] %v5979_v18  ;;  %851 = vrot.lane.b32.xlu1 %v5969_v26, %s4559_s22  ;;  %9789 = vst [vmem:[#allocation179_spill] sm:$0xff] %v6008_v21 }
  0xfa   :  { %849 = vrot.lane.b32.xlu0 %v5976_v29, %s4559_s22  ;;  %v6003_v34 = vsel %vm572_vm1, %v729_v43, %v731_v16  ;;  %v4416_v16 = vld [vmem:[%s9240_s0 + $0x20] sm:$0xff]  ;;  %v4417_v43 = vld [vmem:[%s9240_s0 + $0x18] sm:$0xff] }
  0xfb   :  { %v5990_v13 = vpop.permute.xlu1 %739  ;;  %9787 = vst [vmem:[#allocation177_spill] sm:$0xff] %v6003_v34 }
  0xfc   :  { %9784 = vst [vmem:[#allocation174_spill] sm:$0xff] %v5990_v13  ;;  %v5996_v18 = vpop.permute.xlu0 %737 }
  0xfd   :  { %9786 = vst [vmem:[#allocation176_spill] sm:$0xff] %v5996_v18  ;;  %855 = vrot.lane.b32.xlu1 %v5986_v53, %s4559_s22  ;;  %v6078_v18 = vld [vmem:[%s9240_s0 + $0x60] sm:$0xff] }
  0xfe   :  { %853 = vrot.lane.b32.xlu0 %v5993_v58, %s4559_s22  ;;  %9804 = vst [vmem:[#allocation194_spill] sm:$0xff] %v6078_v18 }
  0xff   :  { %v6005_v29 = vpop.permute.xlu1 %743 }
 0x100   :  { %9788 = vst [vmem:[#allocation178_spill] sm:$0xff] %v6005_v29  ;;  %v6010_v35 = vpop.permute.xlu0 %741 }
 0x101   :  { %9790 = vst [vmem:[#allocation180_spill] sm:$0xff] %v6010_v35  ;;  %859 = vrot.lane.b32.xlu1 %v6003_v34, %s4559_s22 }
 0x102   :  { %857 = vrot.lane.b32.xlu0 %v6008_v21, %s4559_s22 }
 0x103   :  { %v6016_v48 = vpop.permute.xlu1 %747 }
 0x104   :  { %9791 = vst [vmem:[#allocation181_spill] sm:$0xff] %v6016_v48  ;;  %v6018_v13 = vpop.permute.xlu0 %745  ;;  %v6035_v48 = vld [vmem:[%s9240_s0 + $0x38] sm:$0xff] }
 0x105   :  { %9792 = vst [vmem:[#allocation182_spill] sm:$0xff] %v6018_v13  ;;  %931 = vrot.lane.b32.xlu1 %v4416_v16, %s4560_s24  ;;  %9795 = vst [vmem:[#allocation185_spill] sm:$0xff] %v6035_v48  ;;  %v6042_v16 = vld [vmem:[%s9240_s0 + $0x30] sm:$0xff]  ;;  %v6060_v13 = vld [vmem:[%s9240_s0 + $0x48] sm:$0xff] }
 0x106   :  { %929 = vrot.lane.b32.xlu0 %v4417_v43, %s4560_s24  ;;  %9796 = vst [vmem:[#allocation186_spill] sm:$0xff] %v6042_v16  ;;  %9800 = vst [vmem:[#allocation190_spill] sm:$0xff] %v6060_v13 }
 0x107   :  { %v6028_v0 = vpop.permute.xlu1 %751 }
 0x108   :  { %9793 = vst [vmem:[#allocation183_spill] sm:$0xff] %v6028_v0  ;;  %v6030_v29 = vpop.permute.xlu0 %749 }
 0x109   :  { %9794 = vst [vmem:[#allocation184_spill] sm:$0xff] %v6030_v29  ;;  %935 = vrot.lane.b32.xlu1 %v6035_v48, %s4560_s24  ;;  %v6053_v29 = vld [vmem:[%s9240_s0 + $0x50] sm:$0xff] }
 0x10a   :  { %933 = vrot.lane.b32.xlu0 %v6042_v16, %s4560_s24  ;;  %9799 = vst [vmem:[#allocation189_spill] sm:$0xff] %v6053_v29 }
 0x10b   :  { %v6046_v43 = vpop.permute.xlu1 %755 }
 0x10c   :  { %9797 = vst [vmem:[#allocation187_spill] sm:$0xff] %v6046_v43  ;;  %v6048_v0 = vpop.permute.xlu0 %753 }
 0x10d   :  { %9798 = vst [vmem:[#allocation188_spill] sm:$0xff] %v6048_v0  ;;  %939 = vrot.lane.b32.xlu1 %v6053_v29, %s4560_s24  ;;  %v6071_v0 = vld [vmem:[%s9240_s0 + $0x68] sm:$0xff] }
 0x10e   :  { %937 = vrot.lane.b32.xlu0 %v6060_v13, %s4560_s24  ;;  %9803 = vst [vmem:[#allocation193_spill] sm:$0xff] %v6071_v0 }
 0x10f   :  { %v6064_v35 = vpop.permute.xlu1 %759 }
 0x110   :  { %9801 = vst [vmem:[#allocation191_spill] sm:$0xff] %v6064_v35  ;;  %v6066_v43 = vpop.permute.xlu0 %757 }
 0x111   :  { %9802 = vst [vmem:[#allocation192_spill] sm:$0xff] %v6066_v43  ;;  %943 = vrot.lane.b32.xlu1 %v6071_v0, %s4560_s24  ;;  %v6089_v43 = vld [vmem:[%s9240_s0 + $0x80] sm:$0xff]  ;;  %v6096_v0 = vld [vmem:[%s9240_s0 + $0x78] sm:$0xff] }
 0x112   :  { %941 = vrot.lane.b32.xlu0 %v6078_v18, %s4560_s24  ;;  %9807 = vst [vmem:[#allocation197_spill] sm:$0xff] %v6089_v43  ;;  %9808 = vst [vmem:[#allocation198_spill] sm:$0xff] %v6096_v0 }
 0x113   :  { %v6082_v13 = vpop.permute.xlu1 %763 }
 0x114   :  { %9805 = vst [vmem:[#allocation195_spill] sm:$0xff] %v6082_v13  ;;  %v6084_v35 = vpop.permute.xlu0 %761 }
 0x115   :  { %9806 = vst [vmem:[#allocation196_spill] sm:$0xff] %v6084_v35  ;;  %947 = vrot.lane.b32.xlu1 %v6089_v43, %s4560_s24  ;;  %v6107_v35 = vld [vmem:[%s9240_s0 + $0x98] sm:$0xff]  ;;  %v6114_v43 = vld [vmem:[%s9240_s0 + $0x90] sm:$0xff] }
 0x116   :  { %945 = vrot.lane.b32.xlu0 %v6096_v0, %s4560_s24  ;;  %9811 = vst [vmem:[#allocation201_spill] sm:$0xff] %v6107_v35  ;;  %9812 = vst [vmem:[#allocation202_spill] sm:$0xff] %v6114_v43 }
 0x117   :  { %v6100_v18 = vpop.permute.xlu1 %767 }
 0x118   :  { %9809 = vst [vmem:[#allocation199_spill] sm:$0xff] %v6100_v18  ;;  %v6102_v13 = vpop.permute.xlu0 %765 }
 0x119   :  { %9810 = vst [vmem:[#allocation200_spill] sm:$0xff] %v6102_v13  ;;  %951 = vrot.lane.b32.xlu1 %v6107_v35, %s4560_s24  ;;  %v4428_v13 = vld [vmem:[%s9240_s0 + $0xb0] sm:$0xff]  ;;  %v6129_v35 = vld [vmem:[%s9240_s0 + $0xa8] sm:$0xff] }
 0x11a   :  { %949 = vrot.lane.b32.xlu0 %v6114_v43, %s4560_s24  ;;  %9815 = vst [vmem:[#allocation205_spill] sm:$0xff] %v6129_v35 }
 0x11b   :  { %v6118_v0 = vpop.permute.xlu1 %771 }
 0x11c   :  { %9813 = vst [vmem:[#allocation203_spill] sm:$0xff] %v6118_v0  ;;  %v6120_v18 = vpop.permute.xlu0 %769  ;;  %v4430_v0 = vld [vmem:[%s9240_s0 + $0xc8] sm:$0xff] }
 0x11d   :  { %9814 = vst [vmem:[#allocation204_spill] sm:$0xff] %v6120_v18  ;;  %955 = vrot.lane.b32.xlu1 %v4428_v13, %s4560_s24  ;;  %v4431_v13 = vld [vmem:[%s9240_s0 + $0xc0] sm:$0xff] }
 0x11e   :  { %953 = vrot.lane.b32.xlu0 %v6129_v35, %s4560_s24 }
 0x11f   :  { %v6133_v29 = vpop.permute.xlu1 %775 }
 0x120   :  { %9816 = vst [vmem:[#allocation206_spill] sm:$0xff] %v6133_v29  ;;  %v6135_v43 = vpop.permute.xlu0 %773 }
 0x121   :  { %9817 = vst [vmem:[#allocation207_spill] sm:$0xff] %v6135_v43  ;;  %959 = vrot.lane.b32.xlu1 %v4430_v0, %s4560_s24  ;;  %v4432_v43 = vld [vmem:[%s9240_s0 + $0xe0] sm:$0xff]  ;;  %v4433_v0 = vld [vmem:[%s9240_s0 + $0xd8] sm:$0xff] }
 0x122   :  { %957 = vrot.lane.b32.xlu0 %v4431_v13, %s4560_s24  ;;  %v4434_v13 = vld [vmem:[%s9240_s0 + $0xf8] sm:$0xff] }
 0x123   :  { %v6145_v18 = vpop.permute.xlu1 %779 }
 0x124   :  { %9818 = vst [vmem:[#allocation208_spill] sm:$0xff] %v6145_v18  ;;  %v6147_v16 = vpop.permute.xlu0 %777 }
 0x125   :  { %9819 = vst [vmem:[#allocation209_spill] sm:$0xff] %v6147_v16  ;;  %963 = vrot.lane.b32.xlu1 %v4432_v43, %s4560_s24  ;;  %v4435_v43 = vld [vmem:[%s9240_s0 + $0xf0] sm:$0xff] }
 0x126   :  { %961 = vrot.lane.b32.xlu0 %v4433_v0, %s4560_s24  ;;  %v4436_v0 = vld [vmem:[%s9240_s0 + $0x110] sm:$0xff] }
 0x127   :  { %v6157_v29 = vpop.permute.xlu1 %783 }
 0x128   :  { %9820 = vst [vmem:[#allocation210_spill] sm:$0xff] %v6157_v29  ;;  %v6159_v35 = vpop.permute.xlu0 %781 }
 0x129   :  { %9821 = vst [vmem:[#allocation211_spill] sm:$0xff] %v6159_v35  ;;  %967 = vrot.lane.b32.xlu1 %v4434_v13, %s4560_s24  ;;  %v4437_v13 = vld [vmem:[%s9240_s0 + $0x108] sm:$0xff] }
 0x12a   :  { %965 = vrot.lane.b32.xlu0 %v4435_v43, %s4560_s24  ;;  %v4438_v43 = vld [vmem:[%s9240_s0 + $0x128] sm:$0xff] }
 0x12b   :  { %v6169_v16 = vpop.permute.xlu1 %787 }
 0x12c   :  { %9822 = vst [vmem:[#allocation212_spill] sm:$0xff] %v6169_v16  ;;  %v6171_v18 = vpop.permute.xlu0 %785 }
 0x12d   :  { %9823 = vst [vmem:[#allocation213_spill] sm:$0xff] %v6171_v18  ;;  %971 = vrot.lane.b32.xlu1 %v4436_v0, %s4560_s24  ;;  %v4439_v0 = vld [vmem:[%s9240_s0 + $0x120] sm:$0xff] }
 0x12e   :  { %969 = vrot.lane.b32.xlu0 %v4437_v13, %s4560_s24  ;;  %v4440_v13 = vld [vmem:[%s9240_s0 + $0x140] sm:$0xff] }
 0x12f   :  { %v6181_v29 = vpop.permute.xlu1 %791 }
 0x130   :  { %9824 = vst [vmem:[#allocation214_spill] sm:$0xff] %v6181_v29  ;;  %v6183_v35 = vpop.permute.xlu0 %789 }
 0x131   :  { %9825 = vst [vmem:[#allocation215_spill] sm:$0xff] %v6183_v35  ;;  %975 = vrot.lane.b32.xlu1 %v4438_v43, %s4560_s24  ;;  %v4441_v43 = vld [vmem:[%s9240_s0 + $0x138] sm:$0xff] }
 0x132   :  { %973 = vrot.lane.b32.xlu0 %v4439_v0, %s4560_s24  ;;  %v4442_v0 = vld [vmem:[%s9240_s0 + $0x158] sm:$0xff] }
 0x133   :  { %v6193_v16 = vpop.permute.xlu1 %795 }
 0x134   :  { %9826 = vst [vmem:[#allocation216_spill] sm:$0xff] %v6193_v16  ;;  %v6195_v18 = vpop.permute.xlu0 %793 }
 0x135   :  { %9827 = vst [vmem:[#allocation217_spill] sm:$0xff] %v6195_v18  ;;  %979 = vrot.lane.b32.xlu1 %v4440_v13, %s4560_s24  ;;  %v4443_v13 = vld [vmem:[%s9240_s0 + $0x150] sm:$0xff] }
 0x136   :  { %977 = vrot.lane.b32.xlu0 %v4441_v43, %s4560_s24  ;;  %v4444_v43 = vld [vmem:[%s9240_s0 + $0x170] sm:$0xff] }
 0x137   :  { %v6205_v29 = vpop.permute.xlu1 %799 }
 0x138   :  { %9828 = vst [vmem:[#allocation218_spill] sm:$0xff] %v6205_v29  ;;  %v6207_v35 = vpop.permute.xlu0 %797 }
 0x139   :  { %9829 = vst [vmem:[#allocation219_spill] sm:$0xff] %v6207_v35  ;;  %983 = vrot.lane.b32.xlu1 %v4442_v0, %s4560_s24  ;;  %v4445_v0 = vld [vmem:[%s9240_s0 + $0x168] sm:$0xff] }
 0x13a   :  { %981 = vrot.lane.b32.xlu0 %v4443_v13, %s4560_s24  ;;  %v6232_v13 = vld [vmem:[%s9240_s0 + $0x188] sm:$0xff] }
 0x13b   :  { %v6217_v16 = vpop.permute.xlu1 %803 }
 0x13c   :  { %9830 = vst [vmem:[#allocation220_spill] sm:$0xff] %v6217_v16  ;;  %v6219_v18 = vpop.permute.xlu0 %801 }
 0x13d   :  { %9831 = vst [vmem:[#allocation221_spill] sm:$0xff] %v6219_v18  ;;  %987 = vrot.lane.b32.xlu1 %v4444_v43, %s4560_s24  ;;  %v6239_v18 = vld [vmem:[%s9240_s0 + $0x180] sm:$0xff] }
 0x13e   :  { %985 = vrot.lane.b32.xlu0 %v4445_v0, %s4560_s24 }
 0x13f   :  { %v6234_v16 = vpop.permute.xlu1 %807 }
 0x140   :  { %9832 = vst [vmem:[#allocation222_spill] sm:$0xff] %v6234_v16  ;;  %v6241_v29 = vpop.permute.xlu0 %805  ;;  %v4446_v16 = vld [vmem:[%s9240_s0 + $0x1d0] sm:$0xff] }
 0x141   :  { %9833 = vst [vmem:[#allocation223_spill] sm:$0xff] %v6241_v29  ;;  %991 = vrot.lane.b32.xlu1 %v6232_v13, %s4560_s24  ;;  %v4447_v29 = vld [vmem:[%s9240_s0 + $0x1c8] sm:$0xff] }
 0x142   :  { %989 = vrot.lane.b32.xlu0 %v6239_v18, %s4560_s24 }
 0x143   :  { %v6247_v43 = vpop.permute.xlu1 %811 }
 0x144   :  { %9834 = vst [vmem:[#allocation224_spill] sm:$0xff] %v6247_v43  ;;  %v6249_v0 = vpop.permute.xlu0 %809  ;;  %v6266_v43 = vld [vmem:[%s9240_s0 + $0x1e8] sm:$0xff] }
 0x145   :  { %9835 = vst [vmem:[#allocation225_spill] sm:$0xff] %v6249_v0  ;;  %995 = vrot.lane.b32.xlu1 %v4446_v16, %s4560_s24  ;;  %9838 = vst [vmem:[#allocation228_spill] sm:$0xff] %v6266_v43  ;;  %v6273_v16 = vld [vmem:[%s9240_s0 + $0x1e0] sm:$0xff] }
 0x146   :  { %993 = vrot.lane.b32.xlu0 %v4447_v29, %s4560_s24 }
 0x147   :  { %v6259_v35 = vpop.permute.xlu1 %815 }
 0x148   :  { %9836 = vst [vmem:[#allocation226_spill] sm:$0xff] %v6259_v35  ;;  %v6261_v48 = vpop.permute.xlu0 %813 }
 0x149   :  { %9837 = vst [vmem:[#allocation227_spill] sm:$0xff] %v6261_v48  ;;  %999 = vrot.lane.b32.xlu1 %v6266_v43, %s4560_s24 }
 0x14a   :  { %997 = vrot.lane.b32.xlu0 %v6273_v16, %s4560_s24 }
 0x14b   :  { %v6277_v29 = vpop.permute.xlu1 %819 }
 0x14c   :  { %9839 = vst [vmem:[#allocation229_spill] sm:$0xff] %v6277_v29  ;;  %v6279_v35 = vpop.permute.xlu0 %817 }
 0x14d   :  { %9840 = vst [vmem:[#allocation230_spill] sm:$0xff] %v6279_v35  ;;  %1003 = vrot.lane.b32.xlu1 %v9700_v42, %s4560_s24 }
 0x14e   :  { %1001 = vrot.lane.b32.xlu0 %v9704_v61, %s4560_s24 }
 0x14f   :  { %v6285_v48 = vpop.permute.xlu1 %823 }
 0x150   :  { %9841 = vst [vmem:[#allocation231_spill] sm:$0xff] %v6285_v48  ;;  %v6287_v0 = vpop.permute.xlu0 %821  ;;  %v9890_v48 = vld [vmem:[#allocation16_spill] sm:$0xff] }
 0x151   :  { %9842 = vst [vmem:[#allocation232_spill] sm:$0xff] %v6287_v0  ;;  %1007 = vrot.lane.b32.xlu1 %v9707_v6, %s4560_s24  ;;  %v9894_v0 = vld [vmem:[#allocation18_spill] sm:$0xff] }
 0x152   :  { %1005 = vrot.lane.b32.xlu0 %v9711_v8, %s4560_s24 }
 0x153   :  { %v6293_v43 = vpop.permute.xlu1 %827 }
 0x154   :  { %9843 = vst [vmem:[#allocation233_spill] sm:$0xff] %v6293_v43  ;;  %v6295_v29 = vpop.permute.xlu0 %825 }
 0x155   :  { %9844 = vst [vmem:[#allocation234_spill] sm:$0xff] %v6295_v29  ;;  %1011 = vrot.lane.b32.xlu1 %v9714_v44, %s4560_s24 }
 0x156   :  { %1009 = vrot.lane.b32.xlu0 %v9718_v49, %s4560_s24 }
 0x157   :  { %v6301_v42 = vpop.permute.xlu1 %831 }
 0x158   :  { %9845 = vst [vmem:[#allocation235_spill] sm:$0xff] %v6301_v42  ;;  %v6303_v61 = vpop.permute.xlu0 %829  ;;  %v9885_v42 = vld [vmem:[#allocation13_spill] sm:$0xff] }
 0x159   :  { %9846 = vst [vmem:[#allocation236_spill] sm:$0xff] %v6303_v61  ;;  %1015 = vrot.lane.b32.xlu1 %v9721_v37, %s4560_s24  ;;  %v9886_v61 = vld [vmem:[#allocation14_spill] sm:$0xff] }
 0x15a   :  { %1013 = vrot.lane.b32.xlu0 %v9725_v19, %s4560_s24 }
 0x15b   :  { %v6309_v6 = vpop.permute.xlu1 %835 }
 0x15c   :  { %9847 = vst [vmem:[#allocation237_spill] sm:$0xff] %v6309_v6  ;;  %v6311_v8 = vpop.permute.xlu0 %833 }
 0x15d   :  { %9848 = vst [vmem:[#allocation238_spill] sm:$0xff] %v6311_v8  ;;  %1019 = vrot.lane.b32.xlu1 %v9728_v60, %s4560_s24 }
 0x15e   :  { %1017 = vrot.lane.b32.xlu0 %v9732_v51, %s4560_s24 }
 0x15f   :  { %v6317_v44 = vpop.permute.xlu1 %839 }
 0x160   :  { %9849 = vst [vmem:[#allocation239_spill] sm:$0xff] %v6317_v44  ;;  %v6319_v49 = vpop.permute.xlu0 %837  ;;  %v9882_v44 = vld [vmem:[#allocation12_spill] sm:$0xff] }
 0x161   :  { %9850 = vst [vmem:[#allocation240_spill] sm:$0xff] %v6319_v49  ;;  %1023 = vrot.lane.b32.xlu1 %v9735_v50, %s4560_s24  ;;  %v9881_v49 = vld [vmem:[#allocation11_spill] sm:$0xff] }
 0x162   :  { %1021 = vrot.lane.b32.xlu0 %v9739_v41, %s4560_s24 }
 0x163   :  { %v6325_v37 = vpop.permute.xlu1 %843 }
 0x164   :  { %9851 = vst [vmem:[#allocation241_spill] sm:$0xff] %v6325_v37  ;;  %v6327_v19 = vpop.permute.xlu0 %841 }
 0x165   :  { %9852 = vst [vmem:[#allocation242_spill] sm:$0xff] %v6327_v19  ;;  %1027 = vrot.lane.b32.xlu1 %v9742_v24, %s4560_s24  ;;  %v9877_v19 = vld [vmem:[#allocation9_spill] sm:$0xff] }
 0x166   :  { %1025 = vrot.lane.b32.xlu0 %v9746_v45, %s4560_s24 }
 0x167   :  { %v6333_v60 = vpop.permute.xlu1 %847 }
 0x168   :  { %9853 = vst [vmem:[#allocation243_spill] sm:$0xff] %v6333_v60  ;;  %v6335_v51 = vpop.permute.xlu0 %845 }
 0x169   :  { %9854 = vst [vmem:[#allocation244_spill] sm:$0xff] %v6335_v51  ;;  %1031 = vrot.lane.b32.xlu1 %v9749_v56, %s4560_s24 }
 0x16a   :  { %1029 = vrot.lane.b32.xlu0 %v9753_v36, %s4560_s24 }
 0x16b   :  { %v6341_v50 = vpop.permute.xlu1 %851 }
 0x16c   :  { %9855 = vst [vmem:[#allocation245_spill] sm:$0xff] %v6341_v50  ;;  %v6343_v41 = vpop.permute.xlu0 %849  ;;  %v9873_v50 = vld [vmem:[#allocation7_spill] sm:$0xff] }
 0x16d   :  { %9856 = vst [vmem:[#allocation246_spill] sm:$0xff] %v6343_v41  ;;  %1035 = vrot.lane.b32.xlu1 %v9756_v59, %s4560_s24  ;;  %v9874_v41 = vld [vmem:[#allocation8_spill] sm:$0xff] }
 0x16e   :  { %1033 = vrot.lane.b32.xlu0 %v9760_v9, %s4560_s24 }
 0x16f   :  { %v6349_v24 = vpop.permute.xlu1 %855 }
 0x170   :  { %9857 = vst [vmem:[#allocation247_spill] sm:$0xff] %v6349_v24  ;;  %v6351_v45 = vpop.permute.xlu0 %853 }
 0x171   :  { %9858 = vst [vmem:[#allocation248_spill] sm:$0xff] %v6351_v45  ;;  %1039 = vrot.lane.b32.xlu1 %v9763_v33, %s4560_s24 }
 0x172   :  { %1037 = vrot.lane.b32.xlu0 %v9767_v32, %s4560_s24 }
 0x173   :  { %v6357_v56 = vpop.permute.xlu1 %859 }
 0x174   :  { %9859 = vst [vmem:[#allocation249_spill] sm:$0xff] %v6357_v56  ;;  %v6359_v36 = vpop.permute.xlu0 %857  ;;  %v9869_v56 = vld [vmem:[#allocation6_spill] sm:$0xff] }
 0x175   :  { %9860 = vst [vmem:[#allocation250_spill] sm:$0xff] %v6359_v36  ;;  %1043 = vrot.lane.b32.xlu1 %v9770_v40, %s4560_s24  ;;  %v6384_v40 = vld [vmem:[%s9240_s0 + $0x338] sm:$0xff]  ;;  %v9870_v36 = vld [vmem:[#allocation5_spill] sm:$0xff] }
 0x176   :  { %1041 = vrot.lane.b32.xlu0 %v9774_v3, %s4560_s24 }
 0x177   :  { %v6365_v59 = vpop.permute.xlu1 %931 }
 0x178   :  { %9861 = vst [vmem:[#allocation251_spill] sm:$0xff] %v6365_v59  ;;  %v6367_v9 = vpop.permute.xlu0 %929 }
 0x179   :  { %9862 = vst [vmem:[#allocation252_spill] sm:$0xff] %v6367_v9  ;;  %1047 = vrot.lane.b32.xlu1 %v9777_v15, %s4560_s24  ;;  %v6391_v15 = vld [vmem:[%s9240_s0 + $0x330] sm:$0xff]  ;;  %v9958_v9 = vld [vmem:[#allocation74_spill] sm:$0xff] }
 0x17a   :  { %1045 = vrot.lane.b32.xlu0 %v9781_v7, %s4560_s24 }
 0x17b   :  { %v6373_v33 = vpop.permute.xlu1 %935 }
 0x17c   :  { %9863 = vst [vmem:[#allocation253_spill] sm:$0xff] %v6373_v33  ;;  %v6375_v32 = vpop.permute.xlu0 %933  ;;  %v9926_v33 = vld [vmem:[#allocation36_spill] sm:$0xff] }
 0x17d   :  { %9864 = vst [vmem:[#allocation254_spill] sm:$0xff] %v6375_v32  ;;  %1051 = vrot.lane.b32.xlu1 %v5435_v17, %s4560_s24 }
 0x17e   :  { %1049 = vrot.lane.b32.xlu0 %v5447_v4, %s4560_s24 }
 0x17f   :  { %v6386_v3 = vpop.permute.xlu1 %939 }
 0x180   :  { %9865 = vst [vmem:[#allocation255_spill] sm:$0xff] %v6386_v3  ;;  %v6393_v7 = vpop.permute.xlu0 %937  ;;  %v9910_v3 = vld [vmem:[#allocation26_spill] sm:$0xff] }
 0x181   :  { %9866 = vst [vmem:[#allocation256_spill] sm:$0xff] %v6393_v7  ;;  %1055 = vrot.lane.b32.xlu1 %v6384_v40, %s4560_s24 }
 0x182   :  { %1053 = vrot.lane.b32.xlu0 %v6391_v15, %s4560_s24 }
 0x183   :  { %v6399_v4 = vpop.permute.xlu1 %943 }
 0x184   :  { %9867 = vst [vmem:[#allocation257_spill] sm:$0xff] %v6399_v4  ;;  %v6401_v17 = vpop.permute.xlu0 %941  ;;  %v9906_v4 = vld [vmem:[#allocation24_spill] sm:$0xff] }
 0x185   :  { %9868 = vst [vmem:[#allocation258_spill] sm:$0xff] %v6401_v17  ;;  %1135 = vrot.lane.b32.xlu1 %v9869_v56, %s4561_s23  ;;  %v9878_v56 = vld [vmem:[#allocation10_spill] sm:$0xff] }
 0x186   :  { %1133 = vrot.lane.b32.xlu0 %v9870_v36, %s4561_s23 }
 0x187   :  { %v6407_v24 = vpop.permute.xlu1 %947 }
 0x188   :  { %9871 = vst [vmem:[#allocation6_spill] sm:$0xff] %v6407_v24  ;;  %v6409_v45 = vpop.permute.xlu0 %945  ;;  %v9902_v24 = vld [vmem:[#allocation22_spill] sm:$0xff] }
 0x189   :  { %9872 = vst [vmem:[#allocation5_spill] sm:$0xff] %v6409_v45  ;;  %1139 = vrot.lane.b32.xlu1 %v9873_v50, %s4561_s23 }
 0x18a   :  { %1137 = vrot.lane.b32.xlu0 %v9874_v41, %s4561_s23 }
 0x18b   :  { %v6415_v51 = vpop.permute.xlu1 %951 }
 0x18c   :  { %9875 = vst [vmem:[#allocation7_spill] sm:$0xff] %v6415_v51  ;;  %v6417_v60 = vpop.permute.xlu0 %949 }
 0x18d   :  { %9876 = vst [vmem:[#allocation8_spill] sm:$0xff] %v6417_v60  ;;  %1143 = vrot.lane.b32.xlu1 %v9877_v19, %s4561_s23  ;;  %v9898_v60 = vld [vmem:[#allocation20_spill] sm:$0xff] }
 0x18e   :  { %1141 = vrot.lane.b32.xlu0 %v9878_v56, %s4561_s23 }
 0x18f   :  { %v6423_v36 = vpop.permute.xlu1 %955 }
 0x190   :  { %9879 = vst [vmem:[#allocation9_spill] sm:$0xff] %v6423_v36  ;;  %v6425_v37 = vpop.permute.xlu0 %953  ;;  %v9889_v36 = vld [vmem:[#allocation15_spill] sm:$0xff] }
 0x191   :  { %9880 = vst [vmem:[#allocation10_spill] sm:$0xff] %v6425_v37  ;;  %1147 = vrot.lane.b32.xlu1 %v9881_v49, %s4561_s23 }
 0x192   :  { %1145 = vrot.lane.b32.xlu0 %v9882_v44, %s4561_s23 }
 0x193   :  { %v6431_v6 = vpop.permute.xlu1 %959 }
 0x194   :  { %9883 = vst [vmem:[#allocation11_spill] sm:$0xff] %v6431_v6  ;;  %v6433_v8 = vpop.permute.xlu0 %957 }
 0x195   :  { %9884 = vst [vmem:[#allocation12_spill] sm:$0xff] %v6433_v8  ;;  %1151 = vrot.lane.b32.xlu1 %v9885_v42, %s4561_s23  ;;  %v9893_v8 = vld [vmem:[#allocation17_spill] sm:$0xff] }
 0x196   :  { %1149 = vrot.lane.b32.xlu0 %v9886_v61, %s4561_s23 }
 0x197   :  { %v6439_v43 = vpop.permute.xlu1 %963 }
 0x198   :  { %9887 = vst [vmem:[#allocation13_spill] sm:$0xff] %v6439_v43  ;;  %v6441_v29 = vpop.permute.xlu0 %961 }
 0x199   :  { %9888 = vst [vmem:[#allocation14_spill] sm:$0xff] %v6441_v29  ;;  %1155 = vrot.lane.b32.xlu1 %v9889_v36, %s4561_s23  ;;  %v9897_v29 = vld [vmem:[#allocation19_spill] sm:$0xff] }
 0x19a   :  { %1153 = vrot.lane.b32.xlu0 %v9890_v48, %s4561_s23 }
 0x19b   :  { %v6447_v37 = vpop.permute.xlu1 %967 }
 0x19c   :  { %9891 = vst [vmem:[#allocation15_spill] sm:$0xff] %v6447_v37  ;;  %v6449_v6 = vpop.permute.xlu0 %965 }
 0x19d   :  { %9892 = vst [vmem:[#allocation16_spill] sm:$0xff] %v6449_v6  ;;  %1159 = vrot.lane.b32.xlu1 %v9893_v8, %s4561_s23  ;;  %v9901_v6 = vld [vmem:[#allocation21_spill] sm:$0xff] }
 0x19e   :  { %1157 = vrot.lane.b32.xlu0 %v9894_v0, %s4561_s23  ;;  %v9962_v0 = vld [vmem:[#allocation79_spill] sm:$0xff] }
 0x19f   :  { %v6455_v51 = vpop.permute.xlu1 %971 }
 0x1a0   :  { %9895 = vst [vmem:[#allocation259_spill] sm:$0xff] %v6455_v51  ;;  %v6457_v43 = vpop.permute.xlu0 %969 }
 0x1a1   :  { %9896 = vst [vmem:[#allocation260_spill] sm:$0xff] %v6457_v43  ;;  %1163 = vrot.lane.b32.xlu1 %v9897_v29, %s4561_s23  ;;  %v9905_v43 = vld [vmem:[#allocation23_spill] sm:$0xff] }
 0x1a2   :  { %1161 = vrot.lane.b32.xlu0 %v9898_v60, %s4561_s23  ;;  %v9950_v60 = vld [vmem:[#allocation64_spill] sm:$0xff] }
 0x1a3   :  { %v6463_v35 = vpop.permute.xlu1 %975 }
 0x1a4   :  { %9899 = vst [vmem:[#allocation261_spill] sm:$0xff] %v6463_v35  ;;  %v6465_v37 = vpop.permute.xlu0 %973 }
 0x1a5   :  { %9900 = vst [vmem:[#allocation262_spill] sm:$0xff] %v6465_v37  ;;  %1167 = vrot.lane.b32.xlu1 %v9901_v6, %s4561_s23  ;;  %v9909_v37 = vld [vmem:[#allocation25_spill] sm:$0xff] }
 0x1a6   :  { %1165 = vrot.lane.b32.xlu0 %v9902_v24, %s4561_s23  ;;  %v9925_v24 = vld [vmem:[#allocation35_spill] sm:$0xff] }
 0x1a7   :  { %v6471_v45 = vpop.permute.xlu1 %979 }
 0x1a8   :  { %9903 = vst [vmem:[#allocation263_spill] sm:$0xff] %v6471_v45  ;;  %v6473_v51 = vpop.permute.xlu0 %977 }
 0x1a9   :  { %9904 = vst [vmem:[#allocation264_spill] sm:$0xff] %v6473_v51  ;;  %1171 = vrot.lane.b32.xlu1 %v9905_v43, %s4561_s23  ;;  %v9913_v51 = vld [vmem:[#allocation27_spill] sm:$0xff]  ;;  %v9914_v43 = vld [vmem:[#allocation28_spill] sm:$0xff] }
 0x1aa   :  { %1169 = vrot.lane.b32.xlu0 %v9906_v4, %s4561_s23 }
 0x1ab   :  { %v6479_v17 = vpop.permute.xlu1 %983 }
 0x1ac   :  { %9907 = vst [vmem:[#allocation265_spill] sm:$0xff] %v6479_v17  ;;  %v6481_v35 = vpop.permute.xlu0 %981 }
 0x1ad   :  { %9908 = vst [vmem:[#allocation266_spill] sm:$0xff] %v6481_v35  ;;  %1175 = vrot.lane.b32.xlu1 %v9909_v37, %s4561_s23  ;;  %v9917_v35 = vld [vmem:[#allocation29_spill] sm:$0xff]  ;;  %v9918_v37 = vld [vmem:[#allocation30_spill] sm:$0xff] }
 0x1ae   :  { %1173 = vrot.lane.b32.xlu0 %v9910_v3, %s4561_s23 }
 0x1af   :  { %v6487_v7 = vpop.permute.xlu1 %987 }
 0x1b0   :  { %9911 = vst [vmem:[#allocation267_spill] sm:$0xff] %v6487_v7  ;;  %v6489_v45 = vpop.permute.xlu0 %985  ;;  %v6508_v7 = vld [vmem:[%s9240_s0 + $0x190] sm:$0x3] }
 0x1b1   :  { %9912 = vst [vmem:[#allocation268_spill] sm:$0xff] %v6489_v45  ;;  %1179 = vrot.lane.b32.xlu1 %v9913_v51, %s4561_s23  ;;  %v9921_v51 = vld [vmem:[#allocation31_spill] sm:$0xff] }
 0x1b2   :  { %1177 = vrot.lane.b32.xlu0 %v9914_v43, %s4561_s23 }
 0x1b3   :  { %v6495_v4 = vpop.permute.xlu1 %991 }
 0x1b4   :  { %9915 = vst [vmem:[#allocation269_spill] sm:$0xff] %v6495_v4  ;;  %v6497_v17 = vpop.permute.xlu0 %989  ;;  %v1124_v4 = vrot.slane %v6232_v13, 1 }
 0x1b5   :  { %9916 = vst [vmem:[#allocation270_spill] sm:$0xff] %v6497_v17  ;;  %1183 = vrot.lane.b32.xlu1 %v9917_v35, %s4561_s23  ;;  %v9922_v17 = vld [vmem:[#allocation32_spill] sm:$0xff]  ;;  %v1126_v35 = vrot.slane %v6508_v7, 1 }
 0x1b6   :  { %1181 = vrot.lane.b32.xlu0 %v9918_v37, %s4561_s23  ;;  %v1123_v37 = vrot.slane %v6239_v18, 1 }
 0x1b7   :  { %v6503_v3 = vpop.permute.xlu1 %995 }
 0x1b8   :  { %9919 = vst [vmem:[#allocation271_spill] sm:$0xff] %v6503_v3  ;;  %v6510_v45 = vpop.permute.xlu0 %993 }
 0x1b9   :  { %9920 = vst [vmem:[#allocation272_spill] sm:$0xff] %v6510_v45  ;;  %1187 = vrot.lane.b32.xlu1 %v9921_v51, %s4561_s23  ;;  %v6528_v51 = vsel %vm219_vm0, %v1124_v4, %v1126_v35  ;;  %v9933_v35 = vld [vmem:[#allocation43_spill] sm:$0xff]  ;;  %v9954_v45 = vld [vmem:[#allocation69_spill] sm:$0xff] }
 0x1ba   :  { %1185 = vrot.lane.b32.xlu0 %v9922_v17, %s4561_s23  ;;  %9927 = vst [vmem:[#allocation275_spill] sm:$0xff] %v6528_v51  ;;  %v6533_v17 = vsel %vm219_vm0, %v1123_v37, %v1124_v4 }
 0x1bb   :  { %v6519_v43 = vpop.permute.xlu1 %999  ;;  %9929 = vst [vmem:[#allocation277_spill] sm:$0xff] %v6533_v17 }
 0x1bc   :  { %9923 = vst [vmem:[#allocation273_spill] sm:$0xff] %v6519_v43  ;;  %v6521_v6 = vpop.permute.xlu0 %997 }
 0x1bd   :  { %9924 = vst [vmem:[#allocation274_spill] sm:$0xff] %v6521_v6  ;;  %1191 = vrot.lane.b32.xlu1 %v9925_v24, %s4561_s23 }
 0x1be   :  { %1189 = vrot.lane.b32.xlu0 %v9926_v33, %s4561_s23  ;;  %v9934_v33 = vld [vmem:[#allocation44_spill] sm:$0xff] }
 0x1bf   :  { %v6530_v32 = vpop.permute.xlu1 %1003 }
 0x1c0   :  { %9928 = vst [vmem:[#allocation276_spill] sm:$0xff] %v6530_v32  ;;  %v6535_v29 = vpop.permute.xlu0 %1001  ;;  %v9937_v32 = vld [vmem:[#allocation48_spill] sm:$0xff] }
 0x1c1   :  { %9930 = vst [vmem:[#allocation278_spill] sm:$0xff] %v6535_v29  ;;  %1195 = vrot.lane.b32.xlu1 %v6528_v51, %s4561_s23  ;;  %v9938_v51 = vld [vmem:[#allocation49_spill] sm:$0xff]  ;;  %v9946_v29 = vld [vmem:[#allocation59_spill] sm:$0xff] }
 0x1c2   :  { %1193 = vrot.lane.b32.xlu0 %v6533_v17, %s4561_s23 }
 0x1c3   :  { %v6541_v24 = vpop.permute.xlu1 %1007 }
 0x1c4   :  { %9931 = vst [vmem:[#allocation279_spill] sm:$0xff] %v6541_v24  ;;  %v6543_v43 = vpop.permute.xlu0 %1005 }
 0x1c5   :  { %9932 = vst [vmem:[#allocation280_spill] sm:$0xff] %v6543_v43  ;;  %1199 = vrot.lane.b32.xlu1 %v9933_v35, %s4561_s23  ;;  %v9941_v43 = vld [vmem:[#allocation53_spill] sm:$0xff]  ;;  %v9942_v35 = vld [vmem:[#allocation54_spill] sm:$0xff] }
 0x1c6   :  { %1197 = vrot.lane.b32.xlu0 %v9934_v33, %s4561_s23 }
 0x1c7   :  { %v6549_v37 = vpop.permute.xlu1 %1011 }
 0x1c8   :  { %9935 = vst [vmem:[#allocation43_spill] sm:$0xff] %v6549_v37  ;;  %v6551_v4 = vpop.permute.xlu0 %1009 }
 0x1c9   :  { %9936 = vst [vmem:[#allocation44_spill] sm:$0xff] %v6551_v4  ;;  %1203 = vrot.lane.b32.xlu1 %v9937_v32, %s4561_s23  ;;  %v9945_v4 = vld [vmem:[#allocation58_spill] sm:$0xff] }
 0x1ca   :  { %1201 = vrot.lane.b32.xlu0 %v9938_v51, %s4561_s23 }
 0x1cb   :  { %v6557_v17 = vpop.permute.xlu1 %1015 }
 0x1cc   :  { %9939 = vst [vmem:[#allocation48_spill] sm:$0xff] %v6557_v17  ;;  %v6559_v24 = vpop.permute.xlu0 %1013 }
 0x1cd   :  { %9940 = vst [vmem:[#allocation49_spill] sm:$0xff] %v6559_v24  ;;  %1207 = vrot.lane.b32.xlu1 %v9941_v43, %s4561_s23  ;;  %v9949_v24 = vld [vmem:[#allocation63_spill] sm:$0xff] }
 0x1ce   :  { %1205 = vrot.lane.b32.xlu0 %v9942_v35, %s4561_s23 }
 0x1cf   :  { %v6565_v33 = vpop.permute.xlu1 %1019 }
 0x1d0   :  { %9943 = vst [vmem:[#allocation53_spill] sm:$0xff] %v6565_v33  ;;  %v6567_v37 = vpop.permute.xlu0 %1017 }
 0x1d1   :  { %9944 = vst [vmem:[#allocation54_spill] sm:$0xff] %v6567_v37  ;;  %1211 = vrot.lane.b32.xlu1 %v9945_v4, %s4561_s23  ;;  %v9953_v37 = vld [vmem:[#allocation68_spill] sm:$0xff] }
 0x1d2   :  { %1209 = vrot.lane.b32.xlu0 %v9946_v29, %s4561_s23 }
 0x1d3   :  { %v6573_v6 = vpop.permute.xlu1 %1023 }
 0x1d4   :  { %9947 = vst [vmem:[#allocation58_spill] sm:$0xff] %v6573_v6  ;;  %v6575_v17 = vpop.permute.xlu0 %1021 }
 0x1d5   :  { %9948 = vst [vmem:[#allocation59_spill] sm:$0xff] %v6575_v17  ;;  %1215 = vrot.lane.b32.xlu1 %v9949_v24, %s4561_s23  ;;  %v9957_v17 = vld [vmem:[#allocation73_spill] sm:$0xff] }
 0x1d6   :  { %1213 = vrot.lane.b32.xlu0 %v9950_v60, %s4561_s23 }
 0x1d7   :  { %v6581_v3 = vpop.permute.xlu1 %1027 }
 0x1d8   :  { %9951 = vst [vmem:[#allocation63_spill] sm:$0xff] %v6581_v3  ;;  %v6583_v33 = vpop.permute.xlu0 %1025 }
 0x1d9   :  { %9952 = vst [vmem:[#allocation64_spill] sm:$0xff] %v6583_v33  ;;  %1219 = vrot.lane.b32.xlu1 %v9953_v37, %s4561_s23  ;;  %v9961_v33 = vld [vmem:[#allocation78_spill] sm:$0xff] }
 0x1da   :  { %1217 = vrot.lane.b32.xlu0 %v9954_v45, %s4561_s23 }
 0x1db   :  { %v6589_v59 = vpop.permute.xlu1 %1031 }
 0x1dc   :  { %9955 = vst [vmem:[#allocation69_spill] sm:$0xff] %v6589_v59  ;;  %v6591_v6 = vpop.permute.xlu0 %1029 }
 0x1dd   :  { %9956 = vst [vmem:[#allocation281_spill] sm:$0xff] %v6591_v6  ;;  %1223 = vrot.lane.b32.xlu1 %v9957_v17, %s4561_s23  ;;  %v9965_v6 = vld [vmem:[#allocation83_spill] sm:$0xff]  ;;  %v9966_v17 = vld [vmem:[#allocation84_spill] sm:$0xff] }
 0x1de   :  { %1221 = vrot.lane.b32.xlu0 %v9958_v9, %s4561_s23 }
 0x1df   :  { %v6597_v8 = vpop.permute.xlu1 %1035 }
 0x1e0   :  { %9959 = vst [vmem:[#allocation282_spill] sm:$0xff] %v6597_v8  ;;  %v6599_v3 = vpop.permute.xlu0 %1033 }
 0x1e1   :  { %9960 = vst [vmem:[#allocation283_spill] sm:$0xff] %v6599_v3  ;;  %1227 = vrot.lane.b32.xlu1 %v9961_v33, %s4561_s23  ;;  %v9969_v3 = vld [vmem:[#allocation88_spill] sm:$0xff]  ;;  %v9970_v33 = vld [vmem:[#allocation89_spill] sm:$0xff] }
 0x1e2   :  { %1225 = vrot.lane.b32.xlu0 %v9962_v0, %s4561_s23 }
 0x1e3   :  { %v6605_v37 = vpop.permute.xlu1 %1039 }
 0x1e4   :  { %9963 = vst [vmem:[#allocation284_spill] sm:$0xff] %v6605_v37  ;;  %v6607_v59 = vpop.permute.xlu0 %1037 }
 0x1e5   :  { %9964 = vst [vmem:[#allocation285_spill] sm:$0xff] %v6607_v59  ;;  %1231 = vrot.lane.b32.xlu1 %v9965_v6, %s4561_s23  ;;  %v9973_v59 = vld [vmem:[#allocation93_spill] sm:$0xff]  ;;  %v9974_v6 = vld [vmem:[#allocation94_spill] sm:$0xff] }
 0x1e6   :  { %1229 = vrot.lane.b32.xlu0 %v9966_v17, %s4561_s23 }
 0x1e7   :  { %v6613_v9 = vpop.permute.xlu1 %1043 }
 0x1e8   :  { %9967 = vst [vmem:[#allocation286_spill] sm:$0xff] %v6613_v9  ;;  %v6615_v8 = vpop.permute.xlu0 %1041 }
 0x1e9   :  { %9968 = vst [vmem:[#allocation287_spill] sm:$0xff] %v6615_v8  ;;  %1235 = vrot.lane.b32.xlu1 %v9969_v3, %s4561_s23  ;;  %v9977_v8 = vld [vmem:[#allocation98_spill] sm:$0xff]  ;;  %v9978_v3 = vld [vmem:[#allocation99_spill] sm:$0xff] }
 0x1ea   :  { %1233 = vrot.lane.b32.xlu0 %v9970_v33, %s4561_s23 }
 0x1eb   :  { %v6621_v0 = vpop.permute.xlu1 %1047 }
 0x1ec   :  { %9971 = vst [vmem:[#allocation288_spill] sm:$0xff] %v6621_v0  ;;  %v6623_v37 = vpop.permute.xlu0 %1045 }
 0x1ed   :  { %9972 = vst [vmem:[#allocation289_spill] sm:$0xff] %v6623_v37  ;;  %1239 = vrot.lane.b32.xlu1 %v9973_v59, %s4561_s23  ;;  %v9981_v37 = vld [vmem:[#allocation103_spill] sm:$0xff]  ;;  %v9982_v59 = vld [vmem:[#allocation105_spill] sm:$0xff] }
 0x1ee   :  { %1237 = vrot.lane.b32.xlu0 %v9974_v6, %s4561_s23 }
 0x1ef   :  { %v6629_v17 = vpop.permute.xlu1 %1051 }
 0x1f0   :  { %9975 = vst [vmem:[#allocation290_spill] sm:$0xff] %v6629_v17  ;;  %v6631_v9 = vpop.permute.xlu0 %1049  ;;  %v6650_v17 = vld [vmem:[%s9240_s0 + $0x340] sm:$0x3] }
 0x1f1   :  { %9976 = vst [vmem:[#allocation291_spill] sm:$0xff] %v6631_v9  ;;  %1243 = vrot.lane.b32.xlu1 %v9977_v8, %s4561_s23 }
 0x1f2   :  { %1241 = vrot.lane.b32.xlu0 %v9978_v3, %s4561_s23 }
 0x1f3   :  { %v6637_v33 = vpop.permute.xlu1 %1055 }
 0x1f4   :  { %9979 = vst [vmem:[#allocation292_spill] sm:$0xff] %v6637_v33  ;;  %v6639_v0 = vpop.permute.xlu0 %1053  ;;  %v1129_v33 = vrot.slane %v6384_v40, 1 }
 0x1f5   :  { %9980 = vst [vmem:[#allocation293_spill] sm:$0xff] %v6639_v0  ;;  %1247 = vrot.lane.b32.xlu1 %v9981_v37, %s4561_s23  ;;  %v1131_v0 = vrot.slane %v6650_v17, 1  ;;  %v1128_v37 = vrot.slane %v6391_v15, 1 }
 0x1f6   :  { %1245 = vrot.lane.b32.xlu0 %v9982_v59, %s4561_s23 }
 0x1f7   :  { %v6645_v6 = vpop.permute.xlu1 %1135 }
 0x1f8   :  { %9983 = vst [vmem:[#allocation294_spill] sm:$0xff] %v6645_v6  ;;  %v6652_v9 = vpop.permute.xlu0 %1133 }
 0x1f9   :  { %1251 = vrot.lane.b32.xlu1 %v5454_v52, %s4561_s23  ;;  %v6670_v52 = vsel %vm219_vm0, %v1129_v33, %v1131_v0 }
 0x1fa   :  { %1249 = vrot.lane.b32.xlu0 %v5461_v27, %s4561_s23  ;;  %9986 = vst [vmem:[#allocation297_spill] sm:$0xff] %v6670_v52  ;;  %v6675_v27 = vsel %vm219_vm0, %v1128_v37, %v1129_v33 }
 0x1fb   :  { %v6661_v59 = vpop.permute.xlu1 %1139  ;;  %9988 = vst [vmem:[#allocation299_spill] sm:$0xff] %v6675_v27 }
 0x1fc   :  { %9984 = vst [vmem:[#allocation295_spill] sm:$0xff] %v6661_v59  ;;  %v6663_v8 = vpop.permute.xlu0 %1137 }
 0x1fd   :  { %9985 = vst [vmem:[#allocation296_spill] sm:$0xff] %v6663_v8  ;;  %1255 = vrot.lane.b32.xlu1 %v5471_v28, %s4561_s23 }
 0x1fe   :  { %1253 = vrot.lane.b32.xlu0 %v5478_v25, %s4561_s23 }
 0x1ff   :  { %v6672_v3 = vpop.permute.xlu1 %1143 }
 0x200   :  { %9987 = vst [vmem:[#allocation298_spill] sm:$0xff] %v6672_v3  ;;  %v6677_v6 = vpop.permute.xlu0 %1141 }
 0x201   :  { %9989 = vst [vmem:[#allocation300_spill] sm:$0xff] %v6677_v6  ;;  %1259 = vrot.lane.b32.xlu1 %v6670_v52, %s4561_s23 }
 0x202   :  { %1257 = vrot.lane.b32.xlu0 %v6675_v27, %s4561_s23 }
 0x203   :  { %v6683_v28 = vpop.permute.xlu1 %1147 }
 0x204   :  { %9990 = vst [vmem:[#allocation301_spill] sm:$0xff] %v6683_v28  ;;  %v6685_v59 = vpop.permute.xlu0 %1145  ;;  %v10028_v28 = vld [vmem:[#allocation160_spill] sm:$0xff] }
 0x205   :  { %9991 = vst [vmem:[#allocation302_spill] sm:$0xff] %v6685_v59  ;;  %1337 = vrot.lane.b32.xlu1 %v5499_v57, %s4562_s28  ;;  %v10039_v59 = vld [vmem:[#allocation161_spill] sm:$0xff] }
 0x206   :  { %1335 = vrot.lane.b32.xlu0 %v5506_v12, %s4562_s28 }
 0x207   :  { %v6691_v0 = vpop.permute.xlu1 %1151 }
 0x208   :  { %9992 = vst [vmem:[#allocation303_spill] sm:$0xff] %v6691_v0  ;;  %v6693_v37 = vpop.permute.xlu0 %1149 }
 0x209   :  { %9993 = vst [vmem:[#allocation304_spill] sm:$0xff] %v6693_v37  ;;  %1341 = vrot.lane.b32.xlu1 %v5516_v5, %s4562_s28  ;;  %v10017_v37 = vld [vmem:[#allocation149_spill] sm:$0xff] }
 0x20a   :  { %1339 = vrot.lane.b32.xlu0 %v5523_v10, %s4562_s28 }
 0x20b   :  { %v6699_v33 = vpop.permute.xlu1 %1155 }
 0x20c   :  { %9994 = vst [vmem:[#allocation305_spill] sm:$0xff] %v6699_v33  ;;  %v6701_v52 = vpop.permute.xlu0 %1153 }
 0x20d   :  { %9995 = vst [vmem:[#allocation306_spill] sm:$0xff] %v6701_v52  ;;  %1345 = vrot.lane.b32.xlu1 %v5533_v2, %s4562_s28  ;;  %v10013_v52 = vld [vmem:[#allocation145_spill] sm:$0xff] }
 0x20e   :  { %1343 = vrot.lane.b32.xlu0 %v5540_v1, %s4562_s28 }
 0x20f   :  { %v6707_v57 = vpop.permute.xlu1 %1159 }
 0x210   :  { %9996 = vst [vmem:[#allocation307_spill] sm:$0xff] %v6707_v57  ;;  %v6709_v12 = vpop.permute.xlu0 %1157 }
 0x211   :  { %9997 = vst [vmem:[#allocation308_spill] sm:$0xff] %v6709_v12  ;;  %1349 = vrot.lane.b32.xlu1 %v5550_v14, %s4562_s28 }
 0x212   :  { %1347 = vrot.lane.b32.xlu0 %v5557_v11, %s4562_s28 }
 0x213   :  { %v6715_v27 = vpop.permute.xlu1 %1163 }
 0x214   :  { %9998 = vst [vmem:[#allocation309_spill] sm:$0xff] %v6715_v27  ;;  %v6717_v25 = vpop.permute.xlu0 %1161 }
 0x215   :  { %9999 = vst [vmem:[#allocation310_spill] sm:$0xff] %v6717_v25  ;;  %1353 = vrot.lane.b32.xlu1 %v5567_v23, %s4562_s28 }
 0x216   :  { %1351 = vrot.lane.b32.xlu0 %v5574_v22, %s4562_s28 }
 0x217   :  { %v6723_v33 = vpop.permute.xlu1 %1167 }
 0x218   :  { %10000 = vst [vmem:[#allocation311_spill] sm:$0xff] %v6723_v33  ;;  %v6725_v57 = vpop.permute.xlu0 %1165 }
 0x219   :  { %10001 = vst [vmem:[#allocation312_spill] sm:$0xff] %v6725_v57  ;;  %1357 = vrot.lane.b32.xlu1 %v5584_v31, %s4562_s28 }
 0x21a   :  { %1355 = vrot.lane.b32.xlu0 %v5591_v30, %s4562_s28 }
 0x21b   :  { %v6731_v12 = vpop.permute.xlu1 %1171 }
 0x21c   :  { %10002 = vst [vmem:[#allocation313_spill] sm:$0xff] %v6731_v12  ;;  %v6733_v27 = vpop.permute.xlu0 %1169 }
 0x21d   :  { %10003 = vst [vmem:[#allocation314_spill] sm:$0xff] %v6733_v27  ;;  %1361 = vrot.lane.b32.xlu1 %v5601_v39, %s4562_s28 }
 0x21e   :  { %1359 = vrot.lane.b32.xlu0 %v5608_v38, %s4562_s28 }
 0x21f   :  { %v6739_v25 = vpop.permute.xlu1 %1175 }
 0x220   :  { %10004 = vst [vmem:[#allocation315_spill] sm:$0xff] %v6739_v25  ;;  %v6741_v33 = vpop.permute.xlu0 %1173 }
 0x221   :  { %10005 = vst [vmem:[#allocation316_spill] sm:$0xff] %v6741_v33  ;;  %1365 = vrot.lane.b32.xlu1 %v5618_v47, %s4562_s28  ;;  %v10064_v47 = vld [vmem:[#allocation76_spill] sm:$0xff] }
 0x222   :  { %1363 = vrot.lane.b32.xlu0 %v5625_v46, %s4562_s28  ;;  %v10068_v46 = vld [vmem:[#allocation81_spill] sm:$0xff] }
 0x223   :  { %v6747_v57 = vpop.permute.xlu1 %1179 }
 0x224   :  { %10006 = vst [vmem:[#allocation317_spill] sm:$0xff] %v6747_v57  ;;  %v6749_v12 = vpop.permute.xlu0 %1177 }
 0x225   :  { %10007 = vst [vmem:[#allocation318_spill] sm:$0xff] %v6749_v12  ;;  %1369 = vrot.lane.b32.xlu1 %v5635_v55, %s4562_s28  ;;  %v10012_v12 = vld [vmem:[#allocation143_spill] sm:$0xff] }
 0x226   :  { %1367 = vrot.lane.b32.xlu0 %v5642_v54, %s4562_s28  ;;  %v10056_v54 = vld [vmem:[#allocation66_spill] sm:$0xff] }
 0x227   :  { %v6755_v27 = vpop.permute.xlu1 %1183 }
 0x228   :  { %10008 = vst [vmem:[#allocation319_spill] sm:$0xff] %v6755_v27  ;;  %v6757_v25 = vpop.permute.xlu0 %1181 }
 0x229   :  { %10009 = vst [vmem:[#allocation320_spill] sm:$0xff] %v6757_v25  ;;  %1373 = vrot.lane.b32.xlu1 %v5652_v63, %s4562_s28  ;;  %v10016_v25 = vld [vmem:[#allocation147_spill] sm:$0xff] }
 0x22a   :  { %1371 = vrot.lane.b32.xlu0 %v5659_v62, %s4562_s28 }
 0x22b   :  { %v6763_v33 = vpop.permute.xlu1 %1187 }
 0x22c   :  { %10010 = vst [vmem:[#allocation321_spill] sm:$0xff] %v6763_v33  ;;  %v6765_v57 = vpop.permute.xlu0 %1185 }
 0x22d   :  { %10011 = vst [vmem:[#allocation322_spill] sm:$0xff] %v6765_v57  ;;  %1377 = vrot.lane.b32.xlu1 %v10012_v12, %s4562_s28  ;;  %v10020_v57 = vld [vmem:[#allocation151_spill] sm:$0xff]  ;;  %v10021_v12 = vld [vmem:[#allocation153_spill] sm:$0xff] }
 0x22e   :  { %1375 = vrot.lane.b32.xlu0 %v10013_v52, %s4562_s28 }
 0x22f   :  { %v6771_v0 = vpop.permute.xlu1 %1191 }
 0x230   :  { %10014 = vst [vmem:[#allocation323_spill] sm:$0xff] %v6771_v0  ;;  %v6773_v27 = vpop.permute.xlu0 %1189 }
 0x231   :  { %10015 = vst [vmem:[#allocation324_spill] sm:$0xff] %v6773_v27  ;;  %1381 = vrot.lane.b32.xlu1 %v10016_v25, %s4562_s28  ;;  %v10023_v27 = vld [vmem:[#allocation155_spill] sm:$0xff]  ;;  %v1326_v25 = vrot.slane %v6232_v13, 2 }
 0x232   :  { %1379 = vrot.lane.b32.xlu0 %v10017_v37, %s4562_s28  ;;  %v10024_v37 = vld [vmem:[#allocation157_spill] sm:$0xff] }
 0x233   :  { %v6779_v63 = vpop.permute.xlu1 %1195 }
 0x234   :  { %10018 = vst [vmem:[#allocation325_spill] sm:$0xff] %v6779_v63  ;;  %v6781_v33 = vpop.permute.xlu0 %1193  ;;  %v1328_v63 = vrot.slane %v6508_v7, 2 }
 0x235   :  { %10019 = vst [vmem:[#allocation326_spill] sm:$0xff] %v6781_v33  ;;  %1385 = vrot.lane.b32.xlu1 %v10020_v57, %s4562_s28  ;;  %v1325_v33 = vrot.slane %v6239_v18, 2 }
 0x236   :  { %1383 = vrot.lane.b32.xlu0 %v10021_v12, %s4562_s28  ;;  %v10027_v12 = vld [vmem:[#allocation159_spill] sm:$0xff] }
 0x237   :  { %v6787_v52 = vpop.permute.xlu1 %1199 }
 0x238   :  { %10022 = vst [vmem:[#allocation327_spill] sm:$0xff] %v6787_v52  ;;  %v6789_v0 = vpop.permute.xlu0 %1197 }
 0x239   :  { %1389 = vrot.lane.b32.xlu1 %v10023_v27, %s4562_s28  ;;  %v6807_v27 = vsel %vm572_vm1, %v1326_v25, %v1328_v63  ;;  %v10035_v63 = vld [vmem:[#allocation39_spill] sm:$0xff] }
 0x23a   :  { %1387 = vrot.lane.b32.xlu0 %v10024_v37, %s4562_s28  ;;  %10029 = vst [vmem:[#allocation330_spill] sm:$0xff] %v6807_v27  ;;  %v6812_v37 = vsel %vm572_vm1, %v1325_v33, %v1326_v25 }
 0x23b   :  { %v6798_v57 = vpop.permute.xlu1 %1203  ;;  %10031 = vst [vmem:[#allocation332_spill] sm:$0xff] %v6812_v37 }
 0x23c   :  { %10025 = vst [vmem:[#allocation328_spill] sm:$0xff] %v6798_v57  ;;  %v6800_v62 = vpop.permute.xlu0 %1201  ;;  %v10060_v57 = vld [vmem:[#allocation71_spill] sm:$0xff] }
 0x23d   :  { %10026 = vst [vmem:[#allocation329_spill] sm:$0xff] %v6800_v62  ;;  %1393 = vrot.lane.b32.xlu1 %v10027_v12, %s4562_s28 }
 0x23e   :  { %1391 = vrot.lane.b32.xlu0 %v10028_v28, %s4562_s28  ;;  %v10036_v28 = vld [vmem:[#allocation41_spill] sm:$0xff] }
 0x23f   :  { %v6809_v13 = vpop.permute.xlu1 %1207 }
 0x240   :  { %10030 = vst [vmem:[#allocation331_spill] sm:$0xff] %v6809_v13  ;;  %v6814_v7 = vpop.permute.xlu0 %1205  ;;  %v10048_v13 = vld [vmem:[#allocation56_spill] sm:$0xff] }
 0x241   :  { %10032 = vst [vmem:[#allocation333_spill] sm:$0xff] %v6814_v7  ;;  %1397 = vrot.lane.b32.xlu1 %v6807_v27, %s4562_s28  ;;  %v10040_v27 = vld [vmem:[#allocation46_spill] sm:$0xff]  ;;  %v10052_v7 = vld [vmem:[#allocation61_spill] sm:$0xff] }
 0x242   :  { %1395 = vrot.lane.b32.xlu0 %v6812_v37, %s4562_s28 }
 0x243   :  { %v6820_v18 = vpop.permute.xlu1 %1211 }
 0x244   :  { %10033 = vst [vmem:[#allocation334_spill] sm:$0xff] %v6820_v18  ;;  %v6822_v12 = vpop.permute.xlu0 %1209 }
 0x245   :  { %10034 = vst [vmem:[#allocation335_spill] sm:$0xff] %v6822_v12  ;;  %1401 = vrot.lane.b32.xlu1 %v10035_v63, %s4562_s28  ;;  %v10043_v12 = vld [vmem:[#allocation162_spill] sm:$0xff]  ;;  %v10044_v63 = vld [vmem:[#allocation51_spill] sm:$0xff] }
 0x246   :  { %1399 = vrot.lane.b32.xlu0 %v10036_v28, %s4562_s28 }
 0x247   :  { %v6828_v25 = vpop.permute.xlu1 %1215 }
 0x248   :  { %10037 = vst [vmem:[#allocation39_spill] sm:$0xff] %v6828_v25  ;;  %v6830_v33 = vpop.permute.xlu0 %1213 }
 0x249   :  { %10038 = vst [vmem:[#allocation41_spill] sm:$0xff] %v6830_v33  ;;  %1405 = vrot.lane.b32.xlu1 %v10039_v59, %s4562_s28  ;;  %v10047_v33 = vld [vmem:[#allocation163_spill] sm:$0xff] }
 0x24a   :  { %1403 = vrot.lane.b32.xlu0 %v10040_v27, %s4562_s28 }
 0x24b   :  { %v6836_v37 = vpop.permute.xlu1 %1219 }
 0x24c   :  { %10041 = vst [vmem:[#allocation161_spill] sm:$0xff] %v6836_v37  ;;  %v6838_v18 = vpop.permute.xlu0 %1217 }
 0x24d   :  { %10042 = vst [vmem:[#allocation46_spill] sm:$0xff] %v6838_v18  ;;  %1409 = vrot.lane.b32.xlu1 %v10043_v12, %s4562_s28  ;;  %v10051_v18 = vld [vmem:[#allocation164_spill] sm:$0xff] }
 0x24e   :  { %1407 = vrot.lane.b32.xlu0 %v10044_v63, %s4562_s28 }
 0x24f   :  { %v6844_v28 = vpop.permute.xlu1 %1223 }
 0x250   :  { %10045 = vst [vmem:[#allocation162_spill] sm:$0xff] %v6844_v28  ;;  %v6846_v25 = vpop.permute.xlu0 %1221 }
 0x251   :  { %10046 = vst [vmem:[#allocation51_spill] sm:$0xff] %v6846_v25  ;;  %1413 = vrot.lane.b32.xlu1 %v10047_v33, %s4562_s28  ;;  %v10055_v25 = vld [vmem:[#allocation165_spill] sm:$0xff] }
 0x252   :  { %1411 = vrot.lane.b32.xlu0 %v10048_v13, %s4562_s28 }
 0x253   :  { %v6852_v55 = vpop.permute.xlu1 %1227 }
 0x254   :  { %10049 = vst [vmem:[#allocation163_spill] sm:$0xff] %v6852_v55  ;;  %v6854_v37 = vpop.permute.xlu0 %1225 }
 0x255   :  { %10050 = vst [vmem:[#allocation56_spill] sm:$0xff] %v6854_v37  ;;  %1417 = vrot.lane.b32.xlu1 %v10051_v18, %s4562_s28  ;;  %v10059_v37 = vld [vmem:[#allocation166_spill] sm:$0xff] }
 0x256   :  { %1415 = vrot.lane.b32.xlu0 %v10052_v7, %s4562_s28 }
 0x257   :  { %v6860_v3 = vpop.permute.xlu1 %1231 }
 0x258   :  { %10053 = vst [vmem:[#allocation164_spill] sm:$0xff] %v6860_v3  ;;  %v6862_v28 = vpop.permute.xlu0 %1229 }
 0x259   :  { %10054 = vst [vmem:[#allocation61_spill] sm:$0xff] %v6862_v28  ;;  %1421 = vrot.lane.b32.xlu1 %v10055_v25, %s4562_s28  ;;  %v10063_v28 = vld [vmem:[#allocation167_spill] sm:$0xff] }
 0x25a   :  { %1419 = vrot.lane.b32.xlu0 %v10056_v54, %s4562_s28 }
 0x25b   :  { %v6868_v6 = vpop.permute.xlu1 %1235 }
 0x25c   :  { %10057 = vst [vmem:[#allocation165_spill] sm:$0xff] %v6868_v6  ;;  %v6870_v55 = vpop.permute.xlu0 %1233 }
 0x25d   :  { %10058 = vst [vmem:[#allocation66_spill] sm:$0xff] %v6870_v55  ;;  %1425 = vrot.lane.b32.xlu1 %v10059_v37, %s4562_s28  ;;  %v10067_v55 = vld [vmem:[#allocation168_spill] sm:$0xff] }
 0x25e   :  { %1423 = vrot.lane.b32.xlu0 %v10060_v57, %s4562_s28 }
 0x25f   :  { %v6876_v62 = vpop.permute.xlu1 %1239 }
 0x260   :  { %10061 = vst [vmem:[#allocation166_spill] sm:$0xff] %v6876_v62  ;;  %v6878_v3 = vpop.permute.xlu0 %1237 }
 0x261   :  { %10062 = vst [vmem:[#allocation71_spill] sm:$0xff] %v6878_v3  ;;  %1429 = vrot.lane.b32.xlu1 %v10063_v28, %s4562_s28  ;;  %v10071_v3 = vld [vmem:[#allocation169_spill] sm:$0xff]  ;;  %v10072_v28 = vld [vmem:[#allocation86_spill] sm:$0xff] }
 0x262   :  { %1427 = vrot.lane.b32.xlu0 %v10064_v47, %s4562_s28 }
 0x263   :  { %v6884_v8 = vpop.permute.xlu1 %1243 }
 0x264   :  { %10065 = vst [vmem:[#allocation336_spill] sm:$0xff] %v6884_v8  ;;  %v6886_v6 = vpop.permute.xlu0 %1241 }
 0x265   :  { %10066 = vst [vmem:[#allocation337_spill] sm:$0xff] %v6886_v6  ;;  %1433 = vrot.lane.b32.xlu1 %v10067_v55, %s4562_s28  ;;  %v10075_v6 = vld [vmem:[#allocation170_spill] sm:$0xff]  ;;  %v10076_v55 = vld [vmem:[#allocation91_spill] sm:$0xff] }
 0x266   :  { %1431 = vrot.lane.b32.xlu0 %v10068_v46, %s4562_s28 }
 0x267   :  { %v6892_v52 = vpop.permute.xlu1 %1247 }
 0x268   :  { %10069 = vst [vmem:[#allocation338_spill] sm:$0xff] %v6892_v52  ;;  %v6894_v62 = vpop.permute.xlu0 %1245 }
 0x269   :  { %10070 = vst [vmem:[#allocation339_spill] sm:$0xff] %v6894_v62  ;;  %1437 = vrot.lane.b32.xlu1 %v10071_v3, %s4562_s28  ;;  %v10079_v62 = vld [vmem:[#allocation96_spill] sm:$0xff] }
 0x26a   :  { %1435 = vrot.lane.b32.xlu0 %v10072_v28, %s4562_s28 }
 0x26b   :  { %v6900_v47 = vpop.permute.xlu1 %1251 }
 0x26c   :  { %10073 = vst [vmem:[#allocation86_spill] sm:$0xff] %v6900_v47  ;;  %v6902_v8 = vpop.permute.xlu0 %1249 }
 0x26d   :  { %10074 = vst [vmem:[#allocation340_spill] sm:$0xff] %v6902_v8  ;;  %1441 = vrot.lane.b32.xlu1 %v10075_v6, %s4562_s28  ;;  %v10082_v8 = vld [vmem:[#allocation101_spill] sm:$0xff] }
 0x26e   :  { %1439 = vrot.lane.b32.xlu0 %v10076_v55, %s4562_s28  ;;  %v10092_v55 = vld [vmem:[#allocation193_spill] sm:$0xff] }
 0x26f   :  { %v6908_v46 = vpop.permute.xlu1 %1255 }
 0x270   :  { %10077 = vst [vmem:[#allocation341_spill] sm:$0xff] %v6908_v46  ;;  %v6910_v52 = vpop.permute.xlu0 %1253 }
 0x271   :  { %10078 = vst [vmem:[#allocation342_spill] sm:$0xff] %v6910_v52  ;;  %1445 = vrot.lane.b32.xlu1 %v5952_v20, %s4562_s28  ;;  %v1331_v52 = vrot.slane %v6384_v40, 2 }
 0x272   :  { %1443 = vrot.lane.b32.xlu0 %v10079_v62, %s4562_s28 }
 0x273   :  { %v6916_v3 = vpop.permute.xlu1 %1259 }
 0x274   :  { %10080 = vst [vmem:[#allocation343_spill] sm:$0xff] %v6916_v3  ;;  %v6918_v47 = vpop.permute.xlu0 %1257  ;;  %v1333_v3 = vrot.slane %v6650_v17, 2 }
 0x275   :  { %10081 = vst [vmem:[#allocation344_spill] sm:$0xff] %v6918_v47  ;;  %1449 = vrot.lane.b32.xlu1 %v5969_v26, %s4562_s28  ;;  %v1330_v47 = vrot.slane %v6391_v15, 2 }
 0x276   :  { %1447 = vrot.lane.b32.xlu0 %v10082_v8, %s4562_s28 }
 0x277   :  { %v6924_v6 = vpop.permute.xlu1 %1337 }
 0x278   :  { %v6926_v46 = vpop.permute.xlu0 %1335 }
 0x279   :  { %1453 = vrot.lane.b32.xlu1 %v5986_v53, %s4562_s28  ;;  %v6944_v53 = vsel %vm572_vm1, %v1331_v52, %v1333_v3  ;;  %v10085_v3 = vld [vmem:[#allocation185_spill] sm:$0xff] }
 0x27a   :  { %1451 = vrot.lane.b32.xlu0 %v5993_v58, %s4562_s28  ;;  %10083 = vst [vmem:[#allocation345_spill] sm:$0xff] %v6944_v53  ;;  %v6949_v58 = vsel %vm572_vm1, %v1330_v47, %v1331_v52 }
 0x27b   :  { %v6935_v26 = vpop.permute.xlu1 %1341  ;;  %10084 = vst [vmem:[#allocation346_spill] sm:$0xff] %v6949_v58 }
 0x27c   :  { %v6937_v20 = vpop.permute.xlu0 %1339 }
 0x27d   :  { %1457 = vrot.lane.b32.xlu1 %v6003_v34, %s4562_s28 }
 0x27e   :  { %1455 = vrot.lane.b32.xlu0 %v6008_v21, %s4562_s28  ;;  %v10086_v21 = vld [vmem:[#allocation186_spill] sm:$0xff] }
 0x27f   :  { %v6946_v40 = vpop.permute.xlu1 %1345 }
 0x280   :  { %v6951_v17 = vpop.permute.xlu0 %1343 }
 0x281   :  { %1461 = vrot.lane.b32.xlu1 %v6944_v53, %s4562_s28  ;;  %v10089_v53 = vld [vmem:[#allocation189_spill] sm:$0xff] }
 0x282   :  { %1459 = vrot.lane.b32.xlu0 %v6949_v58, %s4562_s28  ;;  %v10090_v58 = vld [vmem:[#allocation190_spill] sm:$0xff] }
 0x283   :  { %v6957_v15 = vpop.permute.xlu1 %1349 }
 0x284   :  { %v6959_v34 = vpop.permute.xlu0 %1347 }
 0x285   :  { %1533 = vrot.lane.b32.xlu1 %v10085_v3, %s4563_s29  ;;  %v10093_v3 = vld [vmem:[#allocation194_spill] sm:$0xff] }
 0x286   :  { %1531 = vrot.lane.b32.xlu0 %v10086_v21, %s4563_s29 }
 0x287   :  { %v6965_v52 = vpop.permute.xlu1 %1353 }
 0x288   :  { %10087 = vst [vmem:[#allocation185_spill] sm:$0xff] %v6965_v52  ;;  %v6967_v47 = vpop.permute.xlu0 %1351 }
 0x289   :  { %10088 = vst [vmem:[#allocation186_spill] sm:$0xff] %v6967_v47  ;;  %1537 = vrot.lane.b32.xlu1 %v10089_v53, %s4563_s29  ;;  %v10095_v47 = vld [vmem:[#allocation197_spill] sm:$0xff]  ;;  %v10096_v53 = vld [vmem:[#allocation198_spill] sm:$0xff] }
 0x28a   :  { %1535 = vrot.lane.b32.xlu0 %v10090_v58, %s4563_s29  ;;  %v2653_v58 = vld [vmem:[%s9241_s1 + $0x20] sm:$0xf] }
 0x28b   :  { %v6973_v8 = vpop.permute.xlu1 %1357  ;;  %4034 = vmatprep.subr.msk.mxu0 %vm2854_vm2, %v2653_v58  ;;  %4140 = vmatprep.subr.msk.mxu1 %vm2854_vm2, %v2653_v58 }
 0x28c   :  { %10091 = vst [vmem:[#allocation189_spill] sm:$0xff] %v6973_v8  ;;  %v6975_v62 = vpop.permute.xlu0 %1355  ;;  %4035 = vmatpush3.msk.msra.mxu0 %vm2854_vm2, %v2653_v58  ;;  %4145 = vmatpush3.msk.msra.mxu1 %vm2854_vm2, %v2653_v58 }
 0x28d   :  { %1541 = vrot.lane.b32.xlu1 %v10092_v55, %s4563_s29 }
 0x28e   :  { %1539 = vrot.lane.b32.xlu0 %v10093_v3, %s4563_s29  ;;  %v10099_v3 = vld [vmem:[#allocation201_spill] sm:$0xff] }
 0x28f   :  { %v6981_v21 = vpop.permute.xlu1 %1361 }
 0x290   :  { %10094 = vst [vmem:[#allocation190_spill] sm:$0xff] %v6981_v21  ;;  %v6983_v52 = vpop.permute.xlu0 %1359 }
 0x291   :  { %1545 = vrot.lane.b32.xlu1 %v10095_v47, %s4563_s29  ;;  %v2652_v47 = vld [vmem:[%s9241_s1 + $0x18] sm:$0xff] }
 0x292   :  { %1543 = vrot.lane.b32.xlu0 %v10096_v53, %s4563_s29  ;;  %v10100_v53 = vld [vmem:[#allocation202_spill] sm:$0xff]  ;;  %4036 = vmatprep.subr.mxu0 %v2652_v47 }
 0x293   :  { %v6992_v8 = vpop.permute.xlu1 %1365  ;;  %4037 = vmatpush3.msra.mxu0 %v2652_v47  ;;  %4141 = vmatprep.subr.mxu1 %v2652_v47 }
 0x294   :  { %10097 = vst [vmem:[#allocation193_spill] sm:$0xff] %v6992_v8  ;;  %v6994_v55 = vpop.permute.xlu0 %1363  ;;  %v2651_v8 = vld [vmem:[%s9241_s1 + $0x10] sm:$0xff]  ;;  %4146 = vmatpush3.msra.mxu1 %v2652_v47 }
 0x295   :  { %10098 = vst [vmem:[#allocation194_spill] sm:$0xff] %v6994_v55  ;;  %1549 = vrot.lane.b32.xlu1 %v10099_v3, %s4563_s29  ;;  %4038 = vmatprep.subr.mxu0 %v2651_v8  ;;  %v2650_v3 = vld [vmem:[%s9241_s1 + $0x8] sm:$0xff] }
 0x296   :  { %1547 = vrot.lane.b32.xlu0 %v10100_v53, %s4563_s29  ;;  %4039 = vmatpush3.msra.mxu0 %v2651_v8  ;;  %v10103_v53 = vld [vmem:[#allocation205_spill] sm:$0xff] }
 0x297   :  { %v7006_v21 = vpop.permute.xlu1 %1369  ;;  %4040 = vmatprep.subr.mxu0 %v2650_v3  ;;  %4142 = vmatprep.subr.mxu1 %v2651_v8 }
 0x298   :  { %10101 = vst [vmem:[#allocation197_spill] sm:$0xff] %v7006_v21  ;;  %v7008_v58 = vpop.permute.xlu0 %1367  ;;  %v2649_v21 = vld [vmem:[%s9241_s1] sm:$0xff]  ;;  %4041 = vmatpush3.msra.mxu0 %v2650_v3  ;;  %4147 = vmatpush3.msra.mxu1 %v2651_v8  ;;  %s4565_s1 = smov 32  }
 0x299   :  { %10102 = vst [vmem:[#allocation198_spill] sm:$0xff] %v7008_v58  ;;  %1595 = vrot.lane.b32.xlu1 %v6273_v16, %s4563_s29  ;;  %4042 = vmatprep.subr.mxu0 %v2649_v21  ;;  %v10106_v16 = vld [vmem:[#allocation228_spill] sm:$0xff] }
 0x29a   :  { %1551 = vrot.lane.b32.xlu0 %v10103_v53, %s4563_s29  ;;  %4043 = vmatpush3.msra.mxu0 %v2649_v21 }
 0x29b   :  { %v7020_v55 = vpop.permute.xlu1 %1373  ;;  %4143 = vmatprep.subr.mxu1 %v2650_v3 }
 0x29c   :  { %10104 = vst [vmem:[#allocation201_spill] sm:$0xff] %v7020_v55  ;;  %v7022_v47 = vpop.permute.xlu0 %1371  ;;  %4148 = vmatpush3.msra.mxu1 %v2650_v3 }
 0x29d   :  { %10105 = vst [vmem:[#allocation202_spill] sm:$0xff] %v7022_v47  ;;  %1735 = vrot.lane.b32.xlu1 %v9874_v41, %s4564_s14  ;;  %4144 = vmatprep.subr.mxu1 %v2649_v21  ;;  %v10145_v47 = vld [vmem:[#allocation106_spill] sm:$0xff] }
 0x29e   :  { %1597 = vrot.lane.b32.xlu0 %v10106_v16, %s4563_s29  ;;  %4149 = vmatpush3.msra.mxu1 %v2649_v21 }
 0x29f   :  { %v7028_v53 = vpop.permute.xlu1 %1377 }
 0x2a0   :  { %10107 = vst [vmem:[#allocation205_spill] sm:$0xff] %v7028_v53  ;;  %v7030_v58 = vpop.permute.xlu0 %1375  ;;  %v10144_v53 = vld [vmem:[#allocation17_spill] sm:$0xff] }
 0x2a1   :  { %10108 = vst [vmem:[#allocation228_spill] sm:$0xff] %v7030_v58  ;;  %1737 = vrot.lane.b32.xlu1 %v9873_v50, %s4564_s14 }
 0x2a2   :  { %1799 = vrot.lane.b32.xlu0 %v9938_v51, %s4564_s14 }
 0x2a3   :  { %v7036_v8 = vpop.permute.xlu1 %1381 }
 0x2a4   :  { %10109 = vst [vmem:[#allocation347_spill] sm:$0xff] %v7036_v8  ;;  %v7038_v41 = vpop.permute.xlu0 %1379 }
 0x2a5   :  { %10110 = vst [vmem:[#allocation348_spill] sm:$0xff] %v7038_v41  ;;  %1937 = vrot.lane.b32.xlu1 %v5523_v10, %s4565_s1  ;;  %v7059_v10 = vld [vmem:[%s9240_s0 + $0x1f8] sm:$0xff] }
 0x2a6   :  { %1801 = vrot.lane.b32.xlu0 %v9937_v32, %s4564_s14 }
 0x2a7   :  { %v7044_v3 = vpop.permute.xlu1 %1385 }
 0x2a8   :  { %10111 = vst [vmem:[#allocation349_spill] sm:$0xff] %v7044_v3  ;;  %v7046_v16 = vpop.permute.xlu0 %1383 }
 0x2a9   :  { %10112 = vst [vmem:[#allocation350_spill] sm:$0xff] %v7046_v16  ;;  %1939 = vrot.lane.b32.xlu1 %v5516_v5, %s4565_s1 }
 0x2aa   :  { %2001 = vrot.lane.b32.xlu0 %v10040_v27, %s4565_s1  ;;  %v7074_v27 = vld [vmem:[%s9240_s0 + $0x200] sm:$0xff] }
 0x2ab   :  { %v7052_v51 = vpop.permute.xlu1 %1389 }
 0x2ac   :  { %10113 = vst [vmem:[#allocation351_spill] sm:$0xff] %v7052_v51  ;;  %v7054_v50 = vpop.permute.xlu0 %1387 }
 0x2ad   :  { %10114 = vst [vmem:[#allocation352_spill] sm:$0xff] %v7054_v50  ;;  %1599 = vrot.lane.b32.xlu1 %v7059_v10, %s4563_s29 }
 0x2ae   :  { %2003 = vrot.lane.b32.xlu0 %v10039_v59, %s4565_s1 }
 0x2af   :  { %v7065_v32 = vpop.permute.xlu1 %1393 }
 0x2b0   :  { %10115 = vst [vmem:[#allocation353_spill] sm:$0xff] %v7065_v32  ;;  %v7067_v5 = vpop.permute.xlu0 %1391 }
 0x2b1   :  { %10116 = vst [vmem:[#allocation354_spill] sm:$0xff] %v7067_v5  ;;  %1739 = vrot.lane.b32.xlu1 %v9878_v56, %s4564_s14 }
 0x2b2   :  { %1601 = vrot.lane.b32.xlu0 %v7074_v27, %s4563_s29 }
 0x2b3   :  { %v7078_v21 = vpop.permute.xlu1 %1397 }
 0x2b4   :  { %10117 = vst [vmem:[#allocation355_spill] sm:$0xff] %v7078_v21  ;;  %v7080_v51 = vpop.permute.xlu0 %1395 }
 0x2b5   :  { %10118 = vst [vmem:[#allocation356_spill] sm:$0xff] %v7080_v51  ;;  %1741 = vrot.lane.b32.xlu1 %v9877_v19, %s4564_s14 }
 0x2b6   :  { %1803 = vrot.lane.b32.xlu0 %v9942_v35, %s4564_s14 }
 0x2b7   :  { %v7086_v59 = vpop.permute.xlu1 %1401 }
 0x2b8   :  { %v7088_v56 = vpop.permute.xlu0 %1399 }
 0x2b9   :  { %1941 = vrot.lane.b32.xlu1 %v5540_v1, %s4565_s1  ;;  %v7109_v1 = vld [vmem:[%s9240_s0 + $0x210] sm:$0xff] }
 0x2ba   :  { %1805 = vrot.lane.b32.xlu0 %v9941_v43, %s4564_s14 }
 0x2bb   :  { %v7094_v32 = vpop.permute.xlu1 %1405 }
 0x2bc   :  { %v7096_v21 = vpop.permute.xlu0 %1403 }
 0x2bd   :  { %1943 = vrot.lane.b32.xlu1 %v5533_v2, %s4565_s1 }
 0x2be   :  { %2005 = vrot.lane.b32.xlu0 %v10044_v63, %s4565_s1  ;;  %v7124_v63 = vld [vmem:[%s9240_s0 + $0x218] sm:$0xff] }
 0x2bf   :  { %v7102_v19 = vpop.permute.xlu1 %1409 }
 0x2c0   :  { %v7104_v35 = vpop.permute.xlu0 %1407 }
 0x2c1   :  { %1603 = vrot.lane.b32.xlu1 %v7109_v1, %s4563_s29 }
 0x2c2   :  { %2007 = vrot.lane.b32.xlu0 %v10043_v12, %s4565_s1 }
 0x2c3   :  { %v7115_v43 = vpop.permute.xlu1 %1413 }
 0x2c4   :  { %v7117_v2 = vpop.permute.xlu0 %1411 }
 0x2c5   :  { %1743 = vrot.lane.b32.xlu1 %v9882_v44, %s4564_s14 }
 0x2c6   :  { %1605 = vrot.lane.b32.xlu0 %v7124_v63, %s4563_s29 }
 0x2c7   :  { %v7128_v51 = vpop.permute.xlu1 %1417 }
 0x2c8   :  { %v7130_v5 = vpop.permute.xlu0 %1415 }
 0x2c9   :  { %1745 = vrot.lane.b32.xlu1 %v9881_v49, %s4564_s14 }
 0x2ca   :  { %1807 = vrot.lane.b32.xlu0 %v9946_v29, %s4564_s14 }
 0x2cb   :  { %v7136_v12 = vpop.permute.xlu1 %1421 }
 0x2cc   :  { %v7138_v44 = vpop.permute.xlu0 %1419 }
 0x2cd   :  { %1945 = vrot.lane.b32.xlu1 %v5557_v11, %s4565_s1  ;;  %v7159_v11 = vld [vmem:[%s9240_s0 + $0x228] sm:$0xff] }
 0x2ce   :  { %1809 = vrot.lane.b32.xlu0 %v9945_v4, %s4564_s14 }
 0x2cf   :  { %v7144_v50 = vpop.permute.xlu1 %1425 }
 0x2d0   :  { %v7146_v3 = vpop.permute.xlu0 %1423 }
 0x2d1   :  { %1947 = vrot.lane.b32.xlu1 %v5550_v14, %s4565_s1 }
 0x2d2   :  { %2009 = vrot.lane.b32.xlu0 %v10048_v13, %s4565_s1  ;;  %v7174_v13 = vld [vmem:[%s9240_s0 + $0x230] sm:$0xff] }
 0x2d3   :  { %v7152_v29 = vpop.permute.xlu1 %1429 }
 0x2d4   :  { %10119 = vst [vmem:[#allocation357_spill] sm:$0xff] %v7152_v29  ;;  %v7154_v49 = vpop.permute.xlu0 %1427 }
 0x2d5   :  { %10120 = vst [vmem:[#allocation358_spill] sm:$0xff] %v7154_v49  ;;  %1607 = vrot.lane.b32.xlu1 %v7159_v11, %s4563_s29 }
 0x2d6   :  { %2011 = vrot.lane.b32.xlu0 %v10047_v33, %s4565_s1 }
 0x2d7   :  { %v7165_v4 = vpop.permute.xlu1 %1433 }
 0x2d8   :  { %10121 = vst [vmem:[#allocation359_spill] sm:$0xff] %v7165_v4  ;;  %v7167_v14 = vpop.permute.xlu0 %1431 }
 0x2d9   :  { %10122 = vst [vmem:[#allocation360_spill] sm:$0xff] %v7167_v14  ;;  %1747 = vrot.lane.b32.xlu1 %v9886_v61, %s4564_s14 }
 0x2da   :  { %1609 = vrot.lane.b32.xlu0 %v7174_v13, %s4563_s29 }
 0x2db   :  { %v7178_v16 = vpop.permute.xlu1 %1437 }
 0x2dc   :  { %10123 = vst [vmem:[#allocation361_spill] sm:$0xff] %v7178_v16  ;;  %v7180_v8 = vpop.permute.xlu0 %1435 }
 0x2dd   :  { %10124 = vst [vmem:[#allocation362_spill] sm:$0xff] %v7180_v8  ;;  %1749 = vrot.lane.b32.xlu1 %v9885_v42, %s4564_s14 }
 0x2de   :  { %1811 = vrot.lane.b32.xlu0 %v9950_v60, %s4564_s14 }
 0x2df   :  { %v7186_v33 = vpop.permute.xlu1 %1441 }
 0x2e0   :  { %10125 = vst [vmem:[#allocation363_spill] sm:$0xff] %v7186_v33  ;;  %v7188_v61 = vpop.permute.xlu0 %1439  ;;  %v10143_v33 = vld [vmem:[#allocation73_spill] sm:$0xff] }
 0x2e1   :  { %10126 = vst [vmem:[#allocation364_spill] sm:$0xff] %v7188_v61  ;;  %1949 = vrot.lane.b32.xlu1 %v5574_v22, %s4565_s1  ;;  %v7209_v22 = vld [vmem:[%s9240_s0 + $0x240] sm:$0xff] }
 0x2e2   :  { %1813 = vrot.lane.b32.xlu0 %v9949_v24, %s4564_s14 }
 0x2e3   :  { %v7194_v41 = vpop.permute.xlu1 %1445 }
 0x2e4   :  { %10127 = vst [vmem:[#allocation365_spill] sm:$0xff] %v7194_v41  ;;  %v7196_v58 = vpop.permute.xlu0 %1443  ;;  %v10142_v41 = vld [vmem:[#allocation18_spill] sm:$0xff] }
 0x2e5   :  { %10128 = vst [vmem:[#allocation366_spill] sm:$0xff] %v7196_v58  ;;  %1951 = vrot.lane.b32.xlu1 %v5567_v23, %s4565_s1 }
 0x2e6   :  { %2013 = vrot.lane.b32.xlu0 %v10052_v7, %s4565_s1  ;;  %v7224_v7 = vld [vmem:[%s9240_s0 + $0x248] sm:$0xff] }
 0x2e7   :  { %v7202_v42 = vpop.permute.xlu1 %1449 }
 0x2e8   :  { %10129 = vst [vmem:[#allocation367_spill] sm:$0xff] %v7202_v42  ;;  %v7204_v60 = vpop.permute.xlu0 %1447 }
 0x2e9   :  { %10130 = vst [vmem:[#allocation368_spill] sm:$0xff] %v7204_v60  ;;  %1611 = vrot.lane.b32.xlu1 %v7209_v22, %s4563_s29 }
 0x2ea   :  { %2015 = vrot.lane.b32.xlu0 %v10051_v18, %s4565_s1 }
 0x2eb   :  { %v7215_v24 = vpop.permute.xlu1 %1453 }
 0x2ec   :  { %10131 = vst [vmem:[#allocation369_spill] sm:$0xff] %v7215_v24  ;;  %v7217_v23 = vpop.permute.xlu0 %1451  ;;  %v10137_v24 = vld [vmem:[#allocation68_spill] sm:$0xff] }
 0x2ed   :  { %10132 = vst [vmem:[#allocation370_spill] sm:$0xff] %v7217_v23  ;;  %1751 = vrot.lane.b32.xlu1 %v9890_v48, %s4564_s14 }
 0x2ee   :  { %1613 = vrot.lane.b32.xlu0 %v7224_v7, %s4563_s29 }
 0x2ef   :  { %v7228_v42 = vpop.permute.xlu1 %1457 }
 0x2f0   :  { %10133 = vst [vmem:[#allocation371_spill] sm:$0xff] %v7228_v42  ;;  %v7230_v60 = vpop.permute.xlu0 %1455 }
 0x2f1   :  { %10134 = vst [vmem:[#allocation372_spill] sm:$0xff] %v7230_v60  ;;  %1753 = vrot.lane.b32.xlu1 %v9889_v36, %s4564_s14  ;;  %v10141_v60 = vld [vmem:[#allocation74_spill] sm:$0xff] }
 0x2f2   :  { %1815 = vrot.lane.b32.xlu0 %v9954_v45, %s4564_s14 }
 0x2f3   :  { %v7236_v18 = vpop.permute.xlu1 %1461 }
 0x2f4   :  { %10135 = vst [vmem:[#allocation373_spill] sm:$0xff] %v7236_v18  ;;  %v7238_v48 = vpop.permute.xlu0 %1459  ;;  %v7277_v18 = vld [vmem:[%s9240_s0 + $0xb0] sm:$0xff] }
 0x2f5   :  { %10136 = vst [vmem:[#allocation374_spill] sm:$0xff] %v7238_v48  ;;  %1953 = vrot.lane.b32.xlu1 %v5591_v30, %s4565_s1  ;;  %v7257_v30 = vld [vmem:[%s9240_s0 + $0x258] sm:$0xff]  ;;  %10140 = vst [vmem:[#allocation376_spill] sm:$0xff] %v7277_v18 }
 0x2f6   :  { %1817 = vrot.lane.b32.xlu0 %v10137_v24, %s4564_s14  ;;  %10138 = vst [vmem:[#allocation68_spill] sm:$0xff] %v7257_v30 }
 0x2f7   :  { %v7244_v23 = vpop.permute.xlu1 %1533 }
 0x2f8   :  { %v1532_v42 = vpop.permute.xlu0 %1531 }
 0x2f9   :  { %1955 = vrot.lane.b32.xlu1 %v5584_v31, %s4565_s1 }
 0x2fa   :  { %2017 = vrot.lane.b32.xlu0 %v10056_v54, %s4565_s1  ;;  %v7270_v54 = vld [vmem:[%s9240_s0 + $0x260] sm:$0xff] }
 0x2fb   :  { %v7250_v45 = vpop.permute.xlu1 %1537  ;;  %10139 = vst [vmem:[#allocation375_spill] sm:$0xff] %v7270_v54 }
 0x2fc   :  { %v7252_v36 = vpop.permute.xlu0 %1535 }
 0x2fd   :  { %1615 = vrot.lane.b32.xlu1 %v7257_v30, %s4563_s29 }
 0x2fe   :  { %2019 = vrot.lane.b32.xlu0 %v10055_v25, %s4565_s1 }
 0x2ff   :  { %v7263_v24 = vpop.permute.xlu1 %1541 }
 0x300   :  { %v7265_v31 = vpop.permute.xlu0 %1539 }
 0x301   :  { %1617 = vrot.lane.b32.xlu1 %v7270_v54, %s4563_s29 }
 0x302   :  { %1553 = vrot.lane.b32.xlu0 %v7277_v18, %s4563_s29  ;;  %v10154_v18 = vld [vmem:[#allocation251_spill] sm:$0xff] }
 0x303   :  { %v7281_v25 = vpop.permute.xlu1 %1545 }
 0x304   :  { %v7283_v48 = vpop.permute.xlu0 %1543 }
 0x305   :  { %1819 = vrot.lane.b32.xlu1 %v10141_v60, %s4564_s14 }
 0x306   :  { %1755 = vrot.lane.b32.xlu0 %v10142_v41, %s4564_s14 }
 0x307   :  { %v7289_v58 = vpop.permute.xlu1 %1549 }
 0x308   :  { %v7291_v61 = vpop.permute.xlu0 %1547 }
 0x309   :  { %1821 = vrot.lane.b32.xlu1 %v10143_v33, %s4564_s14  ;;  %v4461_v33 = vld [vmem:[%s9240_s0] sm:$0xff] }
 0x30a   :  { %1757 = vrot.lane.b32.xlu0 %v10144_v53, %s4564_s14  ;;  %v2130_v53 = vsel %vm2129_vm3, %v4461_v33, %v10145_v47  ;;  %v10148_v33 = vld [vmem:[#allocation110_spill] sm:$0xff] }
 0x30b   :  { %v1596_v55 = vpop.permute.xlu1 %1595 }
 0x30c   :  { %v7297_v16 = vpop.permute.xlu0 %1551 }
 0x30d   :  { %2021 = vrot.lane.b32.xlu1 %v10060_v57, %s4565_s1  ;;  %v10146_v57 = vld [vmem:[#allocation102_spill] sm:$0xff] }
 0x30e   :  { %1957 = vrot.lane.b32.xlu0 %v5608_v38, %s4565_s1  ;;  %v2195_v8 = vsel %vm2194_vm4, %v2130_v53, %v10146_v57  ;;  %v10147_v38 = vld [vmem:[#allocation252_spill] sm:$0xff] }
 0x30f   :  { %v1736_v41 = vpop.permute.xlu1 %1735  ;;  %v2260_v4 = vsel %vm2259_vm5, %v2195_v8, %v10147_v38  ;;  %v7328_v8 = vld [vmem:[%s9240_s0 + $0x270] sm:$0xff]  ;;  %v10151_v38 = vld [vmem:[#allocation100_spill] sm:$0xff] }
 0x310   :  { %v1598_v60 = vpop.permute.xlu0 %1597  ;;  %v2325_v29 = vsel %vm2324_vm6, %v2260_v4, %v6652_v9  ;;  %10149 = vst [vmem:[#allocation74_spill] sm:$0xff] %v7328_v8  ;;  %v4464_v9 = vld [vmem:[%s9240_s0 + $0x1b0] sm:$0xff]  ;;  %v10150_v4 = vld [vmem:[#allocation154_spill] sm:$0xff] }
 0x311   :  { %2023 = vrot.lane.b32.xlu1 %v10059_v37, %s4565_s1  ;;  %v4462_v37 = vld [vmem:[%s9240_s0 + $0x8] sm:$0xff]  ;;  %v2162_v57 = vsel %vm2129_vm3, %v4464_v9, %v10150_v4 }
 0x312   :  { %1959 = vrot.lane.b32.xlu0 %v5601_v39, %s4565_s1  ;;  %v2131_v53 = vsel %vm2129_vm3, %v4462_v37, %v10148_v33  ;;  %v2390_v39 = vsel %vm2389_vm7, %v2325_v29, %v6926_v46  ;;  %v7343_v29 = vld [vmem:[%s9240_s0 + $0xc0] sm:$0xff]  ;;  %v10153_v33 = vld [vmem:[#allocation219_spill] sm:$0xff] }
 0x313   :  { %v1738_v14 = vpop.permute.xlu1 %1737  ;;  %v2196_v37 = vsel %vm2194_vm4, %v2131_v53, %v10151_v38  ;;  %v2455_v46 = vsel %vm2454_vm8, %v2390_v39, %v1532_v42  ;;  %10152 = vst [vmem:[#allocation18_spill] sm:$0xff] %v7343_v29  ;;  %v10155_v38 = vld [vmem:[#allocation272_spill] sm:$0xff]  ;;  %v10156_v39 = vld [vmem:[#allocation294_spill] sm:$0xff] }
 0x314   :  { %v1800_v47 = vpop.permute.xlu0 %1799  ;;  %v2261_v9 = vsel %vm2259_vm5, %v2196_v37, %v10154_v18  ;;  %v2520_v4 = vsel %vm2519_vm9, %v2455_v46, %v1736_v41  ;;  %v7364_v18 = vld [vmem:[%s9240_s0 + $0x278] sm:$0xff]  ;;  %v7381_v37 = vld [vmem:[%s9240_s0 + $0xc8] sm:$0xff] }
 0x315   :  { %1619 = vrot.lane.b32.xlu1 %v7328_v8, %s4563_s29  ;;  %v2227_v8 = vsel %vm2194_vm4, %v2162_v57, %v10153_v33  ;;  %v2326_v49 = vsel %vm2324_vm6, %v2261_v9, %v10156_v39  ;;  %v4467_v41 = vld [vmem:[%s9240_s0 + $0x1b8] sm:$0xff] }
 0x316   :  { %1555 = vrot.lane.b32.xlu0 %v7343_v29, %s4563_s29  ;;  %v2292_v42 = vsel %vm2259_vm5, %v2227_v8, %v10155_v38  ;;  %v2391_v57 = vsel %vm2389_vm7, %v2326_v49, %v6924_v6  ;;  %v10157_v8 = vld [vmem:[#allocation152_spill] sm:$0xff] }
 0x317   :  { %v1938_v53 = vpop.permute.xlu1 %1937  ;;  %v2357_v29 = vsel %vm2324_vm6, %v2292_v42, %v6789_v0  ;;  %v2163_v0 = vsel %vm2129_vm3, %v4467_v41, %v10157_v8  ;;  %v2456_v49 = vsel %vm2454_vm8, %v2391_v57, %v7244_v23  ;;  %v10160_v42 = vld [vmem:[#allocation327_spill] sm:$0xff]  ;;  %v10162_v41 = vld [vmem:[#allocation20_spill] sm:$0xff] }
 0x318   :  { %v1802_v54 = vpop.permute.xlu0 %1801  ;;  %v2585_v30 = vsel %vm2584_vm10, %v2520_v4, %v1938_v53  ;;  %v2422_v6 = vsel %vm2389_vm7, %v2357_v29, %v7088_v56  ;;  %v2521_v9 = vsel %vm2519_vm9, %v2456_v49, %v1738_v14  ;;  %v10159_v56 = vld [vmem:[#allocation271_spill] sm:$0xff] }
 0x319   :  { %1621 = vrot.lane.b32.xlu1 %v7364_v18, %s4563_s29  ;;  %4044 = vmatprep.mubr.msk.f32.mxu0 %vm2661_vm11, %v2585_v30  ;;  %v10158_v30 = vld [vmem:[#allocation218_spill] sm:$0xff]  ;;  %v2487_v33 = vsel %vm2454_vm8, %v2422_v6, %v1596_v55  ;;  %v10161_v57 = vld [vmem:[#allocation79_spill] sm:$0xff] }
 0x31a   :  { %1557 = vrot.lane.b32.xlu0 %v7381_v37, %s4563_s29  ;;  %v2228_v46 = vsel %vm2194_vm4, %v2163_v0, %v10158_v30  ;;  %v2552_v23 = vsel %vm2519_vm9, %v2487_v33, %v1800_v47  ;;  %v10163_v30 = vld [vmem:[#allocation78_spill] sm:$0xff] }
 0x31b   :  { %v1940_v4 = vpop.permute.xlu1 %1939  ;;  %v2293_v29 = vsel %vm2259_vm5, %v2228_v46, %v10159_v56  ;;  %v10164_v46 = vld [vmem:[#allocation19_spill] sm:$0xff]  ;;  %v10167_v56 = vld [vmem:[#allocation176_spill] sm:$0xff] }
 0x31c   :  { %v2586_v53 = vsel %vm2584_vm10, %v2521_v9, %v1940_v4  ;;  %v2002_v38 = vpop.permute.xlu0 %2001  ;;  %v2358_v39 = vsel %vm2324_vm6, %v2293_v29, %v10160_v42  ;;  %v10165_v9 = vld [vmem:[#allocation104_spill] sm:$0xff] }
 0x31d   :  { %1823 = vrot.lane.b32.xlu1 %v10161_v57, %s4564_s14  ;;  %4045 = vmatmul.mubr.msk.f32.vlgmr.msra.gmra.mxu0 %vm2661_vm11, %v2586_v53  ;;  %v2617_v55 = vsel %vm2584_vm10, %v2552_v23, %v2002_v38  ;;  %v2423_v14 = vsel %vm2389_vm7, %v2358_v39, %v7086_v59  ;;  %v10166_v4 = vld [vmem:[#allocation76_spill] sm:$0xff]  ;;  %v10168_v23 = vld [vmem:[#allocation133_spill] sm:$0xff]  ;;  %v10169_v53 = vld [vmem:[#allocation254_spill] sm:$0xff] }
 0x31e   :  { %1759 = vrot.lane.b32.xlu0 %v10162_v41, %s4564_s14  ;;  %4092 = vmatprep.mubr.msk.f32.mxu1 %vm2661_vm11, %v2617_v55  ;;  %v2488_v47 = vsel %vm2454_vm8, %v2423_v14, %v1598_v60  ;;  %v4469_v60 = vld [vmem:[%s9240_s0 + $0x18] sm:$0xff]  ;;  %v4470_v14 = vld [vmem:[%s9240_s0 + $0x20] sm:$0xff] }
 0x31f   :  { %v1600_v8 = vpop.permute.xlu1 %1599  ;;  %v2553_v0 = vsel %vm2519_vm9, %v2488_v47, %v1802_v54  ;;  %v2132_v54 = vsel %vm2129_vm3, %v4469_v60, %v10165_v9  ;;  %v10170_v39 = vld [vmem:[#allocation296_spill] sm:$0xff]  ;;  %v10174_v60 = vld [vmem:[#allocation174_spill] sm:$0xff] }
 0x320   :  { %v2004_v6 = vpop.permute.xlu0 %2003  ;;  %v2197_v29 = vsel %vm2194_vm4, %v2132_v54, %v10167_v56  ;;  %v10171_v41 = vld [vmem:[#allocation108_spill] sm:$0xff] }
 0x321   :  { %v2618_v49 = vsel %vm2584_vm10, %v2553_v0, %v2004_v6  ;;  %1825 = vrot.lane.b32.xlu1 %v10163_v30, %s4564_s14  ;;  %v2262_v38 = vsel %vm2259_vm5, %v2197_v29, %v10169_v53  ;;  %v2133_v47 = vsel %vm2129_vm3, %v4470_v14, %v10171_v41  ;;  %v10172_v6 = vld [vmem:[#allocation167_spill] sm:$0xff]  ;;  %v10173_v30 = vld [vmem:[#allocation158_spill] sm:$0xff]  ;;  %v10177_v29 = vld [vmem:[#allocation253_spill] sm:$0xff] }
 0x322   :  { %1761 = vrot.lane.b32.xlu0 %v10164_v46, %s4564_s14  ;;  %4093 = vmatmul.mubr.msk.f32.vlgmr.msra.gmra.mxu1 %vm2661_vm11, %v2618_v49  ;;  %v2327_v57 = vsel %vm2324_vm6, %v2262_v38, %v10170_v39  ;;  %v4471_v49 = vld [vmem:[%s9240_s0 + $0x1c8] sm:$0xff]  ;;  %v2198_v9 = vsel %vm2194_vm4, %v2133_v47, %v10174_v60  ;;  %v10179_v14 = vld [vmem:[#allocation295_spill] sm:$0xff] }
 0x323   :  { %v1740_v59 = vpop.permute.xlu1 %1739  ;;  %v2392_v0 = vsel %vm2389_vm7, %v2327_v57, %v6937_v20  ;;  %v2164_v46 = vsel %vm2129_vm3, %v4471_v49, %v10173_v30  ;;  %v10176_v20 = vld [vmem:[#allocation221_spill] sm:$0xff]  ;;  %v10178_v39 = vld [vmem:[#allocation274_spill] sm:$0xff]  ;;  %v4473_v30 = vld [vmem:[%s9240_s0 + $0x1d0] sm:$0xff] }
 0x324   :  { %v1602_v33 = vpop.permute.xlu0 %1601  ;;  %v2457_v54 = vsel %vm2454_vm8, %v2392_v0, %v7252_v36  ;;  %v2229_v56 = vsel %vm2194_vm4, %v2164_v46, %v10176_v20  ;;  %v10180_v0 = vld [vmem:[#allocation329_spill] sm:$0xff]  ;;  %v10181_v46 = vld [vmem:[#allocation156_spill] sm:$0xff] }
 0x325   :  { %2025 = vrot.lane.b32.xlu1 %v10166_v4, %s4565_s1  ;;  %v10175_v4 = vld [vmem:[#allocation131_spill] sm:$0xff]  ;;  %v2522_v53 = vsel %vm2519_vm9, %v2457_v54, %v1740_v59  ;;  %v2294_v57 = vsel %vm2259_vm5, %v2229_v56, %v10178_v39  ;;  %v7464_v59 = vld [vmem:[%s9240_s0 + $0x288] sm:$0xff]  ;;  %v2165_v60 = vsel %vm2129_vm3, %v4473_v30, %v10181_v46  ;;  %v7481_v54 = vld [vmem:[%s9240_s0 + $0xd8] sm:$0xff] }
 0x326   :  { %1961 = vrot.lane.b32.xlu0 %v10168_v23, %s4565_s1  ;;  %v2263_v23 = vsel %vm2259_vm5, %v2198_v9, %v10177_v29  ;;  %v10186_v46 = vld [vmem:[#allocation22_spill] sm:$0xff] }
 0x327   :  { %v1742_v42 = vpop.permute.xlu1 %1741  ;;  %v2328_v41 = vsel %vm2324_vm6, %v2263_v23, %v10179_v14 }
 0x328   :  { %v1804_v55 = vpop.permute.xlu0 %1803  ;;  %v2393_v49 = vsel %vm2389_vm7, %v2328_v41, %v6935_v26 }
 0x329   :  { %2027 = vrot.lane.b32.xlu1 %v10172_v6, %s4565_s1  ;;  %v2359_v6 = vsel %vm2324_vm6, %v2294_v57, %v10180_v0  ;;  %v2458_v9 = vsel %vm2454_vm8, %v2393_v49, %v7250_v45  ;;  %v10184_v57 = vld [vmem:[#allocation328_spill] sm:$0xff] }
 0x32a   :  { %1963 = vrot.lane.b32.xlu0 %v10175_v4, %s4565_s1  ;;  %v2424_v26 = vsel %vm2389_vm7, %v2359_v6, %v7096_v21  ;;  %v10182_v4 = vld [vmem:[#allocation220_spill] sm:$0xff]  ;;  %v2523_v29 = vsel %vm2519_vm9, %v2458_v9, %v1742_v42  ;;  %v10183_v21 = vld [vmem:[#allocation273_spill] sm:$0xff]  ;;  %v10187_v9 = vld [vmem:[#allocation114_spill] sm:$0xff] }
 0x32b   :  { %v1942_v38 = vpop.permute.xlu1 %1941  ;;  %v2230_v20 = vsel %vm2194_vm4, %v2165_v60, %v10182_v4  ;;  %v2489_v56 = vsel %vm2454_vm8, %v2424_v26, %v1600_v8  ;;  %v7499_v8 = vld [vmem:[%s9240_s0 + $0x290] sm:$0xff] }
 0x32c   :  { %v2587_v36 = vsel %vm2584_vm10, %v2522_v53, %v1942_v38  ;;  %v1806_v47 = vpop.permute.xlu0 %1805  ;;  %v2295_v53 = vsel %vm2259_vm5, %v2230_v20, %v10183_v21  ;;  %v2554_v45 = vsel %vm2519_vm9, %v2489_v56, %v1804_v55  ;;  %v7509_v55 = vld [vmem:[%s9240_s0 + $0xe0] sm:$0xff]  ;;  %v10188_v4 = vld [vmem:[#allocation83_spill] sm:$0xff]  ;;  %v10189_v20 = vld [vmem:[#allocation180_spill] sm:$0xff] }
 0x32d   :  { %1623 = vrot.lane.b32.xlu1 %v7464_v59, %s4563_s29  ;;  %4047 = vmatprep.mubr.msk.f32.mxu0 %vm2661_vm11, %v2587_v36  ;;  %v2360_v14 = vsel %vm2324_vm6, %v2295_v53, %v10184_v57  ;;  %v4478_v57 = vld [vmem:[%s9240_s0 + $0x38] sm:$0xff] }
 0x32e   :  { %1559 = vrot.lane.b32.xlu0 %v7481_v54, %s4563_s29  ;;  %v2425_v42 = vsel %vm2389_vm7, %v2360_v14, %v7094_v32  ;;  %v10185_v32 = vld [vmem:[#allocation84_spill] sm:$0xff] }
 0x32f   :  { %v1944_v23 = vpop.permute.xlu1 %1943  ;;  %v2490_v36 = vsel %vm2454_vm8, %v2425_v42, %v1602_v33  ;;  %v4477_v33 = vld [vmem:[%s9240_s0 + $0x30] sm:$0xff]  ;;  %v10193_v14 = vld [vmem:[#allocation112_spill] sm:$0xff] }
 0x330   :  { %v2588_v38 = vsel %vm2584_vm10, %v2523_v29, %v1944_v23  ;;  %v2006_v39 = vpop.permute.xlu0 %2005  ;;  %v2555_v6 = vsel %vm2519_vm9, %v2490_v36, %v1806_v47  ;;  %v2134_v47 = vsel %vm2129_vm3, %v4477_v33, %v10187_v9  ;;  %v10190_v29 = vld [vmem:[#allocation21_spill] sm:$0xff]  ;;  %v10191_v23 = vld [vmem:[#allocation256_spill] sm:$0xff] }
 0x331   :  { %v2619_v41 = vsel %vm2584_vm10, %v2554_v45, %v2006_v39  ;;  %1625 = vrot.lane.b32.xlu1 %v7499_v8, %s4563_s29  ;;  %4048 = vmatmul.mubr.msk.f32.gmra.mxu0 %vm2661_vm11, %v2588_v38  ;;  %v2199_v56 = vsel %vm2194_vm4, %v2134_v47, %v10189_v20  ;;  %v10192_v45 = vld [vmem:[#allocation300_spill] sm:$0xff]  ;;  %v10194_v36 = vld [vmem:[#allocation81_spill] sm:$0xff] }
 0x332   :  { %1561 = vrot.lane.b32.xlu0 %v7509_v55, %s4563_s29  ;;  %4095 = vmatprep.mubr.msk.f32.mxu1 %vm2661_vm11, %v2619_v41  ;;  %v2264_v21 = vsel %vm2259_vm5, %v2199_v56, %v10191_v23  ;;  %v2135_v41 = vsel %vm2129_vm3, %v4478_v57, %v10193_v14  ;;  %v10197_v9 = vld [vmem:[#allocation137_spill] sm:$0xff]  ;;  %v10200_v23 = vld [vmem:[#allocation278_spill] sm:$0xff] }
 0x333   :  { %v1604_v0 = vpop.permute.xlu1 %1603  ;;  %v2329_v38 = vsel %vm2324_vm6, %v2264_v21, %v10192_v45  ;;  %v10201_v45 = vld [vmem:[#allocation298_spill] sm:$0xff]  ;;  %v10202_v14 = vld [vmem:[#allocation333_spill] sm:$0xff] }
 0x334   :  { %v2008_v49 = vpop.permute.xlu0 %2007  ;;  %v2394_v42 = vsel %vm2389_vm7, %v2329_v38, %v6951_v17  ;;  %v10198_v17 = vld [vmem:[#allocation223_spill] sm:$0xff] }
 0x335   :  { %v2620_v30 = vsel %vm2584_vm10, %v2555_v6, %v2008_v49  ;;  %1827 = vrot.lane.b32.xlu1 %v10185_v32, %s4564_s14  ;;  %v4479_v6 = vld [vmem:[%s9240_s0 + $0x1e0] sm:$0xff]  ;;  %v10195_v49 = vld [vmem:[#allocation34_spill] sm:$0xff]  ;;  %v2459_v33 = vsel %vm2454_vm8, %v2394_v42, %v7265_v31 }
 0x336   :  { %1763 = vrot.lane.b32.xlu0 %v10186_v46, %s4564_s14  ;;  %4096 = vmatmul.mubr.msk.f32.gmra.mxu1 %vm2661_vm11, %v2620_v30  ;;  %v2166_v30 = vsel %vm2129_vm3, %v4479_v6, %v10195_v49  ;;  %v10196_v32 = vld [vmem:[#allocation178_spill] sm:$0xff]  ;;  %v10204_v6 = vld [vmem:[#allocation33_spill] sm:$0xff] }
 0x337   :  { %v1744_v60 = vpop.permute.xlu1 %1743  ;;  %v2200_v46 = vsel %vm2194_vm4, %v2135_v41, %v10196_v32  ;;  %v2231_v47 = vsel %vm2194_vm4, %v2166_v30, %v10198_v17 }
 0x338   :  { %v1606_v26 = vpop.permute.xlu0 %1605  ;;  %v2524_v56 = vsel %vm2519_vm9, %v2459_v33, %v1744_v60  ;;  %v2296_v21 = vsel %vm2259_vm5, %v2231_v47, %v10200_v23  ;;  %v4480_v60 = vld [vmem:[%s9240_s0 + $0x1e8] sm:$0xff] }
 0x339   :  { %1829 = vrot.lane.b32.xlu1 %v10188_v4, %s4564_s14  ;;  %v10199_v4 = vld [vmem:[#allocation255_spill] sm:$0xff]  ;;  %v2361_v41 = vsel %vm2324_vm6, %v2296_v21, %v10202_v14  ;;  %v2167_v49 = vsel %vm2129_vm3, %v4480_v60, %v10204_v6  ;;  %v10209_v60 = vld [vmem:[#allocation116_spill] sm:$0xff] }
 0x33a   :  { %1765 = vrot.lane.b32.xlu0 %v10190_v29, %s4564_s14  ;;  %v2265_v20 = vsel %vm2259_vm5, %v2200_v46, %v10199_v4  ;;  %v2426_v30 = vsel %vm2389_vm7, %v2361_v41, %v7104_v35  ;;  %v10206_v46 = vld [vmem:[#allocation222_spill] sm:$0xff]  ;;  %v10207_v4 = vld [vmem:[#allocation276_spill] sm:$0xff] }
 0x33b   :  { %v1746_v53 = vpop.permute.xlu1 %1745  ;;  %v2330_v38 = vsel %vm2324_vm6, %v2265_v20, %v10201_v45  ;;  %v2232_v33 = vsel %vm2194_vm4, %v2167_v49, %v10206_v46  ;;  %v10210_v49 = vld [vmem:[#allocation89_spill] sm:$0xff]  ;;  %v10213_v46 = vld [vmem:[#allocation258_spill] sm:$0xff] }
 0x33c   :  { %v1808_v39 = vpop.permute.xlu0 %1807  ;;  %v2395_v42 = vsel %vm2389_vm7, %v2330_v38, %v6946_v40  ;;  %v10205_v40 = vld [vmem:[#allocation135_spill] sm:$0xff]  ;;  %v2297_v20 = vsel %vm2259_vm5, %v2232_v33, %v10207_v4 }
 0x33d   :  { %2029 = vrot.lane.b32.xlu1 %v10194_v36, %s4565_s1  ;;  %v10203_v36 = vld [vmem:[#allocation168_spill] sm:$0xff]  ;;  %v2460_v32 = vsel %vm2454_vm8, %v2395_v42, %v7263_v24  ;;  %v10208_v24 = vld [vmem:[#allocation331_spill] sm:$0xff] }
 0x33e   :  { %1965 = vrot.lane.b32.xlu0 %v10197_v9, %s4565_s1  ;;  %v2491_v9 = vsel %vm2454_vm8, %v2426_v30, %v1604_v0  ;;  %v2525_v17 = vsel %vm2519_vm9, %v2460_v32, %v1746_v53  ;;  %v2362_v23 = vsel %vm2324_vm6, %v2297_v20, %v10208_v24  ;;  %v7599_v0 = vld [vmem:[%s9240_s0 + $0x2a0] sm:$0xff]  ;;  %v7627_v42 = vld [vmem:[%s9240_s0 + $0xf8] sm:$0xff]  ;;  %v10211_v30 = vld [vmem:[#allocation182_spill] sm:$0xff] }
 0x33f   :  { %v1946_v29 = vpop.permute.xlu1 %1945  ;;  %v2427_v53 = vsel %vm2389_vm7, %v2362_v23, %v7102_v19  ;;  %v7620_v19 = vld [vmem:[%s9240_s0 + $0x2a8] sm:$0xff]  ;;  %v4486_v20 = vld [vmem:[%s9240_s0 + $0x50] sm:$0xff]  ;;  %v10216_v24 = vld [vmem:[#allocation88_spill] sm:$0xff] }
 0x340   :  { %v2589_v31 = vsel %vm2584_vm10, %v2524_v56, %v1946_v29  ;;  %v1810_v57 = vpop.permute.xlu0 %1809  ;;  %v2556_v56 = vsel %vm2519_vm9, %v2491_v9, %v1808_v39  ;;  %v7609_v39 = vld [vmem:[%s9240_s0 + $0xf0] sm:$0xff]  ;;  %v2492_v45 = vsel %vm2454_vm8, %v2427_v53, %v1606_v26  ;;  %v10217_v23 = vld [vmem:[#allocation38_spill] sm:$0xff]  ;;  %v10218_v53 = vld [vmem:[#allocation181_spill] sm:$0xff] }
 0x341   :  { %2031 = vrot.lane.b32.xlu1 %v10203_v36, %s4565_s1  ;;  %4050 = vmatprep.mubr.msk.f32.mxu0 %vm2661_vm11, %v2589_v31  ;;  %v2557_v31 = vsel %vm2519_vm9, %v2492_v45, %v1810_v57  ;;  %v4485_v36 = vld [vmem:[%s9240_s0 + $0x48] sm:$0xff] }
 0x342   :  { %1967 = vrot.lane.b32.xlu0 %v10205_v40, %s4565_s1  ;;  %v2136_v6 = vsel %vm2129_vm3, %v4485_v36, %v10209_v60  ;;  %v10212_v40 = vld [vmem:[#allocation24_spill] sm:$0xff] }
 0x343   :  { %v1948_v47 = vpop.permute.xlu1 %1947  ;;  %v2201_v32 = vsel %vm2194_vm4, %v2136_v6, %v10211_v30  ;;  %v10222_v30 = vld [vmem:[#allocation280_spill] sm:$0xff] }
 0x344   :  { %v2590_v35 = vsel %vm2584_vm10, %v2525_v17, %v1948_v47  ;;  %v2010_v29 = vpop.permute.xlu0 %2009  ;;  %v2266_v33 = vsel %vm2259_vm5, %v2201_v32, %v10213_v46  ;;  %v10214_v17 = vld [vmem:[#allocation302_spill] sm:$0xff]  ;;  %v10223_v32 = vld [vmem:[#allocation301_spill] sm:$0xff] }
 0x345   :  { %v2621_v21 = vsel %vm2584_vm10, %v2556_v56, %v2010_v29  ;;  %1627 = vrot.lane.b32.xlu1 %v7599_v0, %s4563_s29  ;;  %4051 = vmatmul.mubr.msk.f32.gmra.mxu0 %vm2661_vm11, %v2590_v35  ;;  %v2331_v47 = vsel %vm2324_vm6, %v2266_v33, %v10214_v17  ;;  %v10215_v56 = vld [vmem:[#allocation115_spill] sm:$0xff] }
 0x346   :  { %1563 = vrot.lane.b32.xlu0 %v7609_v39, %s4563_s29  ;;  %4098 = vmatprep.mubr.msk.f32.mxu1 %vm2661_vm11, %v2621_v21  ;;  %v2137_v35 = vsel %vm2129_vm3, %v4486_v20, %v10215_v56  ;;  %v2396_v29 = vsel %vm2389_vm7, %v2331_v47, %v6959_v34  ;;  %v2168_v21 = vsel %vm2129_vm3, %v7059_v10, %v10217_v23  ;;  %v10221_v34 = vld [vmem:[#allocation257_spill] sm:$0xff]  ;;  %v10224_v33 = vld [vmem:[#allocation335_spill] sm:$0xff] }
 0x347   :  { %v1608_v38 = vpop.permute.xlu1 %1607  ;;  %v2202_v45 = vsel %vm2194_vm4, %v2137_v35, %v10218_v53  ;;  %v10228_v53 = vld [vmem:[#allocation279_spill] sm:$0xff] }
 0x348   :  { %v2012_v14 = vpop.permute.xlu0 %2011  ;;  %v2267_v60 = vsel %vm2259_vm5, %v2202_v45, %v10221_v34 }
 0x349   :  { %v2622_v41 = vsel %vm2584_vm10, %v2557_v31, %v2012_v14  ;;  %1629 = vrot.lane.b32.xlu1 %v7620_v19, %s4563_s29  ;;  %v2461_v31 = vsel %vm2454_vm8, %v2396_v29, %v7283_v48  ;;  %v10219_v14 = vld [vmem:[#allocation23_spill] sm:$0xff]  ;;  %v10226_v29 = vld [vmem:[#allocation141_spill] sm:$0xff] }
 0x34a   :  { %1565 = vrot.lane.b32.xlu0 %v7627_v42, %s4563_s29  ;;  %4099 = vmatmul.mubr.msk.f32.gmra.mxu1 %vm2661_vm11, %v2622_v41  ;;  %v10220_v41 = vld [vmem:[#allocation225_spill] sm:$0xff] }
 0x34b   :  { %v1748_v26 = vpop.permute.xlu1 %1747  ;;  %v2233_v36 = vsel %vm2194_vm4, %v2168_v21, %v10220_v41 }
 0x34c   :  { %v1610_v57 = vpop.permute.xlu0 %1609  ;;  %v2526_v6 = vsel %vm2519_vm9, %v2461_v31, %v1748_v26  ;;  %v2298_v10 = vsel %vm2259_vm5, %v2233_v36, %v10222_v30  ;;  %v10225_v26 = vld [vmem:[#allocation37_spill] sm:$0xff]  ;;  %v7716_v30 = vld [vmem:[%s9240_s0 + $0x2b8] sm:$0xff] }
 0x34d   :  { %1831 = vrot.lane.b32.xlu1 %v10210_v49, %s4564_s14  ;;  %v2363_v17 = vsel %vm2324_vm6, %v2298_v10, %v10224_v33  ;;  %v2169_v20 = vsel %vm2129_vm3, %v7074_v27, %v10225_v26  ;;  %v10230_v36 = vld [vmem:[#allocation169_spill] sm:$0xff]  ;;  %v10233_v33 = vld [vmem:[#allocation184_spill] sm:$0xff] }
 0x34e   :  { %1767 = vrot.lane.b32.xlu0 %v10212_v40, %s4564_s14  ;;  %v2332_v40 = vsel %vm2324_vm6, %v2267_v60, %v10223_v32  ;;  %v2428_v56 = vsel %vm2389_vm7, %v2363_v17, %v7117_v2  ;;  %v4489_v32 = vld [vmem:[%s9240_s0 + $0x60] sm:$0xff] }
 0x34f   :  { %v1750_v9 = vpop.permute.xlu1 %1749  ;;  %v2397_v47 = vsel %vm2389_vm7, %v2332_v40, %v6957_v15  ;;  %v10232_v40 = vld [vmem:[#allocation118_spill] sm:$0xff]  ;;  %v10234_v26 = vld [vmem:[#allocation5_spill] sm:$0xff] }
 0x350   :  { %v1812_v4 = vpop.permute.xlu0 %1811  ;;  %v2462_v35 = vsel %vm2454_vm8, %v2397_v47, %v7281_v25  ;;  %v10229_v25 = vld [vmem:[#allocation334_spill] sm:$0xff]  ;;  %v7745_v47 = vld [vmem:[%s9240_s0 + $0x110] sm:$0xff] }
 0x351   :  { %1833 = vrot.lane.b32.xlu1 %v10216_v24, %s4564_s14  ;;  %v10227_v24 = vld [vmem:[#allocation224_spill] sm:$0xff]  ;;  %v2527_v23 = vsel %vm2519_vm9, %v2462_v35, %v1750_v9  ;;  %v10231_v9 = vld [vmem:[#allocation139_spill] sm:$0xff] }
 0x352   :  { %1769 = vrot.lane.b32.xlu0 %v10219_v14, %s4564_s14  ;;  %v2234_v15 = vsel %vm2194_vm4, %v2169_v20, %v10227_v24  ;;  %v10235_v35 = vld [vmem:[#allocation304_spill] sm:$0xff] }
 0x353   :  { %v1950_v49 = vpop.permute.xlu1 %1949  ;;  %v2299_v27 = vsel %vm2259_vm5, %v2234_v15, %v10228_v53  ;;  %v4492_v15 = vld [vmem:[%s9240_s0 + $0x68] sm:$0xff] }
 0x354   :  { %v2591_v48 = vsel %vm2584_vm10, %v2526_v6, %v1950_v49  ;;  %v1814_v46 = vpop.permute.xlu0 %1813  ;;  %v2364_v14 = vsel %vm2324_vm6, %v2299_v27, %v10229_v25  ;;  %v10238_v27 = vld [vmem:[#allocation94_spill] sm:$0xff] }
 0x355   :  { %2033 = vrot.lane.b32.xlu1 %v10072_v28, %s4565_s1  ;;  %4053 = vmatprep.mubr.msk.f32.mxu0 %vm2661_vm11, %v2591_v48  ;;  %v2493_v28 = vsel %vm2454_vm8, %v2428_v56, %v1608_v38  ;;  %v2429_v38 = vsel %vm2389_vm7, %v2364_v14, %v7115_v43  ;;  %v7723_v43 = vld [vmem:[%s9240_s0 + $0x108] sm:$0xff]  ;;  %v2138_v48 = vsel %vm2129_vm3, %v4489_v32, %v10232_v40  ;;  %v10245_v32 = vld [vmem:[#allocation303_spill] sm:$0xff] }
 0x356   :  { %1969 = vrot.lane.b32.xlu0 %v10226_v29, %s4565_s1  ;;  %v2558_v45 = vsel %vm2519_vm9, %v2493_v28, %v1812_v4  ;;  %v2494_v4 = vsel %vm2454_vm8, %v2429_v38, %v1610_v57  ;;  %v2203_v17 = vsel %vm2194_vm4, %v2138_v48, %v10233_v33  ;;  %v10236_v28 = vld [vmem:[#allocation117_spill] sm:$0xff] }
 0x357   :  { %v1952_v21 = vpop.permute.xlu1 %1951  ;;  %v2559_v60 = vsel %vm2519_vm9, %v2494_v4, %v1814_v46  ;;  %v7736_v46 = vld [vmem:[%s9240_s0 + $0x2c0] sm:$0xff]  ;;  %v2268_v20 = vsel %vm2259_vm5, %v2203_v17, %v10234_v26 }
 0x358   :  { %v2592_v2 = vsel %vm2584_vm10, %v2527_v23, %v1952_v21  ;;  %v2014_v31 = vpop.permute.xlu0 %2013  ;;  %v2333_v29 = vsel %vm2324_vm6, %v2268_v20, %v10235_v35  ;;  %v2139_v23 = vsel %vm2129_vm3, %v4492_v15, %v10236_v28  ;;  %v10237_v21 = vld [vmem:[#allocation186_spill] sm:$0xff]  ;;  %v10246_v33 = vld [vmem:[#allocation41_spill] sm:$0xff] }
 0x359   :  { %v2623_v41 = vsel %vm2584_vm10, %v2558_v45, %v2014_v31  ;;  %2035 = vrot.lane.b32.xlu1 %v10230_v36, %s4565_s1  ;;  %4054 = vmatmul.mubr.msk.f32.gmra.mxu0 %vm2661_vm11, %v2592_v2  ;;  %v2398_v53 = vsel %vm2389_vm7, %v2333_v29, %v10237_v21  ;;  %v10239_v45 = vld [vmem:[#allocation42_spill] sm:$0xff]  ;;  %v10240_v31 = vld [vmem:[#allocation183_spill] sm:$0xff]  ;;  %v10247_v26 = vld [vmem:[#allocation185_spill] sm:$0xff] }
 0x35a   :  { %1971 = vrot.lane.b32.xlu0 %v10231_v9, %s4565_s1  ;;  %4101 = vmatprep.mubr.msk.f32.mxu1 %vm2661_vm11, %v2623_v41  ;;  %v2170_v2 = vsel %vm2129_vm3, %v7109_v1, %v10239_v45  ;;  %v2204_v25 = vsel %vm2194_vm4, %v2139_v23, %v10240_v31  ;;  %v2463_v14 = vsel %vm2454_vm8, %v2398_v53, %v7291_v61  ;;  %v10241_v41 = vld [vmem:[#allocation26_spill] sm:$0xff]  ;;  %v10242_v36 = vld [vmem:[#allocation227_spill] sm:$0xff]  ;;  %v10248_v35 = vld [vmem:[#allocation93_spill] sm:$0xff] }
 0x35b   :  { %v1612_v34 = vpop.permute.xlu1 %1611  ;;  %v2235_v38 = vsel %vm2194_vm4, %v2170_v2, %v10242_v36  ;;  %v10243_v9 = vld [vmem:[#allocation6_spill] sm:$0xff]  ;;  %v10250_v23 = vld [vmem:[#allocation25_spill] sm:$0xff]  ;;  %v10252_v31 = vld [vmem:[#allocation43_spill] sm:$0xff] }
 0x35c   :  { %v2016_v6 = vpop.permute.xlu0 %2015  ;;  %v2269_v4 = vsel %vm2259_vm5, %v2204_v25, %v10243_v9  ;;  %v10251_v21 = vld [vmem:[#allocation226_spill] sm:$0xff] }
 0x35d   :  { %v2624_v49 = vsel %vm2584_vm10, %v2559_v60, %v2016_v6  ;;  %1631 = vrot.lane.b32.xlu1 %v7716_v30, %s4563_s29  ;;  %v2334_v40 = vsel %vm2324_vm6, %v2269_v4, %v10245_v32 }
 0x35e   :  { %1567 = vrot.lane.b32.xlu0 %v7723_v43, %s4563_s29  ;;  %4102 = vmatmul.mubr.msk.f32.gmra.mxu1 %vm2661_vm11, %v2624_v49  ;;  %v10244_v49 = vld [vmem:[#allocation44_spill] sm:$0xff]  ;;  %v2399_v20 = vsel %vm2389_vm7, %v2334_v40, %v10247_v26  ;;  %v4494_v40 = vld [vmem:[%s9240_s0 + $0x120] sm:$0xff] }
 0x35f   :  { %v1752_v57 = vpop.permute.xlu1 %1751  ;;  %v2300_v1 = vsel %vm2259_vm5, %v2235_v38, %v10244_v49  ;;  %v2464_v28 = vsel %vm2454_vm8, %v2399_v20, %v7289_v58  ;;  %v10253_v58 = vld [vmem:[#allocation39_spill] sm:$0xff]  ;;  %v10256_v49 = vld [vmem:[#allocation170_spill] sm:$0xff]  ;;  %v4495_v26 = vld [vmem:[%s9240_s0 + $0x2d8] sm:$0xff] }
 0x360   :  { %v1614_v10 = vpop.permute.xlu0 %1613  ;;  %v2528_v60 = vsel %vm2519_vm9, %v2463_v14, %v1752_v57  ;;  %v2365_v17 = vsel %vm2324_vm6, %v2300_v1, %v10246_v33  ;;  %v10249_v57 = vld [vmem:[#allocation40_spill] sm:$0xff]  ;;  %v10254_v38 = vld [vmem:[#allocation91_spill] sm:$0xff] }
 0x361   :  { %1633 = vrot.lane.b32.xlu1 %v7736_v46, %s4563_s29  ;;  %v2171_v29 = vsel %vm2129_vm3, %v7124_v63, %v10249_v57  ;;  %v2430_v15 = vsel %vm2389_vm7, %v2365_v17, %v7130_v5  ;;  %v10257_v1 = vld [vmem:[#allocation143_spill] sm:$0xff]  ;;  %v4496_v20 = vld [vmem:[%s9240_s0 + $0x78] sm:$0xff] }
 0x362   :  { %1569 = vrot.lane.b32.xlu0 %v7745_v47, %s4563_s29  ;;  %v2236_v53 = vsel %vm2194_vm4, %v2171_v29, %v10251_v21  ;;  %v10258_v33 = vld [vmem:[#allocation47_spill] sm:$0xff]  ;;  %v10260_v29 = vld [vmem:[#allocation230_spill] sm:$0xff]  ;;  %v10262_v21 = vld [vmem:[#allocation49_spill] sm:$0xff] }
 0x363   :  { %v1754_v56 = vpop.permute.xlu1 %1753  ;;  %v2301_v63 = vsel %vm2259_vm5, %v2236_v53, %v10252_v31  ;;  %v2172_v17 = vsel %vm2129_vm3, %v7159_v11, %v10258_v33  ;;  %v4497_v11 = vld [vmem:[%s9240_s0 + $0x128] sm:$0xff] }
 0x364   :  { %v1816_v24 = vpop.permute.xlu0 %1815  ;;  %v2529_v45 = vsel %vm2519_vm9, %v2464_v28, %v1754_v56  ;;  %v10255_v56 = vld [vmem:[#allocation145_spill] sm:$0xff]  ;;  %v10261_v28 = vld [vmem:[#allocation188_spill] sm:$0xff]  ;;  %v10264_v31 = vld [vmem:[#allocation46_spill] sm:$0xff] }
 0x365   :  { %1835 = vrot.lane.b32.xlu1 %v10238_v27, %s4564_s14  ;;  %v2495_v27 = vsel %vm2454_vm8, %v2430_v15, %v1612_v34  ;;  %v2237_v15 = vsel %vm2194_vm4, %v2172_v17, %v10260_v29 }
 0x366   :  { %1771 = vrot.lane.b32.xlu0 %v10241_v41, %s4564_s14  ;;  %v2560_v25 = vsel %vm2519_vm9, %v2495_v27, %v1816_v24  ;;  %v2366_v41 = vsel %vm2324_vm6, %v2301_v63, %v10253_v58  ;;  %v2302_v53 = vsel %vm2259_vm5, %v2237_v15, %v10262_v21  ;;  %v10266_v58 = vld [vmem:[#allocation306_spill] sm:$0xff]  ;;  %v10277_v21 = vld [vmem:[#allocation189_spill] sm:$0xff] }
 0x367   :  { %v1954_v6 = vpop.permute.xlu1 %1953  ;;  %v2431_v34 = vsel %vm2389_vm7, %v2366_v41, %v7128_v51  ;;  %v2367_v63 = vsel %vm2324_vm6, %v2302_v53, %v10264_v31 }
 0x368   :  { %v2593_v61 = vsel %vm2584_vm10, %v2528_v60, %v1954_v6  ;;  %v1818_v48 = vpop.permute.xlu0 %1817  ;;  %v2496_v24 = vsel %vm2454_vm8, %v2431_v34, %v1614_v10  ;;  %v4493_v10 = vld [vmem:[%s9240_s0 + $0x2d0] sm:$0xff]  ;;  %v4498_v34 = vld [vmem:[%s9240_s0 + $0x80] sm:$0xff] }
 0x369   :  { %1837 = vrot.lane.b32.xlu1 %v10248_v35, %s4564_s14  ;;  %4056 = vmatprep.mubr.msk.f32.mxu0 %vm2661_vm11, %v2593_v61  ;;  %v2561_v4 = vsel %vm2519_vm9, %v2496_v24, %v1818_v48  ;;  %v10259_v35 = vld [vmem:[#allocation120_spill] sm:$0xff] }
 0x36a   :  { %1773 = vrot.lane.b32.xlu0 %v10250_v23, %s4564_s14  ;;  %v2140_v57 = vsel %vm2129_vm3, %v4496_v20, %v10259_v35  ;;  %v10273_v20 = vld [vmem:[#allocation7_spill] sm:$0xff]  ;;  %v10274_v35 = vld [vmem:[#allocation161_spill] sm:$0xff] }
 0x36b   :  { %v1956_v2 = vpop.permute.xlu1 %1955  ;;  %v2205_v23 = vsel %vm2194_vm4, %v2140_v57, %v10261_v28 }
 0x36c   :  { %v2594_v5 = vsel %vm2584_vm10, %v2529_v45, %v1956_v2  ;;  %v2018_v14 = vpop.permute.xlu0 %2017  ;;  %v10263_v45 = vld [vmem:[#allocation8_spill] sm:$0xff] }
 0x36d   :  { %v2625_v36 = vsel %vm2584_vm10, %v2560_v25, %v2018_v14  ;;  %2037 = vrot.lane.b32.xlu1 %v10254_v38, %s4565_s1  ;;  %4057 = vmatmul.mubr.msk.f32.gmra.mxu0 %vm2661_vm11, %v2594_v5  ;;  %v2270_v2 = vsel %vm2259_vm5, %v2205_v23, %v10263_v45  ;;  %v10265_v5 = vld [vmem:[#allocation45_spill] sm:$0xff]  ;;  %v10267_v38 = vld [vmem:[#allocation99_spill] sm:$0xff]  ;;  %v10276_v23 = vld [vmem:[#allocation98_spill] sm:$0xff] }
 0x36e   :  { %1973 = vrot.lane.b32.xlu0 %v10255_v56, %s4565_s1  ;;  %4104 = vmatprep.mubr.msk.f32.mxu1 %vm2661_vm11, %v2625_v36  ;;  %v2173_v14 = vsel %vm2129_vm3, %v7174_v13, %v10265_v5  ;;  %v2335_v41 = vsel %vm2324_vm6, %v2270_v2, %v10266_v58  ;;  %v2432_v36 = vsel %vm2389_vm7, %v2367_v63, %v7138_v44  ;;  %v10268_v56 = vld [vmem:[#allocation119_spill] sm:$0xff]  ;;  %v10270_v44 = vld [vmem:[#allocation28_spill] sm:$0xff] }
 0x36f   :  { %v1616_v9 = vpop.permute.xlu1 %1615  ;;  %v2141_v24 = vsel %vm2129_vm3, %v4498_v34, %v10268_v56  ;;  %v2400_v13 = vsel %vm2389_vm7, %v2335_v41, %v6975_v62  ;;  %v10278_v45 = vld [vmem:[#allocation27_spill] sm:$0xff]  ;;  %v10279_v41 = vld [vmem:[#allocation96_spill] sm:$0xff]  ;;  %v4499_v56 = vld [vmem:[%s9240_s0 + $0x2e8] sm:$0xff] }
 0x370   :  { %v2020_v60 = vpop.permute.xlu0 %2019  ;;  %v2465_v33 = vsel %vm2454_vm8, %v2400_v13, %v7297_v16  ;;  %v10283_v13 = vld [vmem:[#allocation52_spill] sm:$0xff] }
 0x371   :  { %v2626_v6 = vsel %vm2584_vm10, %v2561_v4, %v2020_v60  ;;  %2039 = vrot.lane.b32.xlu1 %v10256_v49, %s4565_s1  ;;  %v10269_v4 = vld [vmem:[#allocation229_spill] sm:$0xff]  ;;  %v10271_v49 = vld [vmem:[#allocation187_spill] sm:$0xff] }
 0x372   :  { %1975 = vrot.lane.b32.xlu0 %v10257_v1, %s4565_s1  ;;  %4105 = vmatmul.mubr.msk.f32.gmra.mxu1 %vm2661_vm11, %v2626_v6  ;;  %v2238_v60 = vsel %vm2194_vm4, %v2173_v14, %v10269_v4  ;;  %v2497_v6 = vsel %vm2454_vm8, %v2432_v36, %v1616_v9  ;;  %v2206_v1 = vsel %vm2194_vm4, %v2141_v24, %v10271_v49  ;;  %v10281_v36 = vld [vmem:[#allocation171_spill] sm:$0xff]  ;;  %v4500_v24 = vld [vmem:[%s9240_s0 + $0x138] sm:$0xff] }
 0x373   :  { %v1618_v51 = vpop.permute.xlu1 %1617  ;;  %v2271_v62 = vsel %vm2259_vm5, %v2206_v1, %v10273_v20  ;;  %v4502_v49 = vld [vmem:[%s9240_s0 + $0x90] sm:$0xff]  ;;  %v10284_v1 = vld [vmem:[#allocation122_spill] sm:$0xff] }
 0x374   :  { %v1554_v32 = vpop.permute.xlu0 %1553  ;;  %v10287_v20 = vld [vmem:[#allocation54_spill] sm:$0xff] }
 0x375   :  { %1635 = vrot.lane.b32.xlu1 %v4493_v10, %s4563_s29  ;;  %v10272_v10 = vld [vmem:[#allocation48_spill] sm:$0xff] }
 0x376   :  { %1571 = vrot.lane.b32.xlu0 %v4494_v40, %s4563_s29  ;;  %v2303_v40 = vsel %vm2259_vm5, %v2238_v60, %v10272_v10  ;;  %v2142_v10 = vsel %vm2129_vm3, %v4502_v49, %v10284_v1  ;;  %v10300_v49 = vld [vmem:[#allocation307_spill] sm:$0xff] }
 0x377   :  { %v1820_v61 = vpop.permute.xlu1 %1819  ;;  %v2368_v9 = vsel %vm2324_vm6, %v2303_v40, %v10274_v35  ;;  %v10285_v40 = vld [vmem:[#allocation232_spill] sm:$0xff] }
 0x378   :  { %v1756_v48 = vpop.permute.xlu0 %1755  ;;  %v2562_v17 = vsel %vm2519_vm9, %v2497_v6, %v1820_v61  ;;  %v2433_v16 = vsel %vm2389_vm7, %v2368_v9, %v7136_v12  ;;  %v2174_v6 = vsel %vm2129_vm3, %v7209_v22, %v10283_v13  ;;  %v4503_v22 = vld [vmem:[%s9240_s0 + $0x140] sm:$0xff]  ;;  %v10288_v9 = vld [vmem:[#allocation10_spill] sm:$0xff] }
 0x379   :  { %1637 = vrot.lane.b32.xlu1 %v4495_v26, %s4563_s29  ;;  %v2530_v57 = vsel %vm2519_vm9, %v2465_v33, %v1756_v48  ;;  %v2498_v48 = vsel %vm2454_vm8, %v2433_v16, %v1618_v51  ;;  %v10280_v51 = vld [vmem:[#allocation149_spill] sm:$0xff]  ;;  %v2239_v33 = vsel %vm2194_vm4, %v2174_v6, %v10285_v40  ;;  %v10302_v40 = vld [vmem:[#allocation190_spill] sm:$0xff] }
 0x37a   :  { %1573 = vrot.lane.b32.xlu0 %v4497_v11, %s4563_s29  ;;  %v10275_v11 = vld [vmem:[#allocation305_spill] sm:$0xff] }
 0x37b   :  { %v1822_v27 = vpop.permute.xlu1 %1821  ;;  %v2336_v28 = vsel %vm2324_vm6, %v2271_v62, %v10275_v11  ;;  %v2304_v62 = vsel %vm2259_vm5, %v2239_v33, %v10287_v20 }
 0x37c   :  { %v1758_v25 = vpop.permute.xlu0 %1757  ;;  %v2401_v53 = vsel %vm2389_vm7, %v2336_v28, %v10277_v21  ;;  %v2563_v12 = vsel %vm2519_vm9, %v2498_v48, %v1822_v27  ;;  %v10290_v28 = vld [vmem:[#allocation50_spill] sm:$0xff]  ;;  %v4504_v48 = vld [vmem:[%s9240_s0 + $0x98] sm:$0xff] }
 0x37d   :  { %1839 = vrot.lane.b32.xlu1 %v10267_v38, %s4564_s14  ;;  %v2466_v2 = vsel %vm2454_vm8, %v2401_v53, %v1554_v32  ;;  %v2175_v16 = vsel %vm2129_vm3, %v7224_v7, %v10290_v28  ;;  %v10292_v53 = vld [vmem:[#allocation105_spill] sm:$0xff] }
 0x37e   :  { %1775 = vrot.lane.b32.xlu0 %v10270_v44, %s4564_s14  ;;  %v2531_v63 = vsel %vm2519_vm9, %v2466_v2, %v1758_v25  ;;  %v10282_v25 = vld [vmem:[#allocation147_spill] sm:$0xff] }
 0x37f   :  { %v2022_v26 = vpop.permute.xlu1 %2021  ;;  %v4501_v44 = vld [vmem:[%s9240_s0 + $0x2f0] sm:$0xff] }
 0x380   :  { %v2627_v29 = vsel %vm2584_vm10, %v2562_v17, %v2022_v26  ;;  %v1958_v15 = vpop.permute.xlu0 %1957  ;;  %v10286_v17 = vld [vmem:[#allocation192_spill] sm:$0xff] }
 0x381   :  { %v2595_v61 = vsel %vm2584_vm10, %v2530_v57, %v1958_v15  ;;  %1841 = vrot.lane.b32.xlu1 %v10276_v23, %s4564_s14  ;;  %4107 = vmatprep.mubr.msk.f32.mxu1 %vm2661_vm11, %v2627_v29  ;;  %v2207_v26 = vsel %vm2194_vm4, %v2142_v10, %v10286_v17  ;;  %v10289_v29 = vld [vmem:[#allocation51_spill] sm:$0xff] }
 0x382   :  { %1777 = vrot.lane.b32.xlu0 %v10278_v45, %s4564_s14  ;;  %4059 = vmatprep.mubr.msk.f32.mxu0 %vm2661_vm11, %v2595_v61  ;;  %v2272_v57 = vsel %vm2259_vm5, %v2207_v26, %v10288_v9  ;;  %v2369_v15 = vsel %vm2324_vm6, %v2304_v62, %v10289_v29  ;;  %v10291_v61 = vld [vmem:[#allocation308_spill] sm:$0xff]  ;;  %v10293_v45 = vld [vmem:[#allocation121_spill] sm:$0xff]  ;;  %v10301_v10 = vld [vmem:[#allocation103_spill] sm:$0xff] }
 0x383   :  { %v2024_v31 = vpop.permute.xlu1 %2023  ;;  %v2337_v23 = vsel %vm2324_vm6, %v2272_v57, %v10291_v61  ;;  %v2434_v21 = vsel %vm2389_vm7, %v2369_v15, %v7146_v3  ;;  %v2143_v2 = vsel %vm2129_vm3, %v4504_v48, %v10293_v45  ;;  %v10295_v3 = vld [vmem:[#allocation30_spill] sm:$0xff]  ;;  %v10304_v29 = vld [vmem:[#allocation101_spill] sm:$0xff]  ;;  %v10306_v15 = vld [vmem:[#allocation172_spill] sm:$0xff] }
 0x384   :  { %v2628_v5 = vsel %vm2584_vm10, %v2563_v12, %v2024_v31  ;;  %v1960_v14 = vpop.permute.xlu0 %1959  ;;  %v10294_v12 = vld [vmem:[#allocation231_spill] sm:$0xff]  ;;  %v2402_v7 = vsel %vm2389_vm7, %v2337_v23, %v6983_v52  ;;  %v10299_v52 = vld [vmem:[#allocation162_spill] sm:$0xff]  ;;  %v4505_v61 = vld [vmem:[%s9240_s0 + $0x300] sm:$0xff] }
 0x385   :  { %v2596_v58 = vsel %vm2584_vm10, %v2531_v63, %v1960_v14  ;;  %2041 = vrot.lane.b32.xlu1 %v10279_v41, %s4565_s1  ;;  %4108 = vmatmul.mubr.msk.f32.gmra.mxu1 %vm2661_vm11, %v2628_v5  ;;  %v2240_v31 = vsel %vm2194_vm4, %v2175_v16, %v10294_v12  ;;  %v10296_v5 = vld [vmem:[#allocation191_spill] sm:$0xff]  ;;  %v10308_v48 = vld [vmem:[#allocation57_spill] sm:$0xff]  ;;  %v10309_v45 = vld [vmem:[#allocation68_spill] sm:$0xff] }
 0x386   :  { %1977 = vrot.lane.b32.xlu0 %v10280_v51, %s4565_s1  ;;  %4060 = vmatmul.mubr.msk.f32.gmra.mxu0 %vm2661_vm11, %v2596_v58  ;;  %v2208_v14 = vsel %vm2194_vm4, %v2143_v2, %v10296_v5  ;;  %v10297_v58 = vld [vmem:[#allocation53_spill] sm:$0xff]  ;;  %v4506_v23 = vld [vmem:[%s9240_s0 + $0x150] sm:$0xff]  ;;  %v2176_v2 = vsel %vm2129_vm3, %v10309_v45, %v10308_v48  ;;  %v4507_v12 = vld [vmem:[%s9240_s0 + $0x308] sm:$0xff] }
 0x387   :  { %v1620_v32 = vpop.permute.xlu1 %1619  ;;  %v2305_v41 = vsel %vm2259_vm5, %v2240_v31, %v10297_v58  ;;  %v4508_v31 = vld [vmem:[%s9240_s0 + $0xa8] sm:$0xff]  ;;  %v10312_v58 = vld [vmem:[#allocation196_spill] sm:$0xff]  ;;  %v10328_v48 = vld [vmem:[#allocation11_spill] sm:$0xff] }
 0x388   :  { %v1556_v27 = vpop.permute.xlu0 %1555  ;;  %v2499_v63 = vsel %vm2454_vm8, %v2434_v21, %v1620_v32  ;;  %v2370_v32 = vsel %vm2324_vm6, %v2305_v41, %v10299_v52  ;;  %v10315_v52 = vld [vmem:[#allocation56_spill] sm:$0xff] }
 0x389   :  { %2043 = vrot.lane.b32.xlu1 %v10281_v36, %s4565_s1  ;;  %v2467_v51 = vsel %vm2454_vm8, %v2402_v7, %v1556_v27  ;;  %v2435_v27 = vsel %vm2389_vm7, %v2370_v32, %v7144_v50  ;;  %v10310_v7 = vld [vmem:[#allocation124_spill] sm:$0xff] }
 0x38a   :  { %1979 = vrot.lane.b32.xlu0 %v10282_v25, %s4565_s1 }
 0x38b   :  { %v1622_v38 = vpop.permute.xlu1 %1621 }
 0x38c   :  { %v1558_v34 = vpop.permute.xlu0 %1557 }
 0x38d   :  { %1639 = vrot.lane.b32.xlu1 %v4499_v56, %s4563_s29  ;;  %v10298_v56 = vld [vmem:[#allocation9_spill] sm:$0xff] }
 0x38e   :  { %1575 = vrot.lane.b32.xlu0 %v4500_v24, %s4563_s29  ;;  %v2273_v24 = vsel %vm2259_vm5, %v2208_v14, %v10298_v56  ;;  %v4509_v14 = vld [vmem:[%s9240_s0 + $0x158] sm:$0xff] }
 0x38f   :  { %v1824_v4 = vpop.permute.xlu1 %1823  ;;  %v2338_v1 = vsel %vm2324_vm6, %v2273_v24, %v10300_v49  ;;  %v10314_v56 = vld [vmem:[#allocation12_spill] sm:$0xff] }
 0x390   :  { %v1760_v60 = vpop.permute.xlu0 %1759  ;;  %v2564_v36 = vsel %vm2519_vm9, %v2499_v63, %v1824_v4  ;;  %v2403_v33 = vsel %vm2389_vm7, %v2338_v1, %v10302_v40  ;;  %v2144_v63 = vsel %vm2129_vm3, %v4508_v31, %v10310_v7  ;;  %v10318_v1 = vld [vmem:[#allocation310_spill] sm:$0xff]  ;;  %v10320_v40 = vld [vmem:[#allocation109_spill] sm:$0xff] }
 0x391   :  { %1641 = vrot.lane.b32.xlu1 %v4501_v44, %s4563_s29  ;;  %v2532_v13 = vsel %vm2519_vm9, %v2467_v51, %v1760_v60  ;;  %v2500_v60 = vsel %vm2454_vm8, %v2435_v27, %v1622_v38  ;;  %v2468_v17 = vsel %vm2454_vm8, %v2403_v33, %v1558_v34  ;;  %v10305_v38 = vld [vmem:[#allocation153_spill] sm:$0xff]  ;;  %v2209_v41 = vsel %vm2194_vm4, %v2144_v63, %v10312_v58  ;;  %v10313_v51 = vld [vmem:[#allocation59_spill] sm:$0xff] }
 0x392   :  { %1577 = vrot.lane.b32.xlu0 %v4503_v22, %s4563_s29  ;;  %v10303_v22 = vld [vmem:[#allocation29_spill] sm:$0xff]  ;;  %v2274_v24 = vsel %vm2259_vm5, %v2209_v41, %v10314_v56  ;;  %v10321_v33 = vld [vmem:[#allocation123_spill] sm:$0xff] }
 0x393   :  { %v1826_v35 = vpop.permute.xlu1 %1825  ;;  %v2339_v27 = vsel %vm2324_vm6, %v2274_v24, %v10318_v1  ;;  %v10330_v63 = vld [vmem:[#allocation309_spill] sm:$0xff] }
 0x394   :  { %v1762_v11 = vpop.permute.xlu0 %1761  ;;  %v2565_v50 = vsel %vm2519_vm9, %v2500_v60, %v1826_v35  ;;  %v10322_v60 = vld [vmem:[#allocation376_spill] sm:$0xff]  ;;  %v10333_v58 = vld [vmem:[#allocation193_spill] sm:$0xff] }
 0x395   :  { %1843 = vrot.lane.b32.xlu1 %v10292_v53, %s4564_s14  ;;  %v2533_v20 = vsel %vm2519_vm9, %v2468_v17, %v1762_v11  ;;  %v10307_v11 = vld [vmem:[#allocation151_spill] sm:$0xff]  ;;  %v10323_v17 = vld [vmem:[#allocation233_spill] sm:$0xff] }
 0x396   :  { %1779 = vrot.lane.b32.xlu0 %v10295_v3, %s4564_s14  ;;  %v10311_v3 = vld [vmem:[#allocation234_spill] sm:$0xff]  ;;  %v10337_v1 = vld [vmem:[#allocation173_spill] sm:$0xff] }
 0x397   :  { %v2026_v25 = vpop.permute.xlu1 %2025  ;;  %v2241_v5 = vsel %vm2194_vm4, %v2176_v2, %v10311_v3  ;;  %v10329_v2 = vld [vmem:[#allocation163_spill] sm:$0xff] }
 0x398   :  { %v2629_v6 = vsel %vm2584_vm10, %v2564_v36, %v2026_v25  ;;  %v1962_v44 = vpop.permute.xlu0 %1961  ;;  %v2306_v36 = vsel %vm2259_vm5, %v2241_v5, %v10313_v51  ;;  %v10331_v5 = vld [vmem:[#allocation357_spill] sm:$0xff]  ;;  %v10334_v51 = vld [vmem:[#allocation31_spill] sm:$0xff] }
 0x399   :  { %v2597_v4 = vsel %vm2584_vm10, %v2532_v13, %v1962_v44  ;;  %1845 = vrot.lane.b32.xlu1 %v10301_v10, %s4564_s14  ;;  %4110 = vmatprep.mubr.msk.f32.mxu1 %vm2661_vm11, %v2629_v6  ;;  %v2371_v32 = vsel %vm2324_vm6, %v2306_v36, %v10315_v52  ;;  %v10316_v6 = vld [vmem:[#allocation55_spill] sm:$0xff] }
 0x39a   :  { %1781 = vrot.lane.b32.xlu0 %v10303_v22, %s4564_s14  ;;  %4062 = vmatprep.mubr.msk.f32.mxu0 %vm2661_vm11, %v2597_v4  ;;  %v10317_v44 = vld [vmem:[#allocation375_spill] sm:$0xff]  ;;  %v10319_v4 = vld [vmem:[#allocation358_spill] sm:$0xff]  ;;  %v2145_v22 = vsel %vm2129_vm3, %v10322_v60, %v10321_v33 }
 0x39b   :  { %v2028_v26 = vpop.permute.xlu1 %2027  ;;  %v2177_v49 = vsel %vm2129_vm3, %v10317_v44, %v10316_v6  ;;  %v2436_v10 = vsel %vm2389_vm7, %v2371_v32, %v10319_v4 }
 0x39c   :  { %v2630_v62 = vsel %vm2584_vm10, %v2565_v50, %v2028_v26  ;;  %v1964_v9 = vpop.permute.xlu0 %1963  ;;  %v2242_v50 = vsel %vm2194_vm4, %v2177_v49, %v10323_v17  ;;  %v10324_v26 = vld [vmem:[#allocation194_spill] sm:$0xff]  ;;  %v10335_v49 = vld [vmem:[#allocation175_spill] sm:$0xff] }
 0x39d   :  { %v2598_v57 = vsel %vm2584_vm10, %v2533_v20, %v1964_v9  ;;  %2045 = vrot.lane.b32.xlu1 %v10304_v29, %s4565_s1  ;;  %4111 = vmatmul.mubr.msk.f32.gmra.mxu1 %vm2661_vm11, %v2630_v62  ;;  %v2404_v20 = vsel %vm2389_vm7, %v2339_v27, %v10324_v26  ;;  %v10325_v9 = vld [vmem:[#allocation32_spill] sm:$0xff]  ;;  %v10340_v17 = vld [vmem:[#allocation74_spill] sm:$0xff]  ;;  %v4512_v26 = vld [vmem:[%s9240_s0 + $0x320] sm:$0xff] }
 0x39e   :  { %1981 = vrot.lane.b32.xlu0 %v10305_v38, %s4565_s1  ;;  %4063 = vmatmul.mubr.msk.f32.gmra.mxu0 %vm2661_vm11, %v2598_v57  ;;  %v10326_v57 = vld [vmem:[#allocation195_spill] sm:$0xff]  ;;  %v10327_v38 = vld [vmem:[#allocation58_spill] sm:$0xff] }
 0x39f   :  { %v1624_v34 = vpop.permute.xlu1 %1623  ;;  %v2210_v29 = vsel %vm2194_vm4, %v2145_v22, %v10326_v57  ;;  %v10339_v22 = vld [vmem:[#allocation62_spill] sm:$0xff]  ;;  %v10343_v57 = vld [vmem:[#allocation236_spill] sm:$0xff] }
 0x3a0   :  { %v1560_v35 = vpop.permute.xlu0 %1559  ;;  %v2501_v62 = vsel %vm2454_vm8, %v2436_v10, %v1624_v34  ;;  %v2275_v45 = vsel %vm2259_vm5, %v2210_v29, %v10328_v48  ;;  %v4510_v10 = vld [vmem:[%s9240_s0 + $0x318] sm:$0xff] }
 0x3a1   :  { %2047 = vrot.lane.b32.xlu1 %v10306_v15, %s4565_s1  ;;  %v2307_v15 = vsel %vm2259_vm5, %v2242_v50, %v10327_v38  ;;  %v2340_v3 = vsel %vm2324_vm6, %v2275_v45, %v10330_v63  ;;  %v2178_v50 = vsel %vm2129_vm3, %v10340_v17, %v10339_v22  ;;  %v4513_v38 = vld [vmem:[%s9240_s0 + $0x170] sm:$0xff]  ;;  %v10346_v45 = vld [vmem:[#allocation14_spill] sm:$0xff] }
 0x3a2   :  { %1983 = vrot.lane.b32.xlu0 %v10307_v11, %s4565_s1  ;;  %v2469_v11 = vsel %vm2454_vm8, %v2404_v20, %v1560_v35  ;;  %v2372_v34 = vsel %vm2324_vm6, %v2307_v15, %v10329_v2  ;;  %v2405_v41 = vsel %vm2389_vm7, %v2340_v3, %v10333_v58  ;;  %v10341_v20 = vld [vmem:[#allocation126_spill] sm:$0xff]  ;;  %v2243_v29 = vsel %vm2194_vm4, %v2178_v50, %v10343_v57  ;;  %v10344_v15 = vld [vmem:[#allocation200_spill] sm:$0xff]  ;;  %v10352_v58 = vld [vmem:[#allocation125_spill] sm:$0xff] }
 0x3a3   :  { %v1626_v28 = vpop.permute.xlu1 %1625  ;;  %v2437_v35 = vsel %vm2389_vm7, %v2372_v34, %v10331_v5  ;;  %v10347_v34 = vld [vmem:[#allocation61_spill] sm:$0xff]  ;;  %v10349_v3 = vld [vmem:[#allocation312_spill] sm:$0xff]  ;;  %v10360_v50 = vld [vmem:[#allocation311_spill] sm:$0xff] }
 0x3a4   :  { %v1562_v16 = vpop.permute.xlu0 %1561 }
 0x3a5   :  { %1643 = vrot.lane.b32.xlu1 %v4505_v61, %s4563_s29  ;;  %v2470_v36 = vsel %vm2454_vm8, %v2405_v41, %v1562_v16  ;;  %v2147_v41 = vsel %vm2129_vm3, %v7381_v37, %v10352_v58 }
 0x3a6   :  { %1579 = vrot.lane.b32.xlu0 %v4506_v23, %s4563_s29 }
 0x3a7   :  { %v1828_v21 = vpop.permute.xlu1 %1827 }
 0x3a8   :  { %v1764_v53 = vpop.permute.xlu0 %1763  ;;  %v2566_v61 = vsel %vm2519_vm9, %v2501_v62, %v1828_v21  ;;  %v10342_v62 = vld [vmem:[#allocation18_spill] sm:$0xff] }
 0x3a9   :  { %1645 = vrot.lane.b32.xlu1 %v4507_v12, %s4563_s29  ;;  %v2534_v12 = vsel %vm2519_vm9, %v2469_v11, %v1764_v53  ;;  %v2502_v53 = vsel %vm2454_vm8, %v2437_v35, %v1626_v28  ;;  %v10336_v28 = vld [vmem:[#allocation157_spill] sm:$0xff]  ;;  %v10350_v35 = vld [vmem:[#allocation360_spill] sm:$0xff] }
 0x3aa   :  { %1581 = vrot.lane.b32.xlu0 %v4509_v14, %s4563_s29  ;;  %v10332_v14 = vld [vmem:[#allocation107_spill] sm:$0xff] }
 0x3ab   :  { %v1830_v25 = vpop.permute.xlu1 %1829 }
 0x3ac   :  { %v1766_v13 = vpop.permute.xlu0 %1765  ;;  %v2567_v56 = vsel %vm2519_vm9, %v2502_v53, %v1830_v25  ;;  %v10353_v53 = vld [vmem:[#allocation235_spill] sm:$0xff] }
 0x3ad   :  { %1847 = vrot.lane.b32.xlu1 %v10320_v40, %s4564_s14  ;;  %v2535_v52 = vsel %vm2519_vm9, %v2470_v36, %v1766_v13  ;;  %v10338_v13 = vld [vmem:[#allocation155_spill] sm:$0xff]  ;;  %v4511_v40 = vld [vmem:[%s9240_s0 + $0x168] sm:$0xff] }
 0x3ae   :  { %1783 = vrot.lane.b32.xlu0 %v10325_v9, %s4564_s14  ;;  %v2146_v9 = vsel %vm2129_vm3, %v10342_v62, %v10341_v20  ;;  %v10354_v36 = vld [vmem:[#allocation198_spill] sm:$0xff]  ;;  %v10361_v20 = vld [vmem:[#allocation359_spill] sm:$0xff] }
 0x3af   :  { %v2030_v23 = vpop.permute.xlu1 %2029  ;;  %v2211_v11 = vsel %vm2194_vm4, %v2146_v9, %v10344_v15  ;;  %v10362_v62 = vld [vmem:[#allocation111_spill] sm:$0xff]  ;;  %v10363_v9 = vld [vmem:[#allocation197_spill] sm:$0xff] }
 0x3b0   :  { %v2631_v31 = vsel %vm2584_vm10, %v2566_v61, %v2030_v23  ;;  %v1966_v7 = vpop.permute.xlu0 %1965  ;;  %v10345_v61 = vld [vmem:[#allocation64_spill] sm:$0xff]  ;;  %v2276_v2 = vsel %vm2259_vm5, %v2211_v11, %v10346_v45 }
 0x3b1   :  { %v2599_v21 = vsel %vm2584_vm10, %v2534_v12, %v1966_v7  ;;  %1849 = vrot.lane.b32.xlu1 %v10332_v14, %s4564_s14  ;;  %4113 = vmatprep.mubr.msk.f32.mxu1 %vm2661_vm11, %v2631_v31  ;;  %v2308_v23 = vsel %vm2259_vm5, %v2243_v29, %v10345_v61  ;;  %v10348_v7 = vld [vmem:[#allocation60_spill] sm:$0xff]  ;;  %v2341_v5 = vsel %vm2324_vm6, %v2276_v2, %v10349_v3  ;;  %v10351_v14 = vld [vmem:[#allocation113_spill] sm:$0xff]  ;;  %v10364_v29 = vld [vmem:[#allocation35_spill] sm:$0xff] }
 0x3b2   :  { %1785 = vrot.lane.b32.xlu0 %v10334_v51, %s4564_s14  ;;  %4065 = vmatprep.mubr.msk.f32.mxu0 %vm2661_vm11, %v2599_v21  ;;  %v2373_v12 = vsel %vm2324_vm6, %v2308_v23, %v10347_v34  ;;  %v2179_v63 = vsel %vm2129_vm3, %v7364_v18, %v10348_v7  ;;  %v10365_v34 = vld [vmem:[#allocation179_spill] sm:$0xff] }
 0x3b3   :  { %v2032_v24 = vpop.permute.xlu1 %2031  ;;  %v2438_v21 = vsel %vm2389_vm7, %v2373_v12, %v10350_v35  ;;  %v2244_v51 = vsel %vm2194_vm4, %v2179_v63, %v10353_v53  ;;  %v10367_v12 = vld [vmem:[#allocation177_spill] sm:$0xff]  ;;  %v4514_v3 = vld [vmem:[%s9240_s0 + $0x330] sm:$0xff]  ;;  %v10370_v53 = vld [vmem:[#allocation128_spill] sm:$0xff] }
 0x3b4   :  { %v2632_v32 = vsel %vm2584_vm10, %v2567_v56, %v2032_v24  ;;  %v1968_v6 = vpop.permute.xlu0 %1967  ;;  %v2406_v56 = vsel %vm2389_vm7, %v2341_v5, %v10354_v36  ;;  %v10355_v24 = vld [vmem:[#allocation36_spill] sm:$0xff]  ;;  %v4515_v5 = vld [vmem:[%s9240_s0 + $0x180] sm:$0xff]  ;;  %v10371_v36 = vld [vmem:[#allocation238_spill] sm:$0xff] }
 0x3b5   :  { %v2600_v44 = vsel %vm2584_vm10, %v2535_v52, %v1968_v6  ;;  %2049 = vrot.lane.b32.xlu1 %v10335_v49, %s4565_s1  ;;  %4114 = vmatmul.mubr.msk.f32.gmra.mxu1 %vm2661_vm11, %v2632_v32  ;;  %v10356_v52 = vld [vmem:[#allocation199_spill] sm:$0xff] }
 0x3b6   :  { %1985 = vrot.lane.b32.xlu0 %v10336_v28, %s4565_s1  ;;  %4066 = vmatmul.mubr.msk.f32.gmra.mxu0 %vm2661_vm11, %v2600_v44  ;;  %v2212_v32 = vsel %vm2194_vm4, %v2147_v41, %v10356_v52  ;;  %v10357_v6 = vld [vmem:[#allocation63_spill] sm:$0xff]  ;;  %v4516_v41 = vld [vmem:[%s9240_s0 + $0x338] sm:$0xff]  ;;  %v10373_v52 = vld [vmem:[#allocation281_spill] sm:$0xff] }
 0x3b7   :  { %v1628_v16 = vpop.permute.xlu1 %1627  ;;  %v2309_v44 = vsel %vm2259_vm5, %v2244_v51, %v10357_v6  ;;  %v2148_v51 = vsel %vm2129_vm3, %v7481_v54, %v10370_v53  ;;  %v8234_v54 = vld [vmem:[%s9242_s2] ss:$0 sm:$0xff] }
 0x3b8   :  { %v1564_v25 = vpop.permute.xlu0 %1563  ;;  %v2503_v18 = vsel %vm2454_vm8, %v2438_v21, %v1628_v16 }
 0x3b9   :  { %2051 = vrot.lane.b32.xlu1 %v10337_v1, %s4565_s1  ;;  %v2471_v49 = vsel %vm2454_vm8, %v2406_v56, %v1564_v25  ;;  %v10358_v1 = vld [vmem:[#allocation13_spill] sm:$0xff] }
 0x3ba   :  { %1987 = vrot.lane.b32.xlu0 %v10338_v13, %s4565_s1  ;;  %v2277_v13 = vsel %vm2259_vm5, %v2212_v32, %v10358_v1  ;;  %v10376_v1 = vld [vmem:[#allocation16_spill] sm:$0xff] }
 0x3bb   :  { %v1630_v27 = vpop.permute.xlu1 %1629 }
 0x3bc   :  { %v1566_v4 = vpop.permute.xlu0 %1565 }
 0x3bd   :  { %1647 = vrot.lane.b32.xlu1 %v4510_v10, %s4563_s29  ;;  %v10359_v10 = vld [vmem:[#allocation164_spill] sm:$0xff] }
 0x3be   :  { %1583 = vrot.lane.b32.xlu0 %v4511_v40, %s4563_s29  ;;  %v2374_v16 = vsel %vm2324_vm6, %v2309_v44, %v10359_v10  ;;  %v10374_v44 = vld [vmem:[#allocation127_spill] sm:$0xff]  ;;  %v10377_v10 = vld [vmem:[#allocation66_spill] sm:$0xff] }
 0x3bf   :  { %v1832_v33 = vpop.permute.xlu1 %1831  ;;  %v2439_v25 = vsel %vm2389_vm7, %v2374_v16, %v10361_v20  ;;  %v10380_v20 = vld [vmem:[#allocation314_spill] sm:$0xff] }
 0x3c0   :  { %v1768_v60 = vpop.permute.xlu0 %1767  ;;  %v2568_v37 = vsel %vm2519_vm9, %v2503_v18, %v1832_v33  ;;  %v4517_v18 = vld [vmem:[%s9240_s0 + $0x188] sm:$0xff] }
 0x3c1   :  { %1649 = vrot.lane.b32.xlu1 %v4512_v26, %s4563_s29  ;;  %v2536_v40 = vsel %vm2519_vm9, %v2471_v49, %v1768_v60  ;;  %v2342_v26 = vsel %vm2324_vm6, %v2277_v13, %v10360_v50  ;;  %v2504_v60 = vsel %vm2454_vm8, %v2439_v25, %v1630_v27  ;;  %v10366_v27 = vld [vmem:[#allocation160_spill] sm:$0xff]  ;;  %v2149_v49 = vsel %vm2129_vm3, %v7509_v55, %v10374_v44  ;;  %v10379_v50 = vld [vmem:[#allocation237_spill] sm:$0xff]  ;;  %v10381_v25 = vld [vmem:[#allocation362_spill] sm:$0xff] }
 0x3c2   :  { %1585 = vrot.lane.b32.xlu0 %v4513_v38, %s4563_s29  ;;  %v2407_v57 = vsel %vm2389_vm7, %v2342_v26, %v10363_v9  ;;  %v10383_v9 = vld [vmem:[#allocation69_spill] sm:$0xff] }
 0x3c3   :  { %v1834_v48 = vpop.permute.xlu1 %1833  ;;  %v2472_v38 = vsel %vm2454_vm8, %v2407_v57, %v1566_v4 }
 0x3c4   :  { %v1770_v31 = vpop.permute.xlu0 %1769  ;;  %v2569_v15 = vsel %vm2519_vm9, %v2504_v60, %v1834_v48  ;;  %v10384_v60 = vld [vmem:[#allocation202_spill] sm:$0xff] }
 0x3c5   :  { %1851 = vrot.lane.b32.xlu1 %v10351_v14, %s4564_s14  ;;  %v2537_v61 = vsel %vm2519_vm9, %v2472_v38, %v1770_v31  ;;  %v10368_v31 = vld [vmem:[#allocation159_spill] sm:$0xff] }
 0x3c6   :  { %1787 = vrot.lane.b32.xlu0 %v10355_v24, %s4564_s14  ;;  %v10369_v14 = vld [vmem:[#allocation67_spill] sm:$0xff] }
 0x3c7   :  { %v2034_v28 = vpop.permute.xlu1 %2033  ;;  %v2180_v58 = vsel %vm2129_vm3, %v7464_v59, %v10369_v14  ;;  %v10372_v59 = vld [vmem:[#allocation204_spill] sm:$0xff] }
 0x3c8   :  { %v2633_v22 = vsel %vm2584_vm10, %v2568_v37, %v2034_v28  ;;  %v1970_v17 = vpop.permute.xlu0 %1969  ;;  %v2245_v56 = vsel %vm2194_vm4, %v2180_v58, %v10371_v36  ;;  %v2213_v24 = vsel %vm2194_vm4, %v2148_v51, %v10372_v59  ;;  %v10375_v37 = vld [vmem:[#allocation65_spill] sm:$0xff] }
 0x3c9   :  { %v2601_v33 = vsel %vm2584_vm10, %v2536_v40, %v1970_v17  ;;  %1853 = vrot.lane.b32.xlu1 %v10362_v62, %s4564_s14  ;;  %4116 = vmatprep.mubr.msk.f32.mxu1 %vm2661_vm11, %v2633_v22  ;;  %v2310_v32 = vsel %vm2259_vm5, %v2245_v56, %v10373_v52  ;;  %v2181_v28 = vsel %vm2129_vm3, %v7499_v8, %v10375_v37  ;;  %v10378_v22 = vld [vmem:[#allocation203_spill] sm:$0xff]  ;;  %v10389_v51 = vld [vmem:[#allocation361_spill] sm:$0xff] }
 0x3ca   :  { %1789 = vrot.lane.b32.xlu0 %v10364_v29, %s4564_s14  ;;  %4068 = vmatprep.mubr.msk.f32.mxu0 %vm2661_vm11, %v2601_v33  ;;  %v2278_v13 = vsel %vm2259_vm5, %v2213_v24, %v10376_v1  ;;  %v2375_v16 = vsel %vm2324_vm6, %v2310_v32, %v10377_v10  ;;  %v2214_v17 = vsel %vm2194_vm4, %v2149_v49, %v10378_v22  ;;  %v10382_v8 = vld [vmem:[#allocation299_spill] sm:$0xff]  ;;  %v10390_v36 = vld [vmem:[#allocation297_spill] sm:$0xff] }
 0x3cb   :  { %v2036_v11 = vpop.permute.xlu1 %2035  ;;  %v2246_v26 = vsel %vm2194_vm4, %v2181_v28, %v10379_v50  ;;  %v2343_v55 = vsel %vm2324_vm6, %v2278_v13, %v10380_v20  ;;  %v2440_v33 = vsel %vm2389_vm7, %v2375_v16, %v10381_v25  ;;  %v10392_v32 = vld [vmem:[#allocation275_spill] sm:$0xff] }
 0x3cc   :  { %v2634_v23 = vsel %vm2584_vm10, %v2569_v15, %v2036_v11  ;;  %v1972_v45 = vpop.permute.xlu0 %1971  ;;  %v2311_v57 = vsel %vm2259_vm5, %v2246_v26, %v10383_v9  ;;  %v2408_v29 = vsel %vm2389_vm7, %v2343_v55, %v10384_v60  ;;  %v10385_v11 = vld [vmem:[#allocation277_spill] sm:$0xff]  ;;  %v10397_v9 = vld [vmem:[#allocation130_spill] sm:$0xff] }
 0x3cd   :  { %v2602_v2 = vsel %vm2584_vm10, %v2537_v61, %v1972_v45  ;;  %2053 = vrot.lane.b32.xlu1 %v10365_v34, %s4565_s1  ;;  %4117 = vmatmul.mubr.msk.f32.gmra.mxu1 %vm2661_vm11, %v2634_v23  ;;  %v10386_v61 = vld [vmem:[#allocation15_spill] sm:$0xff]  ;;  %v10387_v45 = vld [vmem:[#allocation165_spill] sm:$0xff]  ;;  %v10398_v60 = vld [vmem:[#allocation70_spill] sm:$0xff] }
 0x3ce   :  { %1989 = vrot.lane.b32.xlu0 %v10366_v27, %s4565_s1  ;;  %4069 = vmatmul.mubr.msk.f32.gmra.mxu0 %vm2661_vm11, %v2602_v2  ;;  %v2279_v23 = vsel %vm2259_vm5, %v2214_v17, %v10386_v61  ;;  %v2376_v2 = vsel %vm2324_vm6, %v2311_v57, %v10387_v45  ;;  %v2150_v57 = vsel %vm2129_vm3, %v7609_v39, %v10397_v9  ;;  %v10400_v61 = vld [vmem:[#allocation330_spill] sm:$0xff]  ;;  %v8341_v39 = vld [vmem:[%s9240_s0 + $0x350] sm:$0xff] }
 0x3cf   :  { %v1632_v4 = vpop.permute.xlu1 %1631 }
 0x3d0   :  { %v1568_v48 = vpop.permute.xlu0 %1567  ;;  %v2505_v38 = vsel %vm2454_vm8, %v2440_v33, %v1632_v4  ;;  %v10395_v33 = vld [vmem:[#allocation345_spill] sm:$0xff] }
 0x3d1   :  { %2055 = vrot.lane.b32.xlu1 %v10367_v12, %s4565_s1  ;;  %v2473_v34 = vsel %vm2454_vm8, %v2408_v29, %v1568_v48  ;;  %v2441_v48 = vsel %vm2389_vm7, %v2376_v2, %v10389_v51  ;;  %v2183_v29 = vsel %vm2129_vm3, %v7620_v19, %v10398_v60  ;;  %v10401_v19 = vld [vmem:[#allocation206_spill] sm:$0xff]  ;;  %v10406_v51 = vld [vmem:[#allocation260_spill] sm:$0xff] }
 0x3d2   :  { %1991 = vrot.lane.b32.xlu0 %v10368_v31, %s4565_s1 }
 0x3d3   :  { %v1634_v7 = vpop.permute.xlu1 %1633 }
 0x3d4   :  { %v1570_v63 = vpop.permute.xlu0 %1569 }
 0x3d5   :  { %1651 = vrot.lane.b32.xlu1 %v4514_v3, %s4563_s29 }
 0x3d6   :  { %1587 = vrot.lane.b32.xlu0 %v4515_v5, %s4563_s29 }
 0x3d7   :  { %v1836_v35 = vpop.permute.xlu1 %1835 }
 0x3d8   :  { %v1772_v21 = vpop.permute.xlu0 %1771  ;;  %v2570_v27 = vsel %vm2519_vm9, %v2505_v38, %v1836_v35  ;;  %v10399_v38 = vld [vmem:[#allocation72_spill] sm:$0xff] }
 0x3d9   :  { %1653 = vrot.lane.b32.xlu1 %v4516_v41, %s4563_s29  ;;  %v2538_v4 = vsel %vm2519_vm9, %v2473_v34, %v1772_v21  ;;  %v10388_v41 = vld [vmem:[#allocation313_spill] sm:$0xff]  ;;  %v10403_v34 = vld [vmem:[#allocation239_spill] sm:$0xff] }
 0x3da   :  { %1589 = vrot.lane.b32.xlu0 %v4517_v18, %s4563_s29  ;;  %v2344_v53 = vsel %vm2324_vm6, %v2279_v23, %v10388_v41  ;;  %v10391_v21 = vld [vmem:[#allocation201_spill] sm:$0xff]  ;;  %v2506_v18 = vsel %vm2454_vm8, %v2441_v48, %v1634_v7  ;;  %v120_v23 = vld [vmem:[%s9240_s0 + $0x348] sm:$0xff]  ;;  %v10405_v41 = vld [vmem:[#allocation259_spill] sm:$0xff] }
 0x3db   :  { %v1838_v6 = vpop.permute.xlu1 %1837  ;;  %v2409_v56 = vsel %vm2389_vm7, %v2344_v53, %v10391_v21 }
 0x3dc   :  { %v1774_v40 = vpop.permute.xlu0 %1773  ;;  %v2474_v44 = vsel %vm2454_vm8, %v2409_v56, %v1570_v63  ;;  %v2571_v49 = vsel %vm2519_vm9, %v2506_v18, %v1838_v6  ;;  %v10393_v6 = vld [vmem:[#allocation346_spill] sm:$0xff]  ;;  %v10408_v56 = vld [vmem:[#allocation283_spill] sm:$0xff] }
 0x3dd   :  { %1855 = vrot.lane.b32.xlu1 %v10382_v8, %s4564_s14  ;;  %v4046_v62 = vpop.f32.mrf.mxu0  ;;  %v2539_v1 = vsel %vm2519_vm9, %v2474_v44, %v1774_v40  ;;  %v10394_v40 = vld [vmem:[#allocation332_spill] sm:$0xff]  ;;  %v10396_v8 = vld [vmem:[#allocation129_spill] sm:$0xff] }
 0x3de   :  { %v8262_v15 = vadd.f32 %v4046_v62, %v8234_v54  ;;  %1791 = vrot.lane.b32.xlu0 %v10385_v11, %s4564_s14  ;;  %v2151_v62 = vsel %vm2129_vm3, %v7627_v42, %v10396_v8  ;;  %v2182_v11 = vsel %vm2129_vm3, %v7599_v0, %v10399_v38  ;;  %v66_v42 = vld [vmem:[%s9240_s0 + $0x198] sm:$0xff]  ;;  %v10402_v0 = vld [vmem:[#allocation207_spill] sm:$0xff] }
 0x3df   :  { %v2038_v12 = vpop.permute.xlu1 %2037  ;;  %v2924_v31 = vpop.f32.mrf.mxu0  ;;  %v2216_v45 = vsel %vm2194_vm4, %v2151_v62, %v10401_v19  ;;  %v2215_v2 = vsel %vm2194_vm4, %v2150_v57, %v10402_v0  ;;  %v1725_v44 = vrot.slane %v66_v42, 1  ;;  %v10414_v57 = vld [vmem:[#allocation228_spill] sm:$0xff] }
 0x3e0   :  { %v3244_v3 = vmin.f32 %v8262_v15, 20.0  ;;  %v2635_v5 = vsel %vm2584_vm10, %v2570_v27, %v2038_v12  ;;  %v8276_v14 = vadd.f32 %v8234_v54, %v2924_v31  ;;  %v1974_v58 = vpop.permute.xlu0 %1973  ;;  %v2248_v27 = vsel %vm2194_vm4, %v2183_v29, %v10403_v34  ;;  %v8352_v31 = vld [vmem:[%s9240_s0 + $0x1a0] sm:$0xff]  ;;  %v10415_v29 = vld [vmem:[#allocation363_spill] sm:$0xff] }
 0x3e1   :  { %v2603_v35 = vsel %vm2584_vm10, %v2538_v4, %v1974_v58  ;;  %1857 = vrot.lane.b32.xlu1 %v10390_v36, %s4564_s14  ;;  %4119 = vmatprep.mubr.msk.f32.mxu1 %vm2661_vm11, %v2635_v5  ;;  %v8357_v4 = vld [vmem:[%s9240_s0 + $0x358] sm:$0x3]  ;;  %v2281_v53 = vsel %vm2259_vm5, %v2216_v45, %v10405_v41  ;;  %v2280_v48 = vsel %vm2259_vm5, %v2215_v2, %v10406_v51 }
 0x3e2   :  { %v3309_v59 = vmul.f32 1.442695, %v3244_v3  ;;  %v3243_v24 = vmin.f32 %v8276_v14, 20.0  ;;  %v4094_v52 = vpop.f32.mrf.mxu1  ;;  %1793 = vrot.lane.b32.xlu0 %v10392_v32, %s4564_s14  ;;  %4071 = vmatprep.mubr.msk.f32.mxu0 %vm2661_vm11, %v2603_v35  ;;  %v8362_v3 = vld [vmem:[%s9240_s0 + $0x1a8] sm:$0x3]  ;;  %v10404_v5 = vld [vmem:[#allocation240_spill] sm:$0xff] }
 0x3e3   :  { %v8296_v37 = vadd.f32 %v4094_v52, %v8234_v54  ;;  %v2040_v28 = vpop.permute.xlu1 %2039  ;;  %v2247_v58 = vsel %vm2194_vm4, %v2182_v11, %v10404_v5  ;;  %v10407_v35 = vld [vmem:[#allocation282_spill] sm:$0xff]  ;;  %v1730_v52 = vrot.slane %v120_v23, 1  ;;  %v1731_v32 = vrot.slane %v8341_v39, 1  ;;  %v10416_v11 = vld [vmem:[#allocation364_spill] sm:$0xff] }
 0x3e4   :  { %4160 = vpow2.f32 %v3309_v59  ;;  %v3307_v7 = vmul.f32 1.442695, %v3243_v24  ;;  %v2636_v13 = vsel %vm2584_vm10, %v2571_v49, %v2040_v28  ;;  %v3084_v10 = vpop.f32.mrf.mxu1  ;;  %v1976_v16 = vpop.permute.xlu0 %1975  ;;  %v2313_v36 = vsel %vm2259_vm5, %v2248_v27, %v10407_v35  ;;  %v10409_v59 = vld [vmem:[#allocation315_spill] sm:$0xff] }
 0x3e5   :  { %v3276_v22 = vmin.f32 %v8296_v37, 20.0  ;;  %v8302_v17 = vadd.f32 %v8234_v54, %v3084_v10  ;;  %v2604_v63 = vsel %vm2584_vm10, %v2539_v1, %v1976_v16  ;;  %2057 = vrot.lane.b32.xlu1 %v10393_v6, %s4565_s1  ;;  %4120 = vmatmul.mubr.msk.f32.gmra.mxu1 %vm2661_vm11, %v2636_v13  ;;  %v2312_v18 = vsel %vm2259_vm5, %v2247_v58, %v10408_v56 }
 0x3e6   :  { %4162 = vpow2.f32 %v3307_v7  ;;  %1993 = vrot.lane.b32.xlu0 %v10394_v40, %s4565_s1  ;;  %4072 = vmatmul.mubr.msk.f32.gmra.mxu0 %vm2661_vm11, %v2604_v63  ;;  %v2346_v24 = vsel %vm2324_vm6, %v2281_v53, %v10409_v59  ;;  %v1726_v49 = vrot.slane %v8352_v31, 1  ;;  %v1733_v28 = vrot.slane %v8357_v4, 1  ;;  %v10410_v63 = vld [vmem:[#allocation316_spill] sm:$0xff]  ;;  %v10411_v40 = vld [vmem:[#allocation166_spill] sm:$0xff] }
 0x3e7   :  { %v3373_v50 = vmul.f32 1.442695, %v3276_v22  ;;  %v3275_v26 = vmin.f32 %v8302_v17, 20.0  ;;  %v8312_v20 = vpop.permute.xlu1 %1635  ;;  %v1728_v1 = vrot.slane %v8362_v3, 1  ;;  %v1932_v7 = vrot.slane %v120_v23, 2 }
 0x3e8   :  { %v8314_v55 = vpop.permute.xlu0 %1571  ;;  %v1927_v13 = vrot.slane %v66_v42, 2  ;;  %v1933_v16 = vrot.slane %v8341_v39, 2  ;;  %v1928_v22 = vrot.slane %v8352_v31, 2  ;;  %v2345_v6 = vsel %vm2324_vm6, %v2280_v48, %v10410_v63 }
 0x3e9   :  { %4164 = vpow2.f32 %v3373_v50  ;;  %v3371_v25 = vmul.f32 1.442695, %v3275_v26  ;;  %2059 = vrot.lane.b32.xlu1 %v10395_v33, %s4565_s1  ;;  %v2378_v50 = vsel %vm2324_vm6, %v2313_v36, %v10411_v40  ;;  %v10412_v26 = vld [vmem:[#allocation71_spill] sm:$0xff]  ;;  %v10413_v33 = vld [vmem:[#allocation205_spill] sm:$0xff]  ;;  %v2410_v60 = vsel %vm2389_vm7, %v2345_v6, %v10414_v57 }
 0x3ea   :  { %1995 = vrot.lane.b32.xlu0 %v10400_v61, %s4565_s1  ;;  %v2411_v8 = vsel %vm2389_vm7, %v2346_v24, %v10413_v33  ;;  %v2443_v38 = vsel %vm2389_vm7, %v2378_v50, %v10415_v29  ;;  %v1727_v0 = vsel %vm219_vm0, %v1725_v44, %v1726_v49  ;;  %v1734_v2 = vsel %vm219_vm0, %v1731_v32, %v1733_v28 }
 0x3eb   :  { %4166 = vpow2.f32 %v3371_v25  ;;  %v1638_v12 = vpop.permute.xlu1 %1637  ;;  %v2377_v25 = vsel %vm2324_vm6, %v2312_v18, %v10412_v26  ;;  %v1729_v58 = vsel %vm219_vm0, %v1726_v49, %v1728_v1  ;;  %v1934_v41 = vsel %vm572_vm1, %v1932_v7, %v1933_v16 }
 0x3ec   :  { %v1574_v21 = vpop.permute.xlu0 %1573  ;;  %v2442_v61 = vsel %vm2389_vm7, %v2377_v25, %v10416_v11  ;;  %v1929_v53 = vsel %vm572_vm1, %v1927_v13, %v1928_v22  ;;  %v1935_v51 = vrot.slane %v8357_v4, 2  ;;  %v1930_v18 = vrot.slane %v8362_v3, 2 }
 0x3ed   :  { %1655 = vrot.lane.b32.xlu1 %v120_v23, %s4563_s29  ;;  %v2507_v59 = vsel %vm2454_vm8, %v2442_v61, %v8312_v20  ;;  %v2475_v24 = vsel %vm2454_vm8, %v2410_v60, %v8314_v55  ;;  %v2476_v3 = vsel %vm2454_vm8, %v2411_v8, %v1574_v21 }
 0x3ee   :  { %1591 = vrot.lane.b32.xlu0 %v66_v42, %s4563_s29  ;;  %v1732_v42 = vsel %vm219_vm0, %v1730_v52, %v1731_v32  ;;  %v2508_v52 = vsel %vm2454_vm8, %v2443_v38, %v1638_v12 }
 0x3ef   :  { %v1840_v10 = vpop.permute.xlu1 %1839 }
 0x3f0   :  { %v1776_v62 = vpop.permute.xlu0 %1775  ;;  %v2572_v55 = vsel %vm2519_vm9, %v2507_v59, %v1840_v10 }
 0x3f1   :  { %v4161_v9 = vpop.eup %4160  ;;  %1657 = vrot.lane.b32.xlu1 %v8341_v39, %s4563_s29  ;;  %v4049_v23 = vpop.f32.mrf.mxu0  ;;  %v2540_v40 = vsel %vm2519_vm9, %v2475_v24, %v1776_v62  ;;  %v10422_v24 = vld [vmem:[#allocation209_spill] sm:$0xff] }
 0x3f2   :  { %v3436_v19 = vadd.f32 2.0, %v4161_v9  ;;  %v8402_v45 = vadd.f32 %v4049_v23, %v8234_v54  ;;  %1593 = vrot.lane.b32.xlu0 %v8352_v31, %s4563_s29 }
 0x3f3   :  { %v4163_v34 = vpop.eup %4162  ;;  %v1842_v27 = vpop.permute.xlu1 %1841 }
 0x3f4   :  { %v2934_v5 = vpop.f32.mrf.mxu0  ;;  %v8416_v48 = vmul.f32 %v4161_v9, %v3436_v19  ;;  %v3435_v35 = vadd.f32 2.0, %v4163_v34  ;;  %v3246_v36 = vmin.f32 %v8402_v45, 20.0  ;;  %v1778_v56 = vpop.permute.xlu0 %1777  ;;  %v2573_v29 = vsel %vm2519_vm9, %v2508_v52, %v1842_v27  ;;  %v10423_v52 = vld [vmem:[#allocation241_spill] sm:$0xff] }
 0x3f5   :  { %v8426_v32 = vadd.f32 %v8234_v54, %v2934_v5  ;;  %1859 = vrot.lane.b32.xlu1 %v1732_v42, %s4564_s14  ;;  %v2541_v11 = vsel %vm2519_vm9, %v2476_v3, %v1778_v56  ;;  %v1936_v27 = vsel %vm572_vm1, %v1933_v16, %v1935_v51  ;;  %v10419_v16 = vld [vmem:[#allocation75_spill] sm:$0xff]  ;;  %v10424_v3 = vld [vmem:[#allocation242_spill] sm:$0xff] }
 0x3f6   :  { %v4165_v4 = vpop.eup %4164  ;;  %v3564_v44 = vadd.f32 2.0, %v8416_v48  ;;  %v8430_v49 = vmul.f32 %v4163_v34, %v3435_v35  ;;  %v3313_v28 = vmul.f32 1.442695, %v3246_v36  ;;  %v4097_v1 = vpop.f32.mrf.mxu1  ;;  %1795 = vrot.lane.b32.xlu0 %v1727_v0, %s4564_s14  ;;  %v10417_v35 = vld [vmem:[#allocation132_spill] sm:$0xff]  ;;  %v10418_v36 = vld [vmem:[#allocation134_spill] sm:$0xff]  ;;  %v2185_v31 = vsel %vm2129_vm3, %v7736_v46, %v10419_v16 }
 0x3f7   :  { %v3468_v20 = vadd.f32 2.0, %v4165_v4  ;;  %v3245_v12 = vmin.f32 %v8426_v32, 20.0  ;;  %v8437_v7 = vadd.f32 %v4097_v1, %v8234_v54  ;;  %v2042_v13 = vpop.permute.xlu1 %2041  ;;  %v2152_v39 = vsel %vm2129_vm3, %v7723_v43, %v10418_v36 }
 0x3f8   :  { %v4167_v63 = vpop.eup %4166  ;;  %4168 = vrcp.f32 %v3564_v44  ;;  %v3563_v6 = vadd.f32 2.0, %v8430_v49  ;;  %v2637_v21 = vsel %vm2584_vm10, %v2572_v55, %v2042_v13  ;;  %v3094_v50 = vpop.f32.mrf.mxu1  ;;  %v10427_v55 = vld [vmem:[#allocation284_spill] sm:$0xff] }
 0x3f9   :  { %v1978_v26 = vpop.permute.xlu0 %1977  ;;  %v8442_v25 = vmul.f32 %v4165_v4, %v3468_v20  ;;  %v3467_v33 = vadd.f32 2.0, %v4167_v63  ;;  %4170 = vpow2.f32 %v3313_v28  ;;  %v3311_v10 = vmul.f32 1.442695, %v3245_v12  ;;  %1861 = vrot.lane.b32.xlu1 %v1734_v2, %s4564_s14  ;;  %4122 = vmatprep.mubr.msk.f32.mxu1 %vm2661_vm11, %v2637_v21  ;;  %v10425_v28 = vld [vmem:[#allocation261_spill] sm:$0xff]  ;;  %v10426_v20 = vld [vmem:[#allocation262_spill] sm:$0xff] }
 0x3fa   :  { %4172 = vrcp.f32 %v3563_v6  ;;  %v3278_v8 = vmin.f32 %v8437_v7, 20.0  ;;  %v8448_v9 = vadd.f32 %v8234_v54, %v3094_v50  ;;  %v2605_v62 = vsel %vm2584_vm10, %v2540_v40, %v1978_v26  ;;  %1797 = vrot.lane.b32.xlu0 %v1729_v58, %s4564_s14  ;;  %v10428_v6 = vld [vmem:[#allocation285_spill] sm:$0xff] }
 0x3fb   :  { %v3596_v57 = vadd.f32 2.0, %v8442_v25  ;;  %v8453_v60 = vmul.f32 %v4167_v63, %v3467_v33  ;;  %4174 = vpow2.f32 %v3311_v10  ;;  %4074 = vmatprep.mubr.msk.f32.mxu0 %vm2661_vm11, %v2605_v62  ;;  %v2044_v38 = vpop.permute.xlu1 %2043  ;;  %v1931_v58 = vsel %vm572_vm1, %v1928_v22, %v1930_v18  ;;  %v10420_v22 = vld [vmem:[#allocation77_spill] sm:$0xff]  ;;  %v10421_v18 = vld [vmem:[#allocation208_spill] sm:$0xff] }
 0x3fc   :  { %v3377_v61 = vmul.f32 1.442695, %v3278_v8  ;;  %v3277_v23 = vmin.f32 %v8448_v9, 20.0  ;;  %v2638_v42 = vsel %vm2584_vm10, %v2573_v29, %v2044_v38  ;;  %v2184_v56 = vsel %vm2129_vm3, %v7716_v30, %v10420_v22  ;;  %v10429_v21 = vld [vmem:[#allocation317_spill] sm:$0xff]  ;;  %v10430_v8 = vld [vmem:[#allocation318_spill] sm:$0xff] }
 0x3fd   :  { %v1980_v19 = vpop.permute.xlu0 %1979  ;;  %4176 = vrcp.f32 %v3596_v57  ;;  %v3595_v0 = vadd.f32 2.0, %v8453_v60  ;;  %2061 = vrot.lane.b32.xlu1 %v1934_v41, %s4565_s1  ;;  %4123 = vmatmul.mubr.msk.f32.gmra.mxu1 %vm2661_vm11, %v2638_v42  ;;  %v2250_v4 = vsel %vm2194_vm4, %v2185_v31, %v10423_v52  ;;  %v2249_v46 = vsel %vm2194_vm4, %v2184_v56, %v10424_v3  ;;  %v10431_v57 = vld [vmem:[#allocation336_spill] sm:$0xff]  ;;  %v10432_v38 = vld [vmem:[#allocation337_spill] sm:$0xff] }
 0x3fe   :  { %v2606_v2 = vsel %vm2584_vm10, %v2541_v11, %v1980_v19  ;;  %4178 = vpow2.f32 %v3377_v61  ;;  %v3375_v34 = vmul.f32 1.442695, %v3277_v23  ;;  %1997 = vrot.lane.b32.xlu0 %v1929_v53, %s4565_s1  ;;  %v2153_v53 = vsel %vm2129_vm3, %v7745_v47, %v10417_v35  ;;  %v10434_v35 = vld [vmem:[#allocation366_spill] sm:$0xff] }
 0x3ff   :  { %4075 = vmatmul.mubr.msk.f32.gmra.mxu0 %vm2661_vm11, %v2606_v2  ;;  %4180 = vrcp.f32 %v3595_v0  ;;  %v1640_v5 = vpop.permute.xlu1 %1639  ;;  %v2218_v59 = vsel %vm2194_vm4, %v2153_v53, %v10421_v18  ;;  %v2217_v47 = vsel %vm2194_vm4, %v2152_v39, %v10422_v24  ;;  %v2315_v12 = vsel %vm2259_vm5, %v2250_v4, %v10427_v55  ;;  %v10433_v0 = vld [vmem:[#allocation348_spill] sm:$0xff] }
 0x400   :  { %4182 = vpow2.f32 %v3375_v34  ;;  %v2283_v1 = vsel %vm2259_vm5, %v2218_v59, %v10425_v28  ;;  %v2282_v30 = vsel %vm2259_vm5, %v2217_v47, %v10426_v20  ;;  %v2314_v40 = vsel %vm2259_vm5, %v2249_v46, %v10428_v6 }
 0x401   :  { %v1576_v41 = vpop.permute.xlu0 %1575  ;;  %2063 = vrot.lane.b32.xlu1 %v1936_v27, %s4565_s1  ;;  %v8508_v50 = vsel %vm2324_vm6, %v2283_v1, %v10429_v21  ;;  %v2347_v62 = vsel %vm2324_vm6, %v2282_v30, %v10430_v8  ;;  %v2380_v29 = vsel %vm2324_vm6, %v2315_v12, %v10431_v57  ;;  %v2379_v11 = vsel %vm2324_vm6, %v2314_v40, %v10432_v38 }
 0x402   :  { %1999 = vrot.lane.b32.xlu0 %v1931_v58, %s4565_s1  ;;  %v2444_v53 = vsel %vm2389_vm7, %v2379_v11, %v10434_v35 }
 0x403   :  { %v8483_v51 = vpop.permute.xlu1 %1641 }
 0x405   :  { %v8494_v43 = vpop.permute.xlu0 %1577  ;;  %v4169_v44 = vpop.eup %4168 }
 0x406   :  { %v4052_v13 = vpop.f32.mrf.mxu0  ;;  %v4171_v63 = vpop.eup %4170  ;;  %v3630_v26 = vmul.f32 %v4169_v44, %v8416_v48  ;;  %v2412_v48 = vsel %vm2389_vm7, %v2347_v62, %v10433_v0  ;;  %v10435_v62 = vld [vmem:[#allocation365_spill] sm:$0xff] }
 0x407   :  { %v8512_v33 = vadd.f32 %v4052_v13, %v8234_v54  ;;  %v4173_v10 = vpop.eup %4172  ;;  %v3438_v61 = vadd.f32 2.0, %v4171_v63  ;;  %v1844_v23 = vpop.permute.xlu1 %1843  ;;  %v2445_v57 = vsel %vm2389_vm7, %v2380_v29, %v10435_v62 }
 0x408   :  { %v2944_v42 = vpop.f32.mrf.mxu0  ;;  %v4175_v19 = vpop.eup %4174  ;;  %v3756_v2 = vmul.f32 %v3630_v26, %v8262_v15  ;;  %v3628_v34 = vmul.f32 %v4173_v10, %v8430_v49  ;;  %v2509_v15 = vsel %vm2454_vm8, %v2444_v53, %v1640_v5  ;;  %v2477_v49 = vsel %vm2454_vm8, %v2412_v48, %v1576_v41 }
 0x409   :  { %v3248_v27 = vmin.f32 %v8512_v33, 20.0  ;;  %v1780_v58 = vpop.permute.xlu0 %1779  ;;  %v8527_v36 = vmul.f32 %v4171_v63, %v3438_v61  ;;  %v3437_v39 = vadd.f32 2.0, %v4175_v19  ;;  %v8530_v16 = vadd.f32 %v8234_v54, %v2944_v42  ;;  %v10436_v61 = vld [vmem:[#allocation347_spill] sm:$0xff] }
 0x40a   :  { %v4177_v31 = vpop.eup %4176  ;;  %3820 = vst [vmem:[#allocation2 + $0x8] sm:$0xff] %v3756_v2  ;;  %v3755_v22 = vmul.f32 %v3628_v34, %v8276_v14  ;;  %v4100_v18 = vpop.f32.mrf.mxu1  ;;  %v2574_v14 = vsel %vm2519_vm9, %v2509_v15, %v1844_v23  ;;  %v2542_v40 = vsel %vm2519_vm9, %v2477_v49, %v1780_v58  ;;  %v2413_v23 = vsel %vm2389_vm7, %v8508_v50, %v10436_v61  ;;  %v4519_v49 = vld [vmem:[%s9240_s0 + $0x120] sm:$0xff] }
 0x40b   :  { %v3317_v56 = vmul.f32 1.442695, %v3248_v27  ;;  %v4179_v59 = vpop.eup %4178  ;;  %v3694_v24 = vmul.f32 %v4177_v31, %v8442_v25  ;;  %v3566_v47 = vadd.f32 2.0, %v8527_v36  ;;  %v8537_v52 = vmul.f32 %v4175_v19, %v3437_v39  ;;  %v1846_v44 = vpop.permute.xlu1 %1845  ;;  %v4518_v31 = vld [vmem:[%s9240_s0 + $0x128] sm:$0xff] }
 0x40c   :  { %v3247_v4 = vmin.f32 %v8530_v16, 20.0  ;;  %v4181_v3 = vpop.eup %4180  ;;  %3819 = vst [vmem:[#allocation2] sm:$0xff] %v3755_v22  ;;  %v3470_v46 = vadd.f32 2.0, %v4179_v59  ;;  %v8542_v5 = vadd.f32 %v4100_v18, %v8234_v54  ;;  %v3104_v41 = vpop.f32.mrf.mxu1  ;;  %v2510_v19 = vsel %vm2454_vm8, %v2445_v57, %v8483_v51  ;;  %v10437_v22 = vld [vmem:[#allocation136_spill] sm:$0xff] }
 0x40d   :  { %4184 = vpow2.f32 %v3317_v56  ;;  %v1782_v28 = vpop.permute.xlu0 %1781  ;;  %v4183_v1 = vpop.eup %4182  ;;  %v3788_v25 = vmul.f32 %v3694_v24, %v8296_v37  ;;  %v3692_v20 = vmul.f32 %v4181_v3, %v8453_v60  ;;  %v3565_v30 = vadd.f32 2.0, %v8537_v52  ;;  %v10438_v56 = vld [vmem:[#allocation138_spill] sm:$0xff]  ;;  %v4521_v3 = vld [vmem:[%s9240_s0 + $0x2d0] sm:$0xff] }
 0x40e   :  { %4186 = vrcp.f32 %v3566_v47  ;;  %v8547_v55 = vmul.f32 %v4179_v59, %v3470_v46  ;;  %v3469_v12 = vadd.f32 2.0, %v4183_v1  ;;  %v3315_v13 = vmul.f32 1.442695, %v3247_v4  ;;  %v4520_v47 = vld [vmem:[%s9240_s0 + $0x2d8] sm:$0xff]  ;;  %v10440_v46 = vld [vmem:[#allocation82_spill] sm:$0xff] }
 0x40f   :  { %v3280_v63 = vmin.f32 %v8542_v5, 20.0  ;;  %3852 = vst [vmem:[#allocation2 + $0x108] sm:$0xff] %v3788_v25  ;;  %v3787_v6 = vmul.f32 %v3692_v20, %v8302_v17  ;;  %4188 = vrcp.f32 %v3565_v30  ;;  %v8553_v21 = vadd.f32 %v8234_v54, %v3104_v41  ;;  %v2046_v37 = vpop.permute.xlu1 %2045  ;;  %v10439_v4 = vld [vmem:[#allocation80_spill] sm:$0xff]  ;;  %v10441_v41 = vld [vmem:[#allocation211_spill] sm:$0xff] }
 0x410   :  { %v3598_v60 = vadd.f32 2.0, %v8547_v55  ;;  %v8556_v26 = vmul.f32 %v4183_v1, %v3469_v12  ;;  %4190 = vpow2.f32 %v3315_v13  ;;  %v2639_v38 = vsel %vm2584_vm10, %v2574_v14, %v2046_v37  ;;  %v10442_v12 = vld [vmem:[#allocation243_spill] sm:$0xff] }
 0x411   :  { %v3381_v10 = vmul.f32 1.442695, %v3280_v63  ;;  %v1982_v8 = vpop.permute.xlu0 %1981  ;;  %3851 = vst [vmem:[#allocation2 + $0x100] sm:$0xff] %v3787_v6  ;;  %v3279_v17 = vmin.f32 %v8553_v21, 20.0  ;;  %4125 = vmatprep.mubr.msk.f32.mxu1 %vm2661_vm11, %v2639_v38  ;;  %v2478_v29 = vsel %vm2454_vm8, %v2413_v23, %v8494_v43  ;;  %v2575_v0 = vsel %vm2519_vm9, %v2510_v19, %v1846_v44 }
 0x412   :  { %v2607_v11 = vsel %vm2584_vm10, %v2542_v40, %v1982_v8  ;;  %4192 = vrcp.f32 %v3598_v60  ;;  %v3597_v42 = vadd.f32 2.0, %v8556_v26  ;;  %v2543_v50 = vsel %vm2519_vm9, %v2478_v29, %v1782_v28  ;;  %v10444_v8 = vld [vmem:[#allocation264_spill] sm:$0xff]  ;;  %v10445_v29 = vld [vmem:[#allocation287_spill] sm:$0xff] }
 0x413   :  { %4077 = vmatprep.mubr.msk.f32.mxu0 %vm2661_vm11, %v2607_v11  ;;  %4194 = vpow2.f32 %v3381_v10  ;;  %v3379_v48 = vmul.f32 1.442695, %v3279_v17  ;;  %v2048_v2 = vpop.permute.xlu1 %2047  ;;  %v8588_v15 = vsel %vm2129_vm3, %v4518_v31, %v10437_v22  ;;  %v2154_v18 = vsel %vm2129_vm3, %v4519_v49, %v10438_v56  ;;  %v10443_v10 = vld [vmem:[#allocation244_spill] sm:$0xff]  ;;  %v10447_v22 = vld [vmem:[#allocation339_spill] sm:$0xff] }
 0x414   :  { %4196 = vrcp.f32 %v3597_v42  ;;  %v2640_v34 = vsel %vm2584_vm10, %v2575_v0, %v2048_v2  ;;  %v2187_v44 = vsel %vm2129_vm3, %v4520_v47, %v10439_v4  ;;  %v2186_v14 = vsel %vm2129_vm3, %v4521_v3, %v10440_v46 }
 0x415   :  { %v1984_v27 = vpop.permute.xlu0 %1983  ;;  %4198 = vpow2.f32 %v3379_v48  ;;  %4126 = vmatmul.mubr.msk.f32.gmra.mxu1 %vm2661_vm11, %v2640_v34  ;;  %v2219_v28 = vsel %vm2194_vm4, %v2154_v18, %v10441_v41  ;;  %v2252_v13 = vsel %vm2194_vm4, %v2187_v44, %v10442_v12  ;;  %v10446_v48 = vld [vmem:[#allocation320_spill] sm:$0xff]  ;;  %v10448_v41 = vld [vmem:[#allocation350_spill] sm:$0xff] }
 0x416   :  { %v2608_v51 = vsel %vm2584_vm10, %v2543_v50, %v1984_v27  ;;  %v2284_v62 = vsel %vm2259_vm5, %v2219_v28, %v10444_v8 }
 0x417   :  { %4078 = vmatmul.mubr.msk.f32.gmra.mxu0 %vm2661_vm11, %v2608_v51  ;;  %v8579_v58 = vpop.permute.xlu1 %1643  ;;  %v2349_v2 = vsel %vm2324_vm6, %v2284_v62, %v10446_v48 }
 0x418   :  { %v2414_v28 = vsel %vm2389_vm7, %v2349_v2, %v10448_v41 }
 0x419   :  { %v8581_v43 = vpop.permute.xlu0 %1579  ;;  %v4055_v53 = vpop.f32.mrf.mxu0 }
 0x41a   :  { %v4185_v35 = vpop.eup %4184  ;;  %v8596_v24 = vadd.f32 %v4055_v53, %v8234_v54  ;;  %v2479_v62 = vsel %vm2454_vm8, %v2414_v28, %v8581_v43 }
 0x41b   :  { %v4187_v39 = vpop.eup %4186  ;;  %v3440_v59 = vadd.f32 2.0, %v4185_v35  ;;  %v8611_v25 = vpop.permute.xlu1 %1645 }
 0x41c   :  { %v3634_v1 = vmul.f32 %v4187_v39, %v8527_v36  ;;  %v2954_v20 = vpop.f32.mrf.mxu0  ;;  %v4189_v30 = vpop.eup %4188  ;;  %v3250_v6 = vmin.f32 %v8596_v24, 20.0  ;;  %v2251_v36 = vsel %vm2194_vm4, %v2186_v14, %v10443_v10 }
 0x41d   :  { %v8615_v63 = vmul.f32 %v4185_v35, %v3440_v59  ;;  %v8619_v40 = vadd.f32 %v8234_v54, %v2954_v20  ;;  %v8621_v37 = vpop.permute.xlu0 %1581  ;;  %v4191_v60 = vpop.eup %4190  ;;  %v3632_v17 = vmul.f32 %v4189_v30, %v8537_v52  ;;  %v2316_v0 = vsel %vm2259_vm5, %v2251_v36, %v10445_v29  ;;  %v10451_v36 = vld [vmem:[#allocation286_spill] sm:$0xff]  ;;  %v10454_v29 = vld [vmem:[#allocation319_spill] sm:$0xff] }
 0x41e   :  { %v3758_v57 = vmul.f32 %v3634_v1, %v8402_v45  ;;  %v3439_v11 = vadd.f32 2.0, %v4191_v60  ;;  %v3321_v61 = vmul.f32 1.442695, %v3250_v6  ;;  %v4103_v42 = vpop.f32.mrf.mxu1  ;;  %v2381_v49 = vsel %vm2324_vm6, %v2316_v0, %v10447_v22  ;;  %v10449_v1 = vld [vmem:[#allocation368_spill] sm:$0xff]  ;;  %v10455_v0 = vld [vmem:[#allocation367_spill] sm:$0xff] }
 0x41f   :  { %v3568_v38 = vadd.f32 2.0, %v8615_v63  ;;  %v3249_v23 = vmin.f32 %v8619_v40, 20.0  ;;  %v4193_v19 = vpop.eup %4192  ;;  %v3757_v50 = vmul.f32 %v3632_v17, %v8426_v32  ;;  %v8637_v45 = vadd.f32 %v4103_v42, %v8234_v54  ;;  %v1848_v52 = vpop.permute.xlu1 %1847 }
 0x420   :  { %3822 = vst [vmem:[#allocation2 + $0x18] sm:$0xff] %v3758_v57  ;;  %v4195_v34 = vpop.eup %4194  ;;  %v3698_v27 = vmul.f32 %v4193_v19, %v8547_v55  ;;  %v8640_v51 = vmul.f32 %v4191_v60, %v3439_v11  ;;  %v3114_v53 = vpop.f32.mrf.mxu1  ;;  %v2446_v20 = vsel %vm2389_vm7, %v2381_v49, %v10449_v1  ;;  %v10450_v60 = vld [vmem:[#allocation210_spill] sm:$0xff]  ;;  %v2317_v8 = vsel %vm2259_vm5, %v2252_v13, %v10451_v36 }
 0x421   :  { %4200 = vrcp.f32 %v3568_v38  ;;  %v3319_v35 = vmul.f32 1.442695, %v3249_v23  ;;  %v1784_v39 = vpop.permute.xlu0 %1783  ;;  %v4197_v31 = vpop.eup %4196  ;;  %3821 = vst [vmem:[#allocation2 + $0x10] sm:$0xff] %v3757_v50  ;;  %v3472_v56 = vadd.f32 2.0, %v4195_v34  ;;  %v3282_v32 = vmin.f32 %v8637_v45, 20.0  ;;  %v10453_v23 = vld [vmem:[#allocation338_spill] sm:$0xff] }
 0x422   :  { %4202 = vpow2.f32 %v3321_v61  ;;  %v4199_v18 = vpop.eup %4198  ;;  %v3790_v59 = vmul.f32 %v3698_v27, %v8437_v7  ;;  %v3696_v55 = vmul.f32 %v4197_v31, %v8556_v26  ;;  %v3567_v47 = vadd.f32 2.0, %v8640_v51  ;;  %v10452_v61 = vld [vmem:[#allocation263_spill] sm:$0xff]  ;;  %v10456_v50 = vld [vmem:[#allocation349_spill] sm:$0xff] }
 0x423   :  { %4204 = vpow2.f32 %v3319_v35  ;;  %v8648_v4 = vmul.f32 %v4195_v34, %v3472_v56  ;;  %v3471_v44 = vadd.f32 2.0, %v4199_v18  ;;  %v3385_v3 = vmul.f32 1.442695, %v3282_v32  ;;  %v1850_v14 = vpop.permute.xlu1 %1849 }
 0x424   :  { %v8651_v46 = vadd.f32 %v8234_v54, %v3114_v53  ;;  %3854 = vst [vmem:[#allocation2 + $0x118] sm:$0xff] %v3790_v59  ;;  %v3789_v7 = vmul.f32 %v3696_v55, %v8448_v9  ;;  %4206 = vrcp.f32 %v3567_v47  ;;  %v2220_v10 = vsel %vm2194_vm4, %v8588_v15, %v10450_v60 }
 0x425   :  { %v1786_v26 = vpop.permute.xlu0 %1785  ;;  %v3600_v30 = vadd.f32 2.0, %v8648_v4  ;;  %v8659_v12 = vmul.f32 %v4199_v18, %v3471_v44  ;;  %4208 = vpow2.f32 %v3385_v3  ;;  %v2511_v9 = vsel %vm2454_vm8, %v2446_v20, %v8579_v58 }
 0x426   :  { %v3281_v6 = vmin.f32 %v8651_v46, 20.0  ;;  %3853 = vst [vmem:[#allocation2 + $0x110] sm:$0xff] %v3789_v7  ;;  %v2576_v17 = vsel %vm2519_vm9, %v2511_v9, %v1848_v52  ;;  %v2285_v15 = vsel %vm2259_vm5, %v2220_v10, %v10452_v61  ;;  %v2382_v13 = vsel %vm2324_vm6, %v2317_v8, %v10453_v23 }
 0x427   :  { %4210 = vrcp.f32 %v3600_v30  ;;  %v3599_v57 = vadd.f32 2.0, %v8659_v12  ;;  %v2050_v11 = vpop.permute.xlu1 %2049  ;;  %v2544_v42 = vsel %vm2519_vm9, %v2479_v62, %v1784_v39  ;;  %v2350_v43 = vsel %vm2324_vm6, %v2285_v15, %v10454_v29 }
 0x428   :  { %v3383_v38 = vmul.f32 1.442695, %v3281_v6  ;;  %v2641_v58 = vsel %vm2584_vm10, %v2576_v17, %v2050_v11  ;;  %v2447_v48 = vsel %vm2389_vm7, %v2382_v13, %v10455_v0  ;;  %v2415_v52 = vsel %vm2389_vm7, %v2350_v43, %v10456_v50  ;;  %v4522_v50 = vld [vmem:[%s9240_s0 + $0x138] sm:$0xff] }
 0x429   :  { %v1986_v19 = vpop.permute.xlu0 %1985  ;;  %4212 = vrcp.f32 %v3599_v57  ;;  %4128 = vmatprep.mubr.msk.f32.mxu1 %vm2661_vm11, %v2641_v58  ;;  %v2512_v34 = vsel %vm2454_vm8, %v2447_v48, %v8611_v25  ;;  %v2480_v27 = vsel %vm2454_vm8, %v2415_v52, %v8621_v37 }
 0x42a   :  { %v2609_v2 = vsel %vm2584_vm10, %v2544_v42, %v1986_v19  ;;  %4214 = vpow2.f32 %v3383_v38  ;;  %v2577_v35 = vsel %vm2519_vm9, %v2512_v34, %v1850_v14  ;;  %v2545_v39 = vsel %vm2519_vm9, %v2480_v27, %v1786_v26 }
 0x42b   :  { %4080 = vmatprep.mubr.msk.f32.mxu0 %vm2661_vm11, %v2609_v2  ;;  %v2052_v53 = vpop.permute.xlu1 %2051 }
 0x42c   :  { %v2642_v31 = vsel %vm2584_vm10, %v2577_v35, %v2052_v53  ;;  %v10459_v35 = vld [vmem:[#allocation246_spill] sm:$0xff] }
 0x42d   :  { %v1988_v22 = vpop.permute.xlu0 %1987  ;;  %v4058_v32 = vpop.f32.mrf.mxu0  ;;  %4129 = vmatmul.mubr.msk.f32.gmra.mxu1 %vm2661_vm11, %v2642_v31 }
 0x42e   :  { %v4201_v49 = vpop.eup %4200  ;;  %v2610_v56 = vsel %vm2584_vm10, %v2545_v39, %v1988_v22  ;;  %v8699_v59 = vadd.f32 %v4058_v32, %v8234_v54  ;;  %v10460_v22 = vld [vmem:[#allocation213_spill] sm:$0xff] }
 0x42f   :  { %v4203_v25 = vpop.eup %4202  ;;  %v3638_v18 = vmul.f32 %v4201_v49, %v8615_v63  ;;  %4081 = vmatmul.mubr.msk.f32.gmra.mxu0 %vm2661_vm11, %v2610_v56  ;;  %v8702_v47 = vpop.permute.xlu1 %1647  ;;  %v10461_v56 = vld [vmem:[#allocation289_spill] sm:$0xff] }
 0x430   :  { %v4205_v37 = vpop.eup %4204  ;;  %v3442_v55 = vadd.f32 2.0, %v4203_v25  ;;  %v2964_v44 = vpop.f32.mrf.mxu0  ;;  %v3252_v41 = vmin.f32 %v8699_v59, 20.0 }
 0x431   :  { %v3760_v3 = vmul.f32 %v3638_v18, %v8512_v33  ;;  %v3441_v14 = vadd.f32 2.0, %v4205_v37  ;;  %v8706_v28 = vpop.permute.xlu0 %1583  ;;  %v4207_v1 = vpop.eup %4206  ;;  %v8711_v63 = vadd.f32 %v8234_v54, %v2964_v44  ;;  %v10462_v18 = vld [vmem:[#allocation266_spill] sm:$0xff] }
 0x432   :  { %v8708_v20 = vmul.f32 %v4203_v25, %v3442_v55  ;;  %v4209_v7 = vpop.eup %4208  ;;  %v3636_v26 = vmul.f32 %v4207_v1, %v8640_v51  ;;  %v3325_v6 = vmul.f32 1.442695, %v3252_v41  ;;  %v4106_v60 = vpop.f32.mrf.mxu1  ;;  %v10464_v41 = vld [vmem:[#allocation140_spill] sm:$0xff] }
 0x433   :  { %3824 = vst [vmem:[#allocation2 + $0x28] sm:$0xff] %v3760_v3  ;;  %v8714_v30 = vmul.f32 %v4205_v37, %v3441_v14  ;;  %v3474_v10 = vadd.f32 2.0, %v4209_v7  ;;  %v3251_v36 = vmin.f32 %v8711_v63, 20.0  ;;  %v8719_v8 = vadd.f32 %v4106_v60, %v8234_v54  ;;  %v8721_v9 = vpop.permute.xlu1 %1649  ;;  %v4524_v14 = vld [vmem:[%s9240_s0 + $0x140] sm:$0xff]  ;;  %v10466_v60 = vld [vmem:[#allocation322_spill] sm:$0xff] }
 0x434   :  { %v3570_v33 = vadd.f32 2.0, %v8708_v20  ;;  %v4211_v62 = vpop.eup %4210  ;;  %v3759_v57 = vmul.f32 %v3636_v26, %v8530_v16  ;;  %4216 = vpow2.f32 %v3325_v6  ;;  %v3124_v51 = vpop.f32.mrf.mxu1  ;;  %v2157_v1 = vsel %vm2129_vm3, %v4524_v14, %v10464_v41  ;;  %v10465_v26 = vld [vmem:[#allocation85_spill] sm:$0xff] }
 0x435   :  { %v3569_v17 = vadd.f32 2.0, %v8714_v30  ;;  %v8725_v38 = vpop.permute.xlu0 %1585  ;;  %v3702_v11 = vmul.f32 %v4211_v62, %v8648_v4  ;;  %v8728_v61 = vmul.f32 %v4209_v7, %v3474_v10  ;;  %v3323_v15 = vmul.f32 1.442695, %v3251_v36  ;;  %v4525_v7 = vld [vmem:[%s9240_s0 + $0x2f0] sm:$0xff]  ;;  %v10467_v10 = vld [vmem:[#allocation370_spill] sm:$0xff]  ;;  %v10468_v62 = vld [vmem:[#allocation245_spill] sm:$0xff] }
 0x436   :  { %4218 = vrcp.f32 %v3570_v33  ;;  %v4213_v23 = vpop.eup %4212  ;;  %3823 = vst [vmem:[#allocation2 + $0x20] sm:$0xff] %v3759_v57  ;;  %v3284_v13 = vmin.f32 %v8719_v8, 20.0  ;;  %v8732_v42 = vadd.f32 %v8234_v54, %v3124_v51  ;;  %v10457_v54 = vld [vmem:[#allocation142_spill] sm:$0xff]  ;;  %v2189_v6 = vsel %vm2129_vm3, %v4525_v7, %v10465_v26 }
 0x437   :  { %4220 = vrcp.f32 %v3569_v17  ;;  %v4215_v16 = vpop.eup %4214  ;;  %v3792_v58 = vmul.f32 %v3702_v11, %v8542_v5  ;;  %v3700_v19 = vmul.f32 %v4213_v23, %v8659_v12  ;;  %v3602_v29 = vadd.f32 2.0, %v8728_v61  ;;  %v1852_v4 = vpop.permute.xlu1 %1851  ;;  %v4523_v5 = vld [vmem:[%s9240_s0 + $0x2e8] sm:$0xff]  ;;  %v10458_v12 = vld [vmem:[#allocation87_spill] sm:$0xff]  ;;  %v10469_v17 = vld [vmem:[#allocation352_spill] sm:$0xff] }
 0x438   :  { %4222 = vpow2.f32 %v3323_v15  ;;  %v3473_v43 = vadd.f32 2.0, %v4215_v16  ;;  %v3389_v0 = vmul.f32 1.442695, %v3284_v13  ;;  %v3283_v48 = vmin.f32 %v8732_v42, 20.0  ;;  %v10470_v15 = vld [vmem:[#allocation212_spill] sm:$0xff] }
 0x439   :  { %v1788_v2 = vpop.permute.xlu0 %1787  ;;  %v2156_v52 = vsel %vm2129_vm3, %v4522_v50, %v10457_v54  ;;  %v2188_v34 = vsel %vm2129_vm3, %v4523_v5, %v10458_v12  ;;  %3856 = vst [vmem:[#allocation2 + $0x128] sm:$0xff] %v3792_v58  ;;  %v3791_v27 = vmul.f32 %v3700_v19, %v8553_v21  ;;  %4224 = vrcp.f32 %v3602_v29  ;;  %v10463_v21 = vld [vmem:[#allocation340_spill] sm:$0xff]  ;;  %v10474_v12 = vld [vmem:[#allocation321_spill] sm:$0xff] }
 0x43a   :  { %v2253_v53 = vsel %vm2194_vm4, %v2188_v34, %v10459_v35  ;;  %v8751_v39 = vmul.f32 %v4215_v16, %v3473_v43  ;;  %4226 = vpow2.f32 %v3389_v0  ;;  %v3387_v31 = vmul.f32 1.442695, %v3283_v48  ;;  %v10471_v13 = vld [vmem:[#allocation288_spill] sm:$0xff]  ;;  %v10472_v43 = vld [vmem:[#allocation265_spill] sm:$0xff]  ;;  %v10473_v48 = vld [vmem:[#allocation86_spill] sm:$0xff] }
 0x43b   :  { %v2221_v49 = vsel %vm2194_vm4, %v2156_v52, %v10460_v22  ;;  %v2318_v32 = vsel %vm2259_vm5, %v2253_v53, %v10461_v56  ;;  %3855 = vst [vmem:[#allocation2 + $0x120] sm:$0xff] %v3791_v27  ;;  %v1854_v25 = vpop.permute.xlu1 %1853  ;;  %v2254_v57 = vsel %vm2194_vm4, %v2189_v6, %v10468_v62  ;;  %v2222_v23 = vsel %vm2194_vm4, %v2157_v1, %v10470_v15  ;;  %v10475_v27 = vld [vmem:[#allocation369_spill] sm:$0xff]  ;;  %v10476_v53 = vld [vmem:[#allocation351_spill] sm:$0xff] }
 0x43c   :  { %v2286_v37 = vsel %vm2259_vm5, %v2221_v49, %v10462_v18  ;;  %v2383_v55 = vsel %vm2324_vm6, %v2318_v32, %v10463_v21  ;;  %v3601_v44 = vadd.f32 2.0, %v8751_v39  ;;  %4228 = vpow2.f32 %v3387_v31 }
 0x43d   :  { %v1790_v3 = vpop.permute.xlu0 %1789  ;;  %v2351_v33 = vsel %vm2324_vm6, %v2286_v37, %v10466_v60  ;;  %v2448_v36 = vsel %vm2389_vm7, %v2383_v55, %v10467_v10  ;;  %v2319_v16 = vsel %vm2259_vm5, %v2254_v57, %v10471_v13  ;;  %v2287_v0 = vsel %vm2259_vm5, %v2222_v23, %v10472_v43 }
 0x43e   :  { %v2416_v51 = vsel %vm2389_vm7, %v2351_v33, %v10469_v17  ;;  %4230 = vrcp.f32 %v3601_v44  ;;  %v2513_v11 = vsel %vm2454_vm8, %v2448_v36, %v8702_v47  ;;  %v2384_v50 = vsel %vm2324_vm6, %v2319_v16, %v10473_v48 }
 0x43f   :  { %v2481_v58 = vsel %vm2454_vm8, %v2416_v51, %v8706_v28  ;;  %v2578_v19 = vsel %vm2519_vm9, %v2513_v11, %v1852_v4  ;;  %v2054_v29 = vpop.permute.xlu1 %2053  ;;  %v2352_v34 = vsel %vm2324_vm6, %v2287_v0, %v10474_v12  ;;  %v2449_v28 = vsel %vm2389_vm7, %v2384_v50, %v10475_v27 }
 0x440   :  { %v2546_v47 = vsel %vm2519_vm9, %v2481_v58, %v1788_v2  ;;  %v2643_v54 = vsel %vm2584_vm10, %v2578_v19, %v2054_v29  ;;  %v2417_v31 = vsel %vm2389_vm7, %v2352_v34, %v10476_v53  ;;  %v2514_v2 = vsel %vm2454_vm8, %v2449_v28, %v8721_v9  ;;  %v4527_v53 = vld [vmem:[%s9240_s0 + $0x300] sm:$0xff] }
 0x441   :  { %v1990_v52 = vpop.permute.xlu0 %1989  ;;  %v4217_v5 = vpop.eup %4216  ;;  %4131 = vmatprep.mubr.msk.f32.mxu1 %vm2661_vm11, %v2643_v54  ;;  %v2482_v32 = vsel %vm2454_vm8, %v2417_v31, %v8725_v38  ;;  %v2579_v18 = vsel %vm2519_vm9, %v2514_v2, %v1854_v25  ;;  %v10477_v31 = vld [vmem:[#allocation92_spill] sm:$0xff]  ;;  %v10478_v2 = vld [vmem:[#allocation146_spill] sm:$0xff] }
 0x442   :  { %v2611_v4 = vsel %vm2584_vm10, %v2546_v47, %v1990_v52  ;;  %v3444_v22 = vadd.f32 2.0, %v4217_v5  ;;  %v2547_v14 = vsel %vm2519_vm9, %v2482_v32, %v1790_v3  ;;  %v8824_v3 = vld [vmem:[%s9242_s2] ss:$0 sm:$0xff] }
 0x443   :  { %v4219_v35 = vpop.eup %4218  ;;  %4083 = vmatprep.mubr.msk.f32.mxu0 %vm2661_vm11, %v2611_v4  ;;  %v2056_v37 = vpop.permute.xlu1 %2055 }
 0x444   :  { %v4221_v49 = vpop.eup %4220  ;;  %v3642_v56 = vmul.f32 %v4219_v35, %v8708_v20  ;;  %v8811_v44 = vmul.f32 %v4217_v5, %v3444_v22  ;;  %v2644_v9 = vsel %vm2584_vm10, %v2579_v18, %v2056_v37  ;;  %v2190_v22 = vsel %vm2129_vm3, %v4527_v53, %v10477_v31  ;;  %v10480_v18 = vld [vmem:[#allocation215_spill] sm:$0xff]  ;;  %v10493_v53 = vld [vmem:[#allocation341_spill] sm:$0xff] }
 0x445   :  { %v4223_v21 = vpop.eup %4222  ;;  %v3640_v55 = vmul.f32 %v4221_v49, %v8714_v30  ;;  %v1992_v41 = vpop.permute.xlu0 %1991  ;;  %4132 = vmatmul.mubr.msk.f32.gmra.mxu1 %vm2661_vm11, %v2644_v9  ;;  %v4529_v9 = vld [vmem:[%s9240_s0 + $0x158] sm:$0xff] }
 0x446   :  { %v3762_v1 = vmul.f32 %v3642_v56, %v8596_v24  ;;  %v3443_v7 = vadd.f32 2.0, %v4223_v21  ;;  %v2612_v20 = vsel %vm2584_vm10, %v2547_v14, %v1992_v41  ;;  %v4109_v26 = vpop.f32.mrf.mxu1  ;;  %v4225_v38 = vpop.eup %4224  ;;  %v3572_v30 = vadd.f32 2.0, %v8811_v44  ;;  %v10479_v56 = vld [vmem:[#allocation248_spill] sm:$0xff] }
 0x447   :  { %v3761_v25 = vmul.f32 %v3640_v55, %v8619_v40  ;;  %v4061_v6 = vpop.f32.mrf.mxu0  ;;  %4084 = vmatmul.mubr.msk.f32.gmra.mxu0 %vm2661_vm11, %v2612_v20  ;;  %v8827_v24 = vadd.f32 %v8824_v3, %v4109_v26  ;;  %v4227_v60 = vpop.eup %4226  ;;  %v3706_v33 = vmul.f32 %v4225_v38, %v8728_v61  ;;  %v2255_v32 = vsel %vm2194_vm4, %v2190_v22, %v10479_v56  ;;  %v10482_v41 = vld [vmem:[#allocation144_spill] sm:$0xff]  ;;  %v10484_v26 = vld [vmem:[#allocation342_spill] sm:$0xff] }
 0x448   :  { %3826 = vst [vmem:[#allocation2 + $0x38] sm:$0xff] %v3762_v1  ;;  %v8830_v10 = vmul.f32 %v4223_v21, %v3443_v7  ;;  %v8833_v40 = vadd.f32 %v8824_v3, %v4061_v6  ;;  %v8835_v36 = vpop.permute.xlu1 %1651  ;;  %v3134_v62 = vpop.f32.mrf.mxu1  ;;  %4232 = vrcp.f32 %v3572_v30  ;;  %v3476_v57 = vadd.f32 2.0, %v4227_v60  ;;  %v10481_v21 = vld [vmem:[#allocation291_spill] sm:$0xff]  ;;  %v10483_v7 = vld [vmem:[#allocation268_spill] sm:$0xff]  ;;  %v4530_v6 = vld [vmem:[%s9240_s0 + $0x308] sm:$0xff] }
 0x449   :  { %3825 = vst [vmem:[#allocation2 + $0x30] sm:$0xff] %v3761_v25  ;;  %v3286_v17 = vmin.f32 %v8827_v24, 20.0  ;;  %v2974_v51 = vpop.f32.mrf.mxu0  ;;  %v1588_v11 = vpop.permute.xlu0 %1587  ;;  %v3794_v23 = vmul.f32 %v3706_v33, %v8637_v45  ;;  %v8847_v43 = vadd.f32 %v8824_v3, %v3134_v62  ;;  %v2320_v55 = vsel %vm2259_vm5, %v2255_v32, %v10481_v21  ;;  %v10486_v62 = vld [vmem:[#allocation214_spill] sm:$0xff]  ;;  %v10495_v32 = vld [vmem:[#allocation371_spill] sm:$0xff] }
 0x44a   :  { %v4229_v15 = vpop.eup %4228  ;;  %v3571_v61 = vadd.f32 2.0, %v8830_v10  ;;  %v3254_v13 = vmin.f32 %v8833_v40, 20.0  ;;  %v8842_v16 = vadd.f32 %v8824_v3, %v2974_v51  ;;  %v8844_v58 = vmul.f32 %v4227_v60, %v3476_v57  ;;  %v10485_v60 = vld [vmem:[#allocation90_spill] sm:$0xff] }
 0x44b   :  { %v3475_v19 = vadd.f32 2.0, %v4229_v15  ;;  %v3393_v29 = vmul.f32 1.442695, %v3286_v17  ;;  %v4231_v0 = vpop.eup %4230  ;;  %3858 = vst [vmem:[#allocation2 + $0x138] sm:$0xff] %v3794_v23  ;;  %v3285_v34 = vmin.f32 %v8847_v43, 20.0  ;;  %v2159_v1 = vsel %vm2129_vm3, %v4529_v9, %v10482_v41  ;;  %v10487_v17 = vld [vmem:[#allocation324_spill] sm:$0xff] }
 0x44c   :  { %4234 = vrcp.f32 %v3571_v61  ;;  %v3329_v48 = vmul.f32 1.442695, %v3254_v13  ;;  %v3253_v45 = vmin.f32 %v8842_v16, 20.0  ;;  %v8850_v50 = vpop.permute.xlu1 %1653  ;;  %v3704_v47 = vmul.f32 %v4231_v0, %v8751_v39  ;;  %v10489_v61 = vld [vmem:[#allocation247_spill] sm:$0xff] }
 0x44d   :  { %v3604_v54 = vadd.f32 2.0, %v8844_v58  ;;  %v8854_v52 = vmul.f32 %v4229_v15, %v3475_v19  ;;  %4236 = vpow2.f32 %v3393_v29  ;;  %v8856_v5 = vpop.permute.xlu0 %1589  ;;  %v3391_v4 = vmul.f32 1.442695, %v3285_v34  ;;  %v10488_v15 = vld [vmem:[#allocation372_spill] sm:$0xff]  ;;  %v10490_v19 = vld [vmem:[#allocation354_spill] sm:$0xff] }
 0x44e   :  { %4238 = vpow2.f32 %v3329_v48  ;;  %v3327_v12 = vmul.f32 1.442695, %v3253_v45  ;;  %v3793_v27 = vmul.f32 %v3704_v47, %v8651_v46  ;;  %v4528_v46 = vld [vmem:[%s9240_s0 + $0x150] sm:$0xff]  ;;  %v2385_v38 = vsel %vm2324_vm6, %v2320_v55, %v10484_v26 }
 0x44f   :  { %4240 = vrcp.f32 %v3604_v54  ;;  %v3603_v28 = vadd.f32 2.0, %v8854_v52  ;;  %v2158_v49 = vsel %vm2129_vm3, %v4528_v46, %v10478_v2  ;;  %v2191_v33 = vsel %vm2129_vm3, %v4530_v6, %v10485_v60  ;;  %v10491_v45 = vld [vmem:[#allocation267_spill] sm:$0xff]  ;;  %v10492_v54 = vld [vmem:[#allocation290_spill] sm:$0xff] }
 0x450   :  { %4242 = vpow2.f32 %v3327_v12  ;;  %v1856_v35 = vpop.permute.xlu1 %1855  ;;  %3857 = vst [vmem:[#allocation2 + $0x130] sm:$0xff] %v3793_v27  ;;  %v2223_v37 = vsel %vm2194_vm4, %v2158_v49, %v10480_v18  ;;  %v2224_v57 = vsel %vm2194_vm4, %v2159_v1, %v10486_v62  ;;  %v2450_v23 = vsel %vm2389_vm7, %v2385_v38, %v10488_v15  ;;  %v10494_v49 = vld [vmem:[#allocation323_spill] sm:$0xff] }
 0x451   :  { %4244 = vrcp.f32 %v3603_v28  ;;  %v1792_v39 = vpop.permute.xlu0 %1791  ;;  %v2288_v20 = vsel %vm2259_vm5, %v2223_v37, %v10483_v7  ;;  %v2256_v13 = vsel %vm2194_vm4, %v2191_v33, %v10489_v61  ;;  %v2515_v48 = vsel %vm2454_vm8, %v2450_v23, %v8835_v36 }
 0x452   :  { %4246 = vpow2.f32 %v3391_v4  ;;  %v2353_v51 = vsel %vm2324_vm6, %v2288_v20, %v10487_v17  ;;  %v2289_v47 = vsel %vm2259_vm5, %v2224_v57, %v10491_v45  ;;  %v2321_v12 = vsel %vm2259_vm5, %v2256_v13, %v10492_v54 }
 0x453   :  { %v2418_v29 = vsel %vm2389_vm7, %v2353_v51, %v10490_v19  ;;  %v2580_v27 = vsel %vm2519_vm9, %v2515_v48, %v1856_v35  ;;  %v2386_v31 = vsel %vm2324_vm6, %v2321_v12, %v10493_v53  ;;  %v2354_v56 = vsel %vm2324_vm6, %v2289_v47, %v10494_v49 }
 0x454   :  { %v1858_v14 = vpop.permute.xlu1 %1857  ;;  %v2483_v34 = vsel %vm2454_vm8, %v2418_v29, %v1588_v11  ;;  %v2451_v11 = vsel %vm2389_vm7, %v2386_v31, %v10495_v32  ;;  %v10497_v32 = vld [vmem:[#allocation97_spill] sm:$0xff] }
 0x455   :  { %v1794_v25 = vpop.permute.xlu0 %1793  ;;  %v4233_v30 = vpop.eup %4232  ;;  %v2548_v22 = vsel %vm2519_vm9, %v2483_v34, %v1792_v39  ;;  %v2516_v55 = vsel %vm2454_vm8, %v2451_v11, %v8850_v50 }
 0x456   :  { %v3646_v0 = vmul.f32 %v4233_v30, %v8811_v44  ;;  %v2581_v7 = vsel %vm2519_vm9, %v2516_v55, %v1858_v14  ;;  %v10500_v55 = vld [vmem:[#allocation148_spill] sm:$0xff] }
 0x458   :  { %v2058_v28 = vpop.permute.xlu1 %2057  ;;  %v3764_v44 = vmul.f32 %v3646_v0, %v8699_v59  ;;  %v10496_v59 = vld [vmem:[#allocation353_spill] sm:$0xff] }
 0x459   :  { %v4235_v4 = vpop.eup %4234  ;;  %v2645_v36 = vsel %vm2584_vm10, %v2580_v27, %v2058_v28  ;;  %v1994_v46 = vpop.permute.xlu0 %1993  ;;  %v2419_v39 = vsel %vm2389_vm7, %v2354_v56, %v10496_v59  ;;  %v4531_v56 = vld [vmem:[%s9240_s0 + $0x318] sm:$0xff]  ;;  %v10499_v59 = vld [vmem:[#allocation250_spill] sm:$0xff] }
 0x45a   :  { %v4237_v2 = vpop.eup %4236  ;;  %v3644_v35 = vmul.f32 %v4235_v4, %v8830_v10  ;;  %v2613_v18 = vsel %vm2584_vm10, %v2548_v22, %v1994_v46  ;;  %4134 = vmatprep.mubr.msk.f32.mxu1 %vm2661_vm11, %v2645_v36  ;;  %3828 = vst [vmem:[#allocation2 + $0x48] sm:$0xff] %v3764_v44  ;;  %v2484_v10 = vsel %vm2454_vm8, %v2419_v39, %v8856_v5 }
 0x45b   :  { %v4239_v37 = vpop.eup %4238  ;;  %v3478_v21 = vadd.f32 2.0, %v4237_v2  ;;  %4086 = vmatprep.mubr.msk.f32.mxu0 %vm2661_vm11, %v2613_v18  ;;  %v2549_v6 = vsel %vm2519_vm9, %v2484_v10, %v1794_v25  ;;  %v2192_v11 = vsel %vm2129_vm3, %v4531_v56, %v10497_v32  ;;  %v10498_v18 = vld [vmem:[#allocation150_spill] sm:$0xff]  ;;  %v10502_v10 = vld [vmem:[#allocation293_spill] sm:$0xff] }
 0x45c   :  { %v4241_v9 = vpop.eup %4240  ;;  %v3763_v41 = vmul.f32 %v3644_v35, %v8711_v63  ;;  %v3446_v1 = vadd.f32 2.0, %v4239_v37  ;;  %v2060_v20 = vpop.permute.xlu1 %2059  ;;  %v4532_v35 = vld [vmem:[%s9240_s0 + $0x168] sm:$0xff]  ;;  %v2257_v39 = vsel %vm2194_vm4, %v2192_v11, %v10499_v59 }
 0x45d   :  { %v4243_v26 = vpop.eup %4242  ;;  %v3710_v38 = vmul.f32 %v4241_v9, %v8844_v58  ;;  %v8932_v30 = vmul.f32 %v4237_v2, %v3478_v21  ;;  %v2646_v50 = vsel %vm2584_vm10, %v2581_v7, %v2060_v20  ;;  %v1996_v60 = vpop.permute.xlu0 %1995  ;;  %v4533_v21 = vld [vmem:[%s9240_s0 + $0x170] sm:$0xff]  ;;  %v2322_v7 = vsel %vm2259_vm5, %v2257_v39, %v10502_v10 }
 0x45e   :  { %v4245_v33 = vpop.eup %4244  ;;  %3827 = vst [vmem:[#allocation2 + $0x40] sm:$0xff] %v3763_v41  ;;  %v8936_v63 = vmul.f32 %v4239_v37, %v3446_v1  ;;  %v3445_v62 = vadd.f32 2.0, %v4243_v26  ;;  %v2614_v5 = vsel %vm2584_vm10, %v2549_v6, %v1996_v60  ;;  %v4112_v57 = vpop.f32.mrf.mxu1  ;;  %4135 = vmatmul.mubr.msk.f32.gmra.mxu1 %vm2661_vm11, %v2646_v50  ;;  %v2160_v37 = vsel %vm2129_vm3, %v4532_v35, %v10498_v18  ;;  %v10501_v41 = vld [vmem:[#allocation217_spill] sm:$0xff]  ;;  %v10504_v50 = vld [vmem:[#allocation216_spill] sm:$0xff]  ;;  %v10514_v18 = vld [vmem:[#allocation343_spill] sm:$0xff] }
 0x45f   :  { %v4247_v14 = vpop.eup %4246  ;;  %v3796_v58 = vmul.f32 %v3710_v38, %v8719_v8  ;;  %v3708_v17 = vmul.f32 %v4245_v33, %v8854_v52  ;;  %v3606_v25 = vadd.f32 2.0, %v8932_v30  ;;  %v4064_v51 = vpop.f32.mrf.mxu0  ;;  %4087 = vmatmul.mubr.msk.f32.gmra.mxu0 %vm2661_vm11, %v2614_v5  ;;  %v8945_v15 = vadd.f32 %v8824_v3, %v4112_v57  ;;  %v10503_v38 = vld [vmem:[#allocation95_spill] sm:$0xff]  ;;  %v10505_v33 = vld [vmem:[#allocation270_spill] sm:$0xff]  ;;  %v10506_v5 = vld [vmem:[#allocation344_spill] sm:$0xff] }
 0x460   :  { %v3574_v23 = vadd.f32 2.0, %v8936_v63  ;;  %v8948_v61 = vmul.f32 %v4243_v26, %v3445_v62  ;;  %v3477_v13 = vadd.f32 2.0, %v4247_v14  ;;  %v8951_v19 = vadd.f32 %v8824_v3, %v4064_v51  ;;  %v1656_v29 = vpop.permute.xlu1 %1655  ;;  %v3144_v8 = vpop.f32.mrf.mxu1  ;;  %v4534_v26 = vld [vmem:[%s9240_s0 + $0x320] sm:$0xff] }
 0x461   :  { %3860 = vst [vmem:[#allocation2 + $0x148] sm:$0xff] %v3796_v58  ;;  %v3795_v52 = vmul.f32 %v3708_v17, %v8732_v42  ;;  %4248 = vrcp.f32 %v3606_v25  ;;  %v3288_v0 = vmin.f32 %v8945_v15, 20.0  ;;  %v2984_v48 = vpop.f32.mrf.mxu0  ;;  %v1592_v45 = vpop.permute.xlu0 %1591  ;;  %v8963_v28 = vadd.f32 %v8824_v3, %v3144_v8  ;;  %v10507_v17 = vld [vmem:[#allocation249_spill] sm:$0xff] }
 0x462   :  { %4250 = vrcp.f32 %v3574_v23  ;;  %v3573_v47 = vadd.f32 2.0, %v8948_v61  ;;  %v8956_v54 = vmul.f32 %v4247_v14, %v3477_v13  ;;  %v3256_v12 = vmin.f32 %v8951_v19, 20.0  ;;  %v10508_v51 = vld [vmem:[#allocation269_spill] sm:$0xff]  ;;  %v10509_v13 = vld [vmem:[#allocation326_spill] sm:$0xff] }
 0x463   :  { %3859 = vst [vmem:[#allocation2 + $0x140] sm:$0xff] %v3795_v52  ;;  %v3397_v34 = vmul.f32 1.442695, %v3288_v0  ;;  %v8960_v27 = vadd.f32 %v8824_v3, %v2984_v48  ;;  %v3287_v44 = vmin.f32 %v8963_v28, 20.0  ;;  %v2161_v9 = vsel %vm2129_vm3, %v4533_v21, %v10500_v55  ;;  %v10510_v52 = vld [vmem:[#allocation374_spill] sm:$0xff]  ;;  %v10515_v55 = vld [vmem:[#allocation373_spill] sm:$0xff] }
 0x464   :  { %4252 = vrcp.f32 %v3573_v47  ;;  %v3605_v42 = vadd.f32 2.0, %v8956_v54  ;;  %v3333_v4 = vmul.f32 1.442695, %v3256_v12  ;;  %v1658_v53 = vpop.permute.xlu1 %1657  ;;  %v2225_v1 = vsel %vm2194_vm4, %v2160_v37, %v10501_v41  ;;  %v10511_v47 = vld [vmem:[#allocation292_spill] sm:$0xff] }
 0x465   :  { %4254 = vpow2.f32 %v3397_v34  ;;  %v3255_v31 = vmin.f32 %v8960_v27, 20.0  ;;  %v8968_v22 = vpop.permute.xlu0 %1593  ;;  %v3395_v46 = vmul.f32 1.442695, %v3287_v44  ;;  %v2193_v6 = vsel %vm2129_vm3, %v4534_v26, %v10503_v38  ;;  %v10512_v34 = vld [vmem:[#allocation356_spill] sm:$0xff]  ;;  %v10513_v44 = vld [vmem:[#allocation325_spill] sm:$0xff] }
 0x466   :  { %4256 = vrcp.f32 %v3605_v42  ;;  %v2226_v60 = vsel %vm2194_vm4, %v2161_v9, %v10504_v50  ;;  %v2290_v62 = vsel %vm2259_vm5, %v2225_v1, %v10505_v33  ;;  %v2387_v57 = vsel %vm2324_vm6, %v2322_v7, %v10506_v5  ;;  %v10516_v1 = vld [vmem:[#allocation355_spill] sm:$0xff] }
 0x467   :  { %4258 = vpow2.f32 %v3333_v4  ;;  %v3331_v36 = vmul.f32 1.442695, %v3255_v31  ;;  %v2258_v25 = vsel %vm2194_vm4, %v2193_v6, %v10507_v17  ;;  %v2291_v23 = vsel %vm2259_vm5, %v2226_v60, %v10508_v51 }
 0x468   :  { %v1860_v2 = vpop.permute.xlu1 %1859  ;;  %v2355_v8 = vsel %vm2324_vm6, %v2290_v62, %v10509_v13  ;;  %v2452_v0 = vsel %vm2389_vm7, %v2387_v57, %v10510_v52  ;;  %v2323_v12 = vsel %vm2259_vm5, %v2258_v25, %v10511_v47 }
 0x469   :  { %4260 = vpow2.f32 %v3331_v36  ;;  %v1796_v49 = vpop.permute.xlu0 %1795  ;;  %v2420_v42 = vsel %vm2389_vm7, %v2355_v8, %v10512_v34  ;;  %v2517_v31 = vsel %vm2454_vm8, %v2452_v0, %v1656_v29  ;;  %v2356_v36 = vsel %vm2324_vm6, %v2291_v23, %v10513_v44 }
 0x46a   :  { %4262 = vpow2.f32 %v3395_v46  ;;  %v2485_v56 = vsel %vm2454_vm8, %v2420_v42, %v1592_v45  ;;  %v2582_v32 = vsel %vm2519_vm9, %v2517_v31, %v1860_v2  ;;  %v2388_v37 = vsel %vm2324_vm6, %v2323_v12, %v10514_v18 }
 0x46c   :  { %v1862_v20 = vpop.permute.xlu1 %1861 }
 0x46d   :  { %v1798_v14 = vpop.permute.xlu0 %1797 }
 0x46e   :  { %v4249_v58 = vpop.eup %4248 }
 0x46f   :  { %v4251_v48 = vpop.eup %4250  ;;  %v3714_v4 = vmul.f32 %v4249_v58, %v8932_v30  ;;  %v2550_v30 = vsel %vm2519_vm9, %v2485_v56, %v1796_v49 }
 0x470   :  { %v3650_v46 = vmul.f32 %v4251_v48, %v8936_v63  ;;  %v2062_v11 = vpop.permute.xlu1 %2061  ;;  %v2453_v63 = vsel %vm2389_vm7, %v2388_v37, %v10515_v55 }
 0x471   :  { %v4253_v35 = vpop.eup %4252  ;;  %v3798_v59 = vmul.f32 %v3714_v4, %v8827_v24  ;;  %v2647_v29 = vsel %vm2584_vm10, %v2582_v32, %v2062_v11  ;;  %v1998_v39 = vpop.permute.xlu0 %1997  ;;  %v2421_v24 = vsel %vm2389_vm7, %v2356_v36, %v10516_v1  ;;  %v2518_v10 = vsel %vm2454_vm8, %v2453_v63, %v1658_v53 }
 0x472   :  { %v4255_v21 = vpop.eup %4254  ;;  %v3766_v45 = vmul.f32 %v3650_v46, %v8833_v40  ;;  %v3648_v2 = vmul.f32 %v4253_v35, %v8948_v61  ;;  %v2615_v9 = vsel %vm2584_vm10, %v2550_v30, %v1998_v39  ;;  %4137 = vmatprep.mubr.msk.f32.mxu1 %vm2661_vm11, %v2647_v29  ;;  %v2486_v26 = vsel %vm2454_vm8, %v2421_v24, %v8968_v22 }
 0x473   :  { %v4257_v41 = vpop.eup %4256  ;;  %3862 = vst [vmem:[#allocation2 + $0x158] sm:$0xff] %v3798_v59  ;;  %v3480_v49 = vadd.f32 2.0, %v4255_v21  ;;  %4089 = vmatprep.mubr.msk.f32.mxu0 %vm2661_vm11, %v2615_v9  ;;  %v2583_v38 = vsel %vm2519_vm9, %v2518_v10, %v1862_v20  ;;  %v2551_v33 = vsel %vm2519_vm9, %v2486_v26, %v1798_v14 }
 0x474   :  { %v4259_v7 = vpop.eup %4258  ;;  %3830 = vst [vmem:[#allocation2 + $0x58] sm:$0xff] %v3766_v45  ;;  %v3765_v40 = vmul.f32 %v3648_v2, %v8842_v16  ;;  %v3712_v61 = vmul.f32 %v4257_v41, %v8956_v54  ;;  %v2064_v6 = vpop.permute.xlu1 %2063 }
 0x475   :  { %v3448_v50 = vadd.f32 2.0, %v4259_v7  ;;  %v3544_v60 = vmul.f32 %v4255_v21, %v3480_v49  ;;  %v2648_v53 = vsel %vm2584_vm10, %v2583_v38, %v2064_v6  ;;  %v2000_v62 = vpop.permute.xlu0 %1999  ;;  %v4115_v54 = vpop.f32.mrf.mxu1 }
 0x476   :  { %v4261_v5 = vpop.eup %4260  ;;  %3829 = vst [vmem:[#allocation2 + $0x50] sm:$0xff] %v3765_v40  ;;  %v3797_v57 = vmul.f32 %v3712_v61, %v8847_v43  ;;  %v2616_v16 = vsel %vm2584_vm10, %v2551_v33, %v2000_v62  ;;  %4138 = vmatmul.mubr.msk.f32.gmra.mxu1 %vm2661_vm11, %v2648_v53  ;;  %v4067_v25 = vpop.f32.mrf.mxu0  ;;  %v9048_v14 = vadd.f32 %v8824_v3, %v4115_v54 }
 0x477   :  { %v4263_v22 = vpop.eup %4262  ;;  %v3512_v58 = vmul.f32 %v4259_v7, %v3448_v50  ;;  %v3608_v20 = vadd.f32 2.0, %v3544_v60  ;;  %v3447_v17 = vadd.f32 2.0, %v4261_v5  ;;  %4090 = vmatmul.mubr.msk.f32.gmra.mxu0 %vm2661_vm11, %v2616_v16  ;;  %v9051_v23 = vadd.f32 %v8824_v3, %v4067_v25  ;;  %v3154_v43 = vpop.f32.mrf.mxu1 }
 0x478   :  { %3861 = vst [vmem:[#allocation2 + $0x150] sm:$0xff] %v3797_v57  ;;  %v3479_v51 = vadd.f32 2.0, %v4263_v22  ;;  %v3290_v52 = vmin.f32 %v9048_v14, 20.0  ;;  %v2994_v0 = vpop.f32.mrf.mxu0  ;;  %v9059_v34 = vadd.f32 %v8824_v3, %v3154_v43 }
 0x479   :  { %v3576_v13 = vadd.f32 2.0, %v3512_v58  ;;  %4264 = vrcp.f32 %v3608_v20  ;;  %v3511_v8 = vmul.f32 %v4261_v5, %v3447_v17  ;;  %v3258_v47 = vmin.f32 %v9051_v23, 20.0 }
 0x47a   :  { %v3543_v48 = vmul.f32 %v4263_v22, %v3479_v51  ;;  %v9056_v12 = vadd.f32 %v8824_v3, %v2994_v0  ;;  %v3401_v4 = vmul.f32 1.442695, %v3290_v52  ;;  %v3289_v46 = vmin.f32 %v9059_v34, 20.0 }
 0x47b   :  { %4266 = vrcp.f32 %v3576_v13  ;;  %v3575_v42 = vadd.f32 2.0, %v3511_v8  ;;  %v3337_v44 = vmul.f32 1.442695, %v3258_v47 }
 0x47c   :  { %v3607_v31 = vadd.f32 2.0, %v3543_v48  ;;  %v3257_v36 = vmin.f32 %v9056_v12, 20.0  ;;  %v3399_v32 = vmul.f32 1.442695, %v3289_v46 }
 0x47d   :  { %4268 = vrcp.f32 %v3575_v42 }
 0x47e   :  { %4270 = vrcp.f32 %v3607_v31  ;;  %v3335_v56 = vmul.f32 1.442695, %v3257_v36 }
 0x47f   :  { %4272 = vpow2.f32 %v3337_v44 }
 0x480   :  { %4274 = vpow2.f32 %v3401_v4 }
 0x481   :  { %4276 = vpow2.f32 %v3335_v56 }
 0x482   :  { %4278 = vpow2.f32 %v3399_v32 }
 0x486   :  { %v4265_v11 = vpop.eup %4264 }
 0x487   :  { %v3718_v35 = vmul.f32 %v4265_v11, %v3544_v60 }
 0x488   :  { %v4267_v18 = vpop.eup %4266 }
 0x489   :  { %v3654_v37 = vmul.f32 %v4267_v18, %v3512_v58  ;;  %v3800_v59 = vmul.f32 %v3718_v35, %v8945_v15 }
 0x48a   :  { %v4269_v30 = vpop.eup %4268 }
 0x48b   :  { %v4271_v29 = vpop.eup %4270  ;;  %v3768_v39 = vmul.f32 %v3654_v37, %v8951_v19  ;;  %3864 = vst [vmem:[#allocation2 + $0x168] sm:$0xff] %v3800_v59  ;;  %v3652_v21 = vmul.f32 %v4269_v30, %v3511_v8 }
 0x48c   :  { %v4273_v55 = vpop.eup %4272  ;;  %v3716_v63 = vmul.f32 %v4271_v29, %v3543_v48 }
 0x48d   :  { %v4275_v45 = vpop.eup %4274  ;;  %3832 = vst [vmem:[#allocation2 + $0x68] sm:$0xff] %v3768_v39  ;;  %v3767_v2 = vmul.f32 %v3652_v21, %v8960_v27  ;;  %v3450_v9 = vadd.f32 2.0, %v4273_v55  ;;  %v4118_v49 = vpop.f32.mrf.mxu1 }
 0x48e   :  { %v4277_v41 = vpop.eup %4276  ;;  %v3799_v1 = vmul.f32 %v3716_v63, %v8963_v28  ;;  %v3482_v24 = vadd.f32 2.0, %v4275_v45  ;;  %v4070_v40 = vpop.f32.mrf.mxu0  ;;  %v9068_v19 = vadd.f32 %v8824_v3, %v4118_v49 }
 0x48f   :  { %v4279_v10 = vpop.eup %4278  ;;  %3831 = vst [vmem:[#allocation2 + $0x60] sm:$0xff] %v3767_v2  ;;  %v3514_v15 = vmul.f32 %v4273_v55, %v3450_v9  ;;  %v3449_v7 = vadd.f32 2.0, %v4277_v41  ;;  %v9071_v38 = vadd.f32 %v8824_v3, %v4070_v40  ;;  %v3164_v27 = vpop.f32.mrf.mxu1 }
 0x490   :  { %3863 = vst [vmem:[#allocation2 + $0x160] sm:$0xff] %v3799_v1  ;;  %v3546_v61 = vmul.f32 %v4275_v45, %v3482_v24  ;;  %v3481_v26 = vadd.f32 2.0, %v4279_v10  ;;  %v3292_v28 = vmin.f32 %v9068_v19, 20.0  ;;  %v3004_v60 = vpop.f32.mrf.mxu0  ;;  %v9075_v33 = vadd.f32 %v8824_v3, %v3164_v27 }
 0x491   :  { %v3578_v6 = vadd.f32 2.0, %v3514_v15  ;;  %v3513_v50 = vmul.f32 %v4277_v41, %v3449_v7  ;;  %v3260_v5 = vmin.f32 %v9071_v38, 20.0  ;;  %v9079_v57 = vadd.f32 %v8824_v3, %v3004_v60 }
 0x492   :  { %v3610_v53 = vadd.f32 2.0, %v3546_v61  ;;  %v3545_v62 = vmul.f32 %v4279_v10, %v3481_v26  ;;  %v3405_v54 = vmul.f32 1.442695, %v3292_v28  ;;  %v3291_v22 = vmin.f32 %v9075_v33, 20.0 }
 0x493   :  { %4280 = vrcp.f32 %v3578_v6  ;;  %v3577_v16 = vadd.f32 2.0, %v3513_v50  ;;  %v3341_v20 = vmul.f32 1.442695, %v3260_v5  ;;  %v3259_v17 = vmin.f32 %v9079_v57, 20.0 }
 0x494   :  { %4282 = vrcp.f32 %v3610_v53  ;;  %v3609_v58 = vadd.f32 2.0, %v3545_v62  ;;  %v3403_v51 = vmul.f32 1.442695, %v3291_v22 }
 0x495   :  { %4284 = vrcp.f32 %v3577_v16  ;;  %v3339_v25 = vmul.f32 1.442695, %v3259_v17 }
 0x496   :  { %4286 = vrcp.f32 %v3609_v58 }
 0x497   :  { %4288 = vpow2.f32 %v3341_v20 }
 0x498   :  { %4290 = vpow2.f32 %v3405_v54 }
 0x499   :  { %4292 = vpow2.f32 %v3339_v25 }
 0x49a   :  { %4294 = vpow2.f32 %v3403_v51 }
 0x4a0   :  { %v4281_v43 = vpop.eup %4280 }
 0x4a1   :  { %v4283_v13 = vpop.eup %4282  ;;  %v3658_v8 = vmul.f32 %v4281_v43, %v3514_v15 }
 0x4a2   :  { %v4285_v52 = vpop.eup %4284  ;;  %v3722_v0 = vmul.f32 %v4283_v13, %v3546_v61 }
 0x4a3   :  { %v4287_v48 = vpop.eup %4286  ;;  %v3770_v47 = vmul.f32 %v3658_v8, %v9051_v23  ;;  %v3656_v42 = vmul.f32 %v4285_v52, %v3513_v50 }
 0x4a4   :  { %v4289_v4 = vpop.eup %4288  ;;  %v3802_v31 = vmul.f32 %v3722_v0, %v9048_v14  ;;  %v3720_v44 = vmul.f32 %v4287_v48, %v3545_v62 }
 0x4a5   :  { %v4291_v36 = vpop.eup %4290  ;;  %3834 = vst [vmem:[#allocation2 + $0x78] sm:$0xff] %v3770_v47  ;;  %v3769_v46 = vmul.f32 %v3656_v42, %v9056_v12  ;;  %v3452_v56 = vadd.f32 2.0, %v4289_v4  ;;  %v4121_v18 = vpop.f32.mrf.mxu1 }
 0x4a6   :  { %v4293_v32 = vpop.eup %4292  ;;  %3866 = vst [vmem:[#allocation2 + $0x178] sm:$0xff] %v3802_v31  ;;  %v3801_v11 = vmul.f32 %v3720_v44, %v9059_v34  ;;  %v3484_v35 = vadd.f32 2.0, %v4291_v36  ;;  %v4073_v30 = vpop.f32.mrf.mxu0  ;;  %v9088_v29 = vadd.f32 %v8824_v3, %v4121_v18 }
 0x4a7   :  { %v4295_v37 = vpop.eup %4294  ;;  %3833 = vst [vmem:[#allocation2 + $0x70] sm:$0xff] %v3769_v46  ;;  %v3516_v59 = vmul.f32 %v4289_v4, %v3452_v56  ;;  %v3451_v23 = vadd.f32 2.0, %v4293_v32  ;;  %v9091_v12 = vadd.f32 %v8824_v3, %v4073_v30  ;;  %v3174_v21 = vpop.f32.mrf.mxu1 }
 0x4a8   :  { %3865 = vst [vmem:[#allocation2 + $0x170] sm:$0xff] %v3801_v11  ;;  %v3548_v14 = vmul.f32 %v4291_v36, %v3484_v35  ;;  %v3483_v39 = vadd.f32 2.0, %v4295_v37  ;;  %v3294_v34 = vmin.f32 %v9088_v29, 20.0  ;;  %v3014_v45 = vpop.f32.mrf.mxu0  ;;  %v9095_v2 = vadd.f32 %v8824_v3, %v3174_v21 }
 0x4a9   :  { %v3580_v55 = vadd.f32 2.0, %v3516_v59  ;;  %v3515_v63 = vmul.f32 %v4293_v32, %v3451_v23  ;;  %v3262_v1 = vmin.f32 %v9091_v12, 20.0  ;;  %v9099_v24 = vadd.f32 %v8824_v3, %v3014_v45 }
 0x4aa   :  { %v3612_v9 = vadd.f32 2.0, %v3548_v14  ;;  %v3547_v41 = vmul.f32 %v4295_v37, %v3483_v39  ;;  %v3409_v10 = vmul.f32 1.442695, %v3294_v34  ;;  %v3293_v15 = vmin.f32 %v9095_v2, 20.0 }
 0x4ab   :  { %4296 = vrcp.f32 %v3580_v55  ;;  %v3579_v49 = vadd.f32 2.0, %v3515_v63  ;;  %v3345_v40 = vmul.f32 1.442695, %v3262_v1  ;;  %v3261_v61 = vmin.f32 %v9099_v24, 20.0 }
 0x4ac   :  { %4298 = vrcp.f32 %v3612_v9  ;;  %v3611_v7 = vadd.f32 2.0, %v3547_v41  ;;  %v3407_v27 = vmul.f32 1.442695, %v3293_v15 }
 0x4ad   :  { %4300 = vrcp.f32 %v3579_v49  ;;  %v3343_v26 = vmul.f32 1.442695, %v3261_v61 }
 0x4ae   :  { %4302 = vrcp.f32 %v3611_v7 }
 0x4af   :  { %4304 = vpow2.f32 %v3345_v40 }
 0x4b0   :  { %4306 = vpow2.f32 %v3409_v10 }
 0x4b1   :  { %4308 = vpow2.f32 %v3343_v26 }
 0x4b2   :  { %4310 = vpow2.f32 %v3407_v27 }
 0x4b8   :  { %v4297_v6 = vpop.eup %4296 }
 0x4b9   :  { %v4299_v50 = vpop.eup %4298  ;;  %v3662_v28 = vmul.f32 %v4297_v6, %v3516_v59 }
 0x4ba   :  { %v4301_v60 = vpop.eup %4300  ;;  %v3726_v53 = vmul.f32 %v4299_v50, %v3548_v14 }
 0x4bb   :  { %v4303_v62 = vpop.eup %4302  ;;  %v3772_v5 = vmul.f32 %v3662_v28, %v9071_v38  ;;  %v3660_v16 = vmul.f32 %v4301_v60, %v3515_v63 }
 0x4bc   :  { %v4305_v54 = vpop.eup %4304  ;;  %v3804_v22 = vmul.f32 %v3726_v53, %v9068_v19  ;;  %v3724_v58 = vmul.f32 %v4303_v62, %v3547_v41 }
 0x4bd   :  { %v4307_v20 = vpop.eup %4306  ;;  %3836 = vst [vmem:[#allocation2 + $0x88] sm:$0xff] %v3772_v5  ;;  %v3771_v17 = vmul.f32 %v3660_v16, %v9079_v57  ;;  %v3454_v25 = vadd.f32 2.0, %v4305_v54  ;;  %v4124_v8 = vpop.f32.mrf.mxu1 }
 0x4be   :  { %v4309_v51 = vpop.eup %4308  ;;  %3868 = vst [vmem:[#allocation2 + $0x188] sm:$0xff] %v3804_v22  ;;  %v3803_v43 = vmul.f32 %v3724_v58, %v9075_v33  ;;  %v3486_v13 = vadd.f32 2.0, %v4307_v20  ;;  %v9108_v47 = vadd.f32 %v8824_v3, %v4124_v8 }
 0x4bf   :  { %v4311_v52 = vpop.eup %4310  ;;  %3835 = vst [vmem:[#allocation2 + $0x80] sm:$0xff] %v3771_v17  ;;  %v3518_v0 = vmul.f32 %v4305_v54, %v3454_v25  ;;  %v3453_v38 = vadd.f32 2.0, %v4309_v51  ;;  %v4076_v48 = vpop.f32.mrf.mxu0 }
 0x4c0   :  { %3867 = vst [vmem:[#allocation2 + $0x180] sm:$0xff] %v3803_v43  ;;  %v3550_v19 = vmul.f32 %v4307_v20, %v3486_v13  ;;  %v3485_v42 = vadd.f32 2.0, %v4311_v52  ;;  %v9111_v57 = vadd.f32 %v8824_v3, %v4076_v48  ;;  %v3184_v4 = vpop.f32.mrf.mxu1  ;;  %v3296_v33 = vmin.f32 %v9108_v47, 20.0 }
 0x4c1   :  { %v3582_v31 = vadd.f32 2.0, %v3518_v0  ;;  %v3517_v44 = vmul.f32 %v4309_v51, %v3453_v38  ;;  %v3024_v36 = vpop.f32.mrf.mxu0  ;;  %v9115_v46 = vadd.f32 %v8824_v3, %v3184_v4 }
 0x4c2   :  { %v3614_v56 = vadd.f32 2.0, %v3550_v19  ;;  %v3549_v32 = vmul.f32 %v4311_v52, %v3485_v42  ;;  %v3264_v11 = vmin.f32 %v9111_v57, 20.0  ;;  %v9119_v35 = vadd.f32 %v8824_v3, %v3024_v36 }
 0x4c3   :  { %4312 = vrcp.f32 %v3582_v31  ;;  %v3581_v18 = vadd.f32 2.0, %v3517_v44  ;;  %v3413_v37 = vmul.f32 1.442695, %v3296_v33  ;;  %v3295_v59 = vmin.f32 %v9115_v46, 20.0 }
 0x4c4   :  { %4314 = vrcp.f32 %v3614_v56  ;;  %v3613_v23 = vadd.f32 2.0, %v3549_v32  ;;  %v3349_v30 = vmul.f32 1.442695, %v3264_v11  ;;  %v3263_v14 = vmin.f32 %v9119_v35, 20.0 }
 0x4c5   :  { %4316 = vrcp.f32 %v3581_v18  ;;  %v3411_v21 = vmul.f32 1.442695, %v3295_v59 }
 0x4c6   :  { %4318 = vrcp.f32 %v3613_v23  ;;  %v3347_v39 = vmul.f32 1.442695, %v3263_v14 }
 0x4c7   :  { %4320 = vpow2.f32 %v3349_v30 }
 0x4c8   :  { %4322 = vpow2.f32 %v3413_v37 }
 0x4c9   :  { %4324 = vpow2.f32 %v3347_v39 }
 0x4ca   :  { %4326 = vpow2.f32 %v3411_v21 }
 0x4d0   :  { %v4313_v55 = vpop.eup %4312 }
 0x4d1   :  { %v4315_v63 = vpop.eup %4314  ;;  %v3666_v34 = vmul.f32 %v4313_v55, %v3518_v0 }
 0x4d2   :  { %v4317_v45 = vpop.eup %4316  ;;  %v3730_v9 = vmul.f32 %v4315_v63, %v3550_v19 }
 0x4d3   :  { %v4319_v41 = vpop.eup %4318  ;;  %v3774_v1 = vmul.f32 %v3666_v34, %v9091_v12  ;;  %v3664_v49 = vmul.f32 %v4317_v45, %v3517_v44 }
 0x4d4   :  { %v4321_v10 = vpop.eup %4320  ;;  %v3806_v15 = vmul.f32 %v3730_v9, %v9088_v29  ;;  %v3728_v7 = vmul.f32 %v4319_v41, %v3549_v32 }
 0x4d5   :  { %v4323_v40 = vpop.eup %4322  ;;  %3838 = vst [vmem:[#allocation2 + $0x98] sm:$0xff] %v3774_v1  ;;  %v3773_v61 = vmul.f32 %v3664_v49, %v9099_v24  ;;  %v3456_v26 = vadd.f32 2.0, %v4321_v10  ;;  %v4127_v28 = vpop.f32.mrf.mxu1 }
 0x4d6   :  { %v4325_v27 = vpop.eup %4324  ;;  %3870 = vst [vmem:[#allocation2 + $0x198] sm:$0xff] %v3806_v15  ;;  %v3805_v6 = vmul.f32 %v3728_v7, %v9095_v2  ;;  %v3488_v50 = vadd.f32 2.0, %v4323_v40  ;;  %v9128_v5 = vadd.f32 %v8824_v3, %v4127_v28 }
 0x4d7   :  { %v4327_v60 = vpop.eup %4326  ;;  %3837 = vst [vmem:[#allocation2 + $0x90] sm:$0xff] %v3773_v61  ;;  %v3520_v53 = vmul.f32 %v4321_v10, %v3456_v26  ;;  %v3455_v12 = vadd.f32 2.0, %v4325_v27  ;;  %v4079_v62 = vpop.f32.mrf.mxu0 }
 0x4d8   :  { %3869 = vst [vmem:[#allocation2 + $0x190] sm:$0xff] %v3805_v6  ;;  %v3552_v29 = vmul.f32 %v4323_v40, %v3488_v50  ;;  %v3487_v16 = vadd.f32 2.0, %v4327_v60  ;;  %v9131_v24 = vadd.f32 %v8824_v3, %v4079_v62  ;;  %v3194_v54 = vpop.f32.mrf.mxu1  ;;  %v3298_v2 = vmin.f32 %v9128_v5, 20.0  ;;  %v9161_v50 = vld [vmem:[%s9242_s2] ss:$0 sm:$0xff]  ;;  %s4566_s2 = smov [#allocation2]  }
 0x4d9   :  { %v3584_v22 = vadd.f32 2.0, %v3520_v53  ;;  %v3519_v58 = vmul.f32 %v4325_v27, %v3455_v12  ;;  %v3034_v20 = vpop.f32.mrf.mxu0  ;;  %v9135_v17 = vadd.f32 %v8824_v3, %v3194_v54  ;;  %s3888_s26 = sshll.u32 %s4566_s2, 4  ;;  %s3889_s26 = int_to_ptr.vmem [resolvable:$true] %s3888_s26 }
 0x4da   :  { %v3616_v25 = vadd.f32 2.0, %v3552_v29  ;;  %v3551_v51 = vmul.f32 %v4327_v60, %v3487_v16  ;;  %v3266_v43 = vmin.f32 %v9131_v24, 20.0  ;;  %v9139_v13 = vadd.f32 %v8824_v3, %v3034_v20  ;;  %s4536_s27 = scalar_lea.vmem %s3889_s26, 8192  ;;  %p4541_p1 = scmp.lt.s32.totalorder %s3889_s26, %s3889_s26 }
 0x4db   :  { %4328 = vrcp.f32 %v3584_v22  ;;  %v3583_v8 = vadd.f32 2.0, %v3519_v58  ;;  %v3417_v52 = vmul.f32 1.442695, %v3298_v2  ;;  %v3297_v0 = vmin.f32 %v9135_v17, 20.0  ;;  %p4537_p0 = scmp.ne.s32.totalorder %s3889_s26, %s4536_s27  ;;  %p4542_p2 = scmp.lt.s32.totalorder %s4536_s27, %s4536_s27 }
 0x4dc   :  { %4330 = vrcp.f32 %v3616_v25  ;;  %v3615_v38 = vadd.f32 2.0, %v3551_v51  ;;  %v3353_v48 = vmul.f32 1.442695, %v3266_v43  ;;  %v3265_v19 = vmin.f32 %v9139_v13, 20.0 }
 0x4dd   :  { %4332 = vrcp.f32 %v3583_v8  ;;  %v3415_v4 = vmul.f32 1.442695, %v3297_v0  ;;  %p4543_p3 = por %p4542_p2, %p4541_p1 }
 0x4de   :  { %4334 = vrcp.f32 %v3615_v38  ;;  %v3351_v42 = vmul.f32 1.442695, %v3265_v19 }
 0x4df   :  { %4336 = vpow2.f32 %v3353_v48  ;;  %p4544_p4 = pnand %p4543_p3, %p4537_p0 }
 0x4e0   :  { %4338 = vpow2.f32 %v3417_v52 }
 0x4e1   :  { %4340 = vpow2.f32 %v3351_v42 }
 0x4e2   :  { %4342 = vpow2.f32 %v3415_v4 }
 0x4e8   :  { %v4329_v31 = vpop.eup %4328 }
 0x4e9   :  { %v4331_v44 = vpop.eup %4330  ;;  %v3670_v33 = vmul.f32 %v4329_v31, %v3520_v53 }
 0x4ea   :  { %v4333_v36 = vpop.eup %4332  ;;  %v3734_v56 = vmul.f32 %v4331_v44, %v3552_v29 }
 0x4eb   :  { %v4335_v32 = vpop.eup %4334  ;;  %v3776_v11 = vmul.f32 %v3670_v33, %v9111_v57  ;;  %v3668_v18 = vmul.f32 %v4333_v36, %v3519_v58 }
 0x4ec   :  { %v4337_v37 = vpop.eup %4336  ;;  %v3808_v59 = vmul.f32 %v3734_v56, %v9108_v47  ;;  %v3732_v23 = vmul.f32 %v4335_v32, %v3551_v51 }
 0x4ed   :  { %v4339_v30 = vpop.eup %4338  ;;  %3840 = vst [vmem:[#allocation2 + $0xa8] sm:$0xff] %v3776_v11  ;;  %v3775_v14 = vmul.f32 %v3668_v18, %v9119_v35  ;;  %v3458_v39 = vadd.f32 2.0, %v4337_v37  ;;  %v4130_v34 = vpop.f32.mrf.mxu1 }
 0x4ee   :  { %v4341_v21 = vpop.eup %4340  ;;  %3872 = vst [vmem:[#allocation2 + $0x1a8] sm:$0xff] %v3808_v59  ;;  %v3807_v55 = vmul.f32 %v3732_v23, %v9115_v46  ;;  %v3490_v63 = vadd.f32 2.0, %v4339_v30  ;;  %v9148_v1 = vadd.f32 %v8824_v3, %v4130_v34 }
 0x4ef   :  { %v4343_v45 = vpop.eup %4342  ;;  %3839 = vst [vmem:[#allocation2 + $0xa0] sm:$0xff] %v3775_v14  ;;  %v3522_v9 = vmul.f32 %v4337_v37, %v3458_v39  ;;  %v3457_v57 = vadd.f32 2.0, %v4341_v21  ;;  %v4082_v41 = vpop.f32.mrf.mxu0 }
 0x4f0   :  { %3871 = vst [vmem:[#allocation2 + $0x1a0] sm:$0xff] %v3807_v55  ;;  %v3554_v47 = vmul.f32 %v4339_v30, %v3490_v63  ;;  %v3489_v49 = vadd.f32 2.0, %v4343_v45  ;;  %v9151_v35 = vadd.f32 %v8824_v3, %v4082_v41  ;;  %v3204_v10 = vpop.f32.mrf.mxu1  ;;  %v3300_v46 = vmin.f32 %v9148_v1, 20.0 }
 0x4f1   :  { %v3586_v15 = vadd.f32 2.0, %v3522_v9  ;;  %v3521_v7 = vmul.f32 %v4341_v21, %v3457_v57  ;;  %v3044_v40 = vpop.f32.mrf.mxu0  ;;  %v9155_v61 = vadd.f32 %v8824_v3, %v3204_v10 }
 0x4f2   :  { %v3618_v26 = vadd.f32 2.0, %v3554_v47  ;;  %v3553_v27 = vmul.f32 %v4343_v45, %v3489_v49  ;;  %v3268_v6 = vmin.f32 %v9151_v35, 20.0  ;;  %v9164_v28 = vadd.f32 %v9161_v50, %v3044_v40 }
 0x4f3   :  { %4344 = vrcp.f32 %v3586_v15  ;;  %v3585_v60 = vadd.f32 2.0, %v3521_v7  ;;  %v3421_v53 = vmul.f32 1.442695, %v3300_v46  ;;  %v3299_v12 = vmin.f32 %v9155_v61, 20.0 }
 0x4f4   :  { %4346 = vrcp.f32 %v3618_v26  ;;  %v3617_v3 = vadd.f32 2.0, %v3553_v27  ;;  %v3357_v62 = vmul.f32 1.442695, %v3268_v6  ;;  %v3267_v29 = vmin.f32 %v9164_v28, 20.0 }
 0x4f5   :  { %4348 = vrcp.f32 %v3585_v60  ;;  %v3419_v54 = vmul.f32 1.442695, %v3299_v12 }
 0x4f6   :  { %4350 = vrcp.f32 %v3617_v3  ;;  %v3355_v16 = vmul.f32 1.442695, %v3267_v29 }
 0x4f7   :  { %4352 = vpow2.f32 %v3357_v62 }
 0x4f8   :  { %4354 = vpow2.f32 %v3421_v53 }
 0x4f9   :  { %4356 = vpow2.f32 %v3355_v16 }
 0x4fa   :  { %4358 = vpow2.f32 %v3419_v54 }
 0x500   :  { %v4345_v22 = vpop.eup %4344 }
 0x501   :  { %v4347_v58 = vpop.eup %4346  ;;  %v3674_v2 = vmul.f32 %v4345_v22, %v3522_v9 }
 0x502   :  { %v4349_v20 = vpop.eup %4348  ;;  %v3738_v25 = vmul.f32 %v4347_v58, %v3554_v47 }
 0x503   :  { %v4351_v51 = vpop.eup %4350  ;;  %v3778_v43 = vmul.f32 %v3674_v2, %v9131_v24  ;;  %v3672_v8 = vmul.f32 %v4349_v20, %v3521_v7 }
 0x504   :  { %v4353_v52 = vpop.eup %4352  ;;  %v3810_v0 = vmul.f32 %v3738_v25, %v9128_v5  ;;  %v3736_v38 = vmul.f32 %v4351_v51, %v3553_v27 }
 0x505   :  { %v4355_v48 = vpop.eup %4354  ;;  %3842 = vst [vmem:[#allocation2 + $0xb8] sm:$0xff] %v3778_v43  ;;  %v3777_v19 = vmul.f32 %v3672_v8, %v9139_v13  ;;  %v3460_v42 = vadd.f32 2.0, %v4353_v52  ;;  %v4133_v33 = vpop.f32.mrf.mxu1 }
 0x506   :  { %v4357_v4 = vpop.eup %4356  ;;  %3874 = vst [vmem:[#allocation2 + $0x1b8] sm:$0xff] %v3810_v0  ;;  %v3809_v31 = vmul.f32 %v3736_v38, %v9135_v17  ;;  %v3492_v44 = vadd.f32 2.0, %v4355_v48  ;;  %v9173_v11 = vadd.f32 %v9161_v50, %v4133_v33 }
 0x507   :  { %v4359_v36 = vpop.eup %4358  ;;  %3841 = vst [vmem:[#allocation2 + $0xb0] sm:$0xff] %v3777_v19  ;;  %v3524_v56 = vmul.f32 %v4353_v52, %v3460_v42  ;;  %v3459_v24 = vadd.f32 2.0, %v4357_v4  ;;  %v4085_v32 = vpop.f32.mrf.mxu0 }
 0x508   :  { %3873 = vst [vmem:[#allocation2 + $0x1b0] sm:$0xff] %v3809_v31  ;;  %v3556_v5 = vmul.f32 %v4355_v48, %v3492_v44  ;;  %v3491_v18 = vadd.f32 2.0, %v4359_v36  ;;  %v9176_v13 = vadd.f32 %v9161_v50, %v4085_v32  ;;  %v3214_v37 = vpop.f32.mrf.mxu1  ;;  %v3302_v17 = vmin.f32 %v9173_v11, 20.0 }
 0x509   :  { %v3588_v59 = vadd.f32 2.0, %v3524_v56  ;;  %v3523_v23 = vmul.f32 %v4357_v4, %v3459_v24  ;;  %v3054_v30 = vpop.f32.mrf.mxu0  ;;  %v9180_v14 = vadd.f32 %v9161_v50, %v3214_v37 }
 0x50a   :  { %v3620_v39 = vadd.f32 2.0, %v3556_v5  ;;  %v3555_v21 = vmul.f32 %v4359_v36, %v3491_v18  ;;  %v3270_v55 = vmin.f32 %v9176_v13, 20.0  ;;  %v9184_v63 = vadd.f32 %v9161_v50, %v3054_v30 }
 0x50b   :  { %4360 = vrcp.f32 %v3588_v59  ;;  %v3587_v34 = vadd.f32 2.0, %v3523_v23  ;;  %v3425_v45 = vmul.f32 1.442695, %v3302_v17  ;;  %v3301_v9 = vmin.f32 %v9180_v14, 20.0 }
 0x50c   :  { %4362 = vrcp.f32 %v3620_v39  ;;  %v3619_v57 = vadd.f32 2.0, %v3555_v21  ;;  %v3361_v41 = vmul.f32 1.442695, %v3270_v55  ;;  %v3269_v47 = vmin.f32 %v9184_v63, 20.0 }
 0x50d   :  { %4364 = vrcp.f32 %v3587_v34  ;;  %v3423_v10 = vmul.f32 1.442695, %v3301_v9 }
 0x50e   :  { %4366 = vrcp.f32 %v3619_v57  ;;  %v3359_v49 = vmul.f32 1.442695, %v3269_v47 }
 0x50f   :  { %4368 = vpow2.f32 %v3361_v41 }
 0x510   :  { %4370 = vpow2.f32 %v3425_v45 }
 0x511   :  { %4372 = vpow2.f32 %v3359_v49 }
 0x512   :  { %4374 = vpow2.f32 %v3423_v10 }
 0x518   :  { %v4361_v15 = vpop.eup %4360 }
 0x519   :  { %v4363_v7 = vpop.eup %4362  ;;  %v3678_v46 = vmul.f32 %v4361_v15, %v3524_v56 }
 0x51a   :  { %v4365_v40 = vpop.eup %4364  ;;  %v3742_v26 = vmul.f32 %v4363_v7, %v3556_v5 }
 0x51b   :  { %v4367_v27 = vpop.eup %4366  ;;  %v3780_v6 = vmul.f32 %v3678_v46, %v9151_v35  ;;  %v3676_v60 = vmul.f32 %v4365_v40, %v3523_v23 }
 0x51c   :  { %v4369_v53 = vpop.eup %4368  ;;  %v3812_v12 = vmul.f32 %v3742_v26, %v9148_v1  ;;  %v3740_v3 = vmul.f32 %v4367_v27, %v3555_v21 }
 0x51d   :  { %v4371_v62 = vpop.eup %4370  ;;  %3844 = vst [vmem:[#allocation2 + $0xc8] sm:$0xff] %v3780_v6  ;;  %v3779_v29 = vmul.f32 %v3676_v60, %v9164_v28  ;;  %v3462_v16 = vadd.f32 2.0, %v4369_v53 }
 0x51e   :  { %v4373_v54 = vpop.eup %4372  ;;  %3876 = vst [vmem:[#allocation2 + $0x1c8] sm:$0xff] %v3812_v12  ;;  %v3811_v22 = vmul.f32 %v3740_v3, %v9155_v61  ;;  %v3494_v58 = vadd.f32 2.0, %v4371_v62  ;;  %v4136_v2 = vpop.f32.mrf.mxu1 }
 0x51f   :  { %v4375_v20 = vpop.eup %4374  ;;  %3843 = vst [vmem:[#allocation2 + $0xc0] sm:$0xff] %v3779_v29  ;;  %v3526_v25 = vmul.f32 %v4369_v53, %v3462_v16  ;;  %v3461_v35 = vadd.f32 2.0, %v4373_v54  ;;  %v4088_v51 = vpop.f32.mrf.mxu0  ;;  %v9193_v43 = vadd.f32 %v9161_v50, %v4136_v2 }
 0x520   :  { %3875 = vst [vmem:[#allocation2 + $0x1c0] sm:$0xff] %v3811_v22  ;;  %v3558_v1 = vmul.f32 %v4371_v62, %v3494_v58  ;;  %v3493_v8 = vadd.f32 2.0, %v4375_v20  ;;  %v9196_v28 = vadd.f32 %v9161_v50, %v4088_v51  ;;  %v3224_v52 = vpop.f32.mrf.mxu1 }
 0x521   :  { %v3590_v0 = vadd.f32 2.0, %v3526_v25  ;;  %v3525_v38 = vmul.f32 %v4373_v54, %v3461_v35  ;;  %v3304_v61 = vmin.f32 %v9193_v43, 20.0  ;;  %v3064_v48 = vpop.f32.mrf.mxu0  ;;  %v9200_v19 = vadd.f32 %v9161_v50, %v3224_v52 }
 0x522   :  { %v3622_v42 = vadd.f32 2.0, %v3558_v1  ;;  %v3557_v4 = vmul.f32 %v4375_v20, %v3493_v8  ;;  %v3272_v31 = vmin.f32 %v9196_v28, 20.0  ;;  %v9204_v44 = vadd.f32 %v9161_v50, %v3064_v48 }
 0x523   :  { %4376 = vrcp.f32 %v3590_v0  ;;  %v3589_v33 = vadd.f32 2.0, %v3525_v38  ;;  %v3429_v36 = vmul.f32 1.442695, %v3304_v61  ;;  %v3303_v56 = vmin.f32 %v9200_v19, 20.0 }
 0x524   :  { %4378 = vrcp.f32 %v3622_v42  ;;  %v3621_v24 = vadd.f32 2.0, %v3557_v4  ;;  %v3365_v32 = vmul.f32 1.442695, %v3272_v31  ;;  %v3271_v5 = vmin.f32 %v9204_v44, 20.0 }
 0x525   :  { %4380 = vrcp.f32 %v3589_v33  ;;  %v3427_v37 = vmul.f32 1.442695, %v3303_v56 }
 0x526   :  { %4382 = vrcp.f32 %v3621_v24  ;;  %v3363_v18 = vmul.f32 1.442695, %v3271_v5 }
 0x527   :  { %4384 = vpow2.f32 %v3365_v32 }
 0x528   :  { %4386 = vpow2.f32 %v3429_v36 }
 0x529   :  { %4388 = vpow2.f32 %v3363_v18 }
 0x52a   :  { %4390 = vpow2.f32 %v3427_v37 }
 0x530   :  { %v4377_v59 = vpop.eup %4376 }
 0x531   :  { %v4379_v23 = vpop.eup %4378  ;;  %v3682_v17 = vmul.f32 %v4377_v59, %v3526_v25 }
 0x532   :  { %v4381_v30 = vpop.eup %4380  ;;  %v3746_v39 = vmul.f32 %v4379_v23, %v3558_v1 }
 0x533   :  { %v4383_v21 = vpop.eup %4382  ;;  %v3782_v55 = vmul.f32 %v3682_v17, %v9176_v13  ;;  %v3680_v34 = vmul.f32 %v4381_v30, %v3525_v38 }
 0x534   :  { %v4385_v45 = vpop.eup %4384  ;;  %v3814_v9 = vmul.f32 %v3746_v39, %v9173_v11  ;;  %v3744_v57 = vmul.f32 %v4383_v21, %v3557_v4 }
 0x535   :  { %v4387_v41 = vpop.eup %4386  ;;  %3846 = vst [vmem:[#allocation2 + $0xd8] sm:$0xff] %v3782_v55  ;;  %v3781_v47 = vmul.f32 %v3680_v34, %v9184_v63  ;;  %v3464_v49 = vadd.f32 2.0, %v4385_v45 }
 0x536   :  { %v4389_v10 = vpop.eup %4388  ;;  %3878 = vst [vmem:[#allocation2 + $0x1d8] sm:$0xff] %v3814_v9  ;;  %v3813_v15 = vmul.f32 %v3744_v57, %v9180_v14  ;;  %v3496_v7 = vadd.f32 2.0, %v4387_v41  ;;  %v4139_v46 = vpop.f32.mrf.mxu1 }
 0x537   :  { %v4391_v40 = vpop.eup %4390  ;;  %3845 = vst [vmem:[#allocation2 + $0xd0] sm:$0xff] %v3781_v47  ;;  %v3528_v26 = vmul.f32 %v4385_v45, %v3464_v49  ;;  %v3463_v13 = vadd.f32 2.0, %v4389_v10  ;;  %v4091_v27 = vpop.f32.mrf.mxu0  ;;  %v9213_v6 = vadd.f32 %v9161_v50, %v4139_v46 }
 0x538   :  { %3877 = vst [vmem:[#allocation2 + $0x1d0] sm:$0xff] %v3813_v15  ;;  %v3560_v11 = vmul.f32 %v4387_v41, %v3496_v7  ;;  %v3495_v60 = vadd.f32 2.0, %v4391_v40  ;;  %v9216_v63 = vadd.f32 %v9161_v50, %v4091_v27  ;;  %v3234_v53 = vpop.f32.mrf.mxu1 }
 0x539   :  { %v3592_v12 = vadd.f32 2.0, %v3528_v26  ;;  %v3527_v3 = vmul.f32 %v4389_v10, %v3463_v13  ;;  %v3306_v14 = vmin.f32 %v9213_v6, 20.0  ;;  %v3074_v62 = vpop.f32.mrf.mxu0  ;;  %v9220_v29 = vadd.f32 %v9161_v50, %v3234_v53 }
 0x53a   :  { %v3624_v16 = vadd.f32 2.0, %v3560_v11  ;;  %v3559_v54 = vmul.f32 %v4391_v40, %v3495_v60  ;;  %v3274_v22 = vmin.f32 %v9216_v63, 20.0  ;;  %v9224_v58 = vadd.f32 %v9161_v50, %v3074_v62 }
 0x53b   :  { %4392 = vrcp.f32 %v3592_v12  ;;  %v3591_v2 = vadd.f32 2.0, %v3527_v3  ;;  %v3433_v20 = vmul.f32 1.442695, %v3306_v14  ;;  %v3305_v25 = vmin.f32 %v9220_v29, 20.0 }
 0x53c   :  { %4394 = vrcp.f32 %v3624_v16  ;;  %v3623_v35 = vadd.f32 2.0, %v3559_v54  ;;  %v3369_v51 = vmul.f32 1.442695, %v3274_v22  ;;  %v3273_v1 = vmin.f32 %v9224_v58, 20.0 }
 0x53d   :  { %4396 = vrcp.f32 %v3591_v2  ;;  %v3431_v52 = vmul.f32 1.442695, %v3305_v25 }
 0x53e   :  { %4398 = vrcp.f32 %v3623_v35  ;;  %v3367_v8 = vmul.f32 1.442695, %v3273_v1 }
 0x53f   :  { %4400 = vpow2.f32 %v3369_v51 }
 0x540   :  { %4402 = vpow2.f32 %v3433_v20 }
 0x541   :  { %4404 = vpow2.f32 %v3367_v8 }
 0x542   :  { %4406 = vpow2.f32 %v3431_v52 }
 0x548   :  { %v4393_v50 = vpop.eup %4392 }
 0x549   :  { %v4395_v0 = vpop.eup %4394  ;;  %v3686_v38 = vmul.f32 %v4393_v50, %v3528_v26 }
 0x54a   :  { %v4397_v61 = vpop.eup %4396  ;;  %v3750_v48 = vmul.f32 %v4395_v0, %v3560_v11 }
 0x54b   :  { %v4399_v42 = vpop.eup %4398  ;;  %v3784_v4 = vmul.f32 %v3686_v38, %v9196_v28  ;;  %v3684_v31 = vmul.f32 %v4397_v61, %v3527_v3 }
 0x54c   :  { %v4401_v33 = vpop.eup %4400  ;;  %v3816_v36 = vmul.f32 %v3750_v48, %v9193_v43  ;;  %v3748_v56 = vmul.f32 %v4399_v42, %v3559_v54 }
 0x54d   :  { %v4403_v24 = vpop.eup %4402  ;;  %3848 = vst [vmem:[#allocation2 + $0xe8] sm:$0xff] %v3784_v4  ;;  %v3783_v32 = vmul.f32 %v3684_v31, %v9204_v44  ;;  %v3466_v5 = vadd.f32 2.0, %v4401_v33 }
 0x54e   :  { %v4405_v18 = vpop.eup %4404  ;;  %3880 = vst [vmem:[#allocation2 + $0x1e8] sm:$0xff] %v3816_v36  ;;  %v3815_v37 = vmul.f32 %v3748_v56, %v9200_v19  ;;  %v3498_v59 = vadd.f32 2.0, %v4403_v24 }
 0x54f   :  { %v4407_v23 = vpop.eup %4406  ;;  %3847 = vst [vmem:[#allocation2 + $0xe0] sm:$0xff] %v3783_v32  ;;  %v3530_v17 = vmul.f32 %v4401_v33, %v3466_v5  ;;  %v3465_v30 = vadd.f32 2.0, %v4405_v18 }
 0x550   :  { %3879 = vst [vmem:[#allocation2 + $0x1e0] sm:$0xff] %v3815_v37  ;;  %v3562_v28 = vmul.f32 %v4403_v24, %v3498_v59  ;;  %v3497_v39 = vadd.f32 2.0, %v4407_v23 }
 0x551   :  { %v3594_v21 = vadd.f32 2.0, %v3530_v17  ;;  %v3529_v43 = vmul.f32 %v4405_v18, %v3465_v30 }
 0x552   :  { %v3626_v55 = vadd.f32 2.0, %v3562_v28  ;;  %v3561_v34 = vmul.f32 %v4407_v23, %v3497_v39 }
 0x553   :  { %4408 = vrcp.f32 %v3594_v21  ;;  %v3593_v45 = vadd.f32 2.0, %v3529_v43 }
 0x554   :  { %4410 = vrcp.f32 %v3626_v55  ;;  %v3625_v44 = vadd.f32 2.0, %v3561_v34 }
 0x555   :  { %4412 = vrcp.f32 %v3593_v45 }
 0x556   :  { %4414 = vrcp.f32 %v3625_v44 }
 0x560   :  { %v4409_v9 = vpop.eup %4408 }
 0x561   :  { %v4411_v19 = vpop.eup %4410  ;;  %v3690_v57 = vmul.f32 %v4409_v9, %v3530_v17 }
 0x562   :  { %v4413_v41 = vpop.eup %4412  ;;  %v3754_v47 = vmul.f32 %v4411_v19, %v3562_v28 }
 0x563   :  { %v4415_v49 = vpop.eup %4414  ;;  %v3786_v10 = vmul.f32 %v3690_v57, %v9216_v63  ;;  %v3688_v15 = vmul.f32 %v4413_v41, %v3529_v43 }
 0x564   :  { %v3818_v7 = vmul.f32 %v3754_v47, %v9213_v6  ;;  %v3752_v46 = vmul.f32 %v4415_v49, %v3561_v34 }
 0x565   :  { %3850 = vst [vmem:[#allocation2 + $0xf8] sm:$0xff] %v3786_v10  ;;  %v3785_v40 = vmul.f32 %v3688_v15, %v9224_v58 }
 0x566   :  { %3882 = vst [vmem:[#allocation2 + $0x1f8] sm:$0xff] %v3818_v7  ;;  %v3817_v26 = vmul.f32 %v3752_v46, %v9220_v29 }
 0x567   :  { %3849 = vst [vmem:[#allocation2 + $0xf0] sm:$0xff] %v3785_v40 }
 0x568   :  { %3881 = vst [vmem:[#allocation2 + $0x1f0] sm:$0xff] %v3817_v26 }
 0x569   :  { %4547 = shalt.err (!%p4544_p4)
}
 0x56a   :  { %s4567_s28 = smov 128  }
 0x56b   :  { %3894 = dma.vmem_to_hbm [thread:$0]  %s3889_s26, 8192, %s9243_s3, [#allocation3], %s4567_s28, %s4567_s28, %s4559_s22  }
 0x56c   :  { %4556 = dma.done.wait [#allocation3], 8192  }
 0x56d   :  { %4557 = vsyncadd [#allocation3], 4294959104 }
 0x56e   :  { %3898 = vsyncpa [#allocation3], 1 }

</bundles_post_ra>
